<compile_context>
chip_gen: v6e
topology: v6e:2x2x1
jax: 0.10.0
libtpu: 0.0.40
codegen_flags: <defaults>
</compile_context>

<pallas_src>
import functools

import jax
import jax.numpy as jnp
from jax.experimental import pallas as pl
from jax.experimental.pallas import tpu as pltpu

# MA-SNN default LIF parameters (pa_dict)
ALPHA = 0.3     # membrane decay
BETA = 0.0      # additive constant
VRESET = 0.0    # reset potential
VTHRES = 0.3    # firing threshold


def _attlif_kernel(x_ref, wbd_ref, b_ref, w1_ref, w2_ref, out_ref, *, T, H, Tr):
    # x_ref  : (TB, T*I) f32  VMEM  -- batch-major tile, (t, i) flattened in lanes
    # wbd_ref: (T*I, T*H) f32 VMEM  -- kron(I_T, W): block-diagonal Linear weight
    # b_ref  : (1, T*H)  f32  VMEM  -- bias tiled across T
    # w1_ref : (Tr, T)   f32  SMEM  -- TA shared-MLP layer 1 (Conv1d weight)
    # w2_ref : (T, Tr)   f32  SMEM  -- TA shared-MLP layer 2
    # out_ref: (TB, T*H) bf16 VMEM  -- spikes, lane-dense block
    TB = x_ref.shape[0]

    # ---- 1) Linear for all T timesteps in ONE lane-dense MXU matmul ----------
    lin = jnp.dot(x_ref[...], wbd_ref[...], preferred_element_type=jnp.float32)
    lin = lin + b_ref[...]                                   # (TB, T*H) f32

    # ---- 2) TA temporal attention (fc=True) ----------------------------------
    # Per-timestep pooled statistics over the H features (static lane slices).
    avg_cols = []
    max_cols = []
    for t in range(T):
        seg = lin[:, t * H:(t + 1) * H]                      # (TB, H)
        avg_cols.append(jnp.mean(seg, axis=1, keepdims=True))  # (TB, 1)
        max_cols.append(jnp.max(seg, axis=1, keepdims=True))   # (TB, 1)

    # Shared MLP over the T ("channel") axis, unrolled on the VPU with scalar
    # weights read from SMEM (avoids sub-vreg f32 MXU matmuls + relayouts).
    def shared_mlp(cols):
        hid = []
        for j in range(Tr):
            acc = cols[0] * w1_ref[j, 0]
            for t in range(1, T):
                acc = acc + cols[t] * w1_ref[j, t]
            hid.append(jnp.maximum(acc, 0.0))                # ReLU
        outs = []
        for t in range(T):
            acc = hid[0] * w2_ref[t, 0]
            for j in range(1, Tr):
                acc = acc + hid[j] * w2_ref[t, j]
            outs.append(acc)
        return outs                                          # T x (TB, 1)

    a_path = shared_mlp(avg_cols)
    m_path = shared_mlp(max_cols)
    att = [jax.nn.sigmoid(a_path[t] + m_path[t]) for t in range(T)]  # T x (TB,1)

    # ---- 3) IFCell LIF recurrence, fused with the attention gate -------------
    # Per-timestep spikes go straight into the lane-dense out block (no full
    # spike stack kept live -> low vreg pressure even at larger tile_b).
    h = jnp.zeros((TB, H), dtype=jnp.float32)
    for t in range(T):
        u = h + lin[:, t * H:(t + 1) * H] * att[t]           # gate + integrate
        s = (u > VTHRES).astype(jnp.float32)                 # Heaviside forward
        out_ref[:, t * H:(t + 1) * H] = s.astype(out_ref.dtype)
        h = ALPHA * u * (1.0 - s) + VRESET * s + BETA        # hard reset


def _pick_tile_b(B):
    # Small problems: one grid step (fixed-overhead dominated).  Larger B: cap
    # at 64 rows to keep lin + LIF temps comfortably inside the 64-vreg file.
    if B <= 64:
        return B
    for cand in (64, 48, 32, 16):
        if B % cand == 0:
            return cand
    return B


def attlif_forward(x, w, b, w1, w2, *, tile_b=None):
    """x: (B,T,I) f32; w: (I,H); b: (1,H); w1: (T//r,T); w2: (T,T//r).

    Returns spikes of shape (B, T, H) in bfloat16 ({0,1} exactly representable).
    """
    B, T, I = x.shape
    H = w.shape[1]
    Tr = w1.shape[0]
    assert w1.shape == (Tr, T) and w2.shape == (T, Tr)

    if tile_b is None:
        tile_b = _pick_tile_b(B)
    assert B % tile_b == 0, "tile_b must divide B"

    # Free, row-major-preserving layout plumbing (no HBM transpose passes).
    x_flat = x.astype(jnp.float32).reshape(B, T * I)
    # Block-diagonal Linear weight: applies W to every timestep in one matmul
    # with a 256-wide contraction/output at the demo sizes.
    w_bd = jnp.kron(jnp.eye(T, dtype=jnp.float32), w.astype(jnp.float32))
    b_flat = jnp.tile(b.astype(jnp.float32).reshape(1, H), (1, T))
    w1f = w1.astype(jnp.float32)
    w2f = w2.astype(jnp.float32)

    grid = (B // tile_b,)

    cost = pl.CostEstimate(
        flops=int(2 * B * (T * I) * (T * H) + 8 * B * T * Tr),
        transcendentals=int(B * T),                          # sigmoid
        bytes_accessed=int(4 * B * T * I                     # x (f32 read)
                           + 4 * (T * I) * (T * H)           # kron weight
                           + 4 * T * H + 4 * 2 * T * Tr      # bias + MLP
                           + 2 * B * T * H),                 # spikes (bf16)
    )

    out_flat = pl.pallas_call(
        functools.partial(_attlif_kernel, T=T, H=H, Tr=Tr),
        grid=grid,
        in_specs=[
            pl.BlockSpec((tile_b, T * I), lambda i: (i, 0)),          # x tile
            pl.BlockSpec((T * I, T * H), lambda i: (0, 0)),           # kron(I,W)
            pl.BlockSpec((1, T * H), lambda i: (0, 0)),               # bias
            pl.BlockSpec(memory_space=pltpu.MemorySpace.SMEM),        # TA W1
            pl.BlockSpec(memory_space=pltpu.MemorySpace.SMEM),        # TA W2
        ],
        out_specs=pl.BlockSpec((tile_b, T * H), lambda i: (i, 0)),
        out_shape=jax.ShapeDtypeStruct((B, T * H), jnp.bfloat16),
        compiler_params=pltpu.CompilerParams(
            dimension_semantics=("parallel",)),
        cost_estimate=cost,
    )(x_flat, w_bd, b_flat, w1f, w2f)

    return out_flat.reshape(B, T, H)                         # free reshape


def attlif_reference(x, w, b, w1, w2):
    """Pure-JAX f32 reference of the same forward math."""
    B, T, I = x.shape
    H = w.shape[1]
    lin = (x.reshape(B * T, I) @ w + b).reshape(B, T, H)
    avg = lin.mean(-1)                                       # (B, T)
    mx = lin.max(-1)

    def mlp(p):
        h1 = jnp.maximum(p @ w1.T, 0.0)
        return h1 @ w2.T

    att = jax.nn.sigmoid(mlp(avg) + mlp(mx))                 # (B, T)
    gated = lin * att[:, :, None]
    h = jnp.zeros((B, H), jnp.float32)
    outs = []
    for t in range(T):
        u = h + gated[:, t, :]
        s = (u > VTHRES).astype(jnp.float32)
        outs.append(s)
        h = ALPHA * u * (1.0 - s) + VRESET * s + BETA
    return jnp.stack(outs, axis=1)                           # (B, T, H)


if __name__ == "__main__":
    # Small shapes consistent with AttLIF(inputSize=32, hiddenSize=32, T=8,
    # t_ratio=4).  B=32 -> one grid step (tile_b=B), 256-lane-dense tiles.
    B, T, I, H = 32, 8, 32, 32
    t_ratio = 4
    Tr = T // t_ratio

    key = jax.random.PRNGKey(0)
    kx, kw, kb, k1, k2 = jax.random.split(key, 5)

    x = jax.random.normal(kx, (B, T, I), dtype=jnp.float32)
    # nn.Linear(inputSize, hiddenSize).weight is (H, I) -> pass transposed (I, H)
    w = jax.random.normal(kw, (I, H), dtype=jnp.float32) * 0.1
    b = jax.random.normal(kb, (1, H), dtype=jnp.float32) * 0.1
    # TA shared-MLP weights in native PyTorch Conv1d orientation (out_ch, in_ch)
    w1 = jax.random.normal(k1, (Tr, T), dtype=jnp.float32) * 0.5
    w2 = jax.random.normal(k2, (T, Tr), dtype=jnp.float32) * 0.5

    out = attlif_forward(x, w, b, w1, w2)
    out = jax.block_until_ready(out)

    assert out.shape == (B, T, H)
    assert out.dtype == jnp.bfloat16
    assert bool(jnp.all((out == 0.0) | (out == 1.0)))        # binary spikes

    ref = attlif_reference(x, w, b, w1, w2)
    mismatch = float(jnp.mean(jnp.abs(out.astype(jnp.float32) - ref)))
    assert mismatch <= 1e-3, f"spike mismatch fraction {mismatch}"

    print("KERNEL_OK")
</pallas_src>

<mosaic_0001>
module attributes {stable_mosaic.version = 11 : i64} {
  func.func @_attlif_kernel(%arg0: i32, %arg1: memref<32x256xf32, #tpu.memory_space<vmem>>, %arg2: memref<256x256xf32, #tpu.memory_space<vmem>>, %arg3: memref<1x256xf32, #tpu.memory_space<vmem>>, %arg4: memref<2x8xf32, #tpu.memory_space<smem>>, %arg5: memref<8x2xf32, #tpu.memory_space<smem>>, %arg6: memref<32x256xbf16, #tpu.memory_space<vmem>>) attributes {dimension_semantics = [#tpu.dimension_semantics<parallel>], iteration_bounds = array<i64: 1>, scalar_prefetch = 0 : i64, scratch_operands = 0 : i64, tpu.core_type = #tpu.core_type<tc>, window_params = [{transform_indices = @transform_0, window_bounds = array<i64: 32, 256>}, {pipeline_mode = #tpu.pipeline_mode<synchronous>, transform_indices = @transform_1, window_bounds = array<i64: 256, 256>}, {pipeline_mode = #tpu.pipeline_mode<synchronous>, transform_indices = @transform_2, window_bounds = array<i64: 1, 256>}, {transform_indices = @transform_3, window_bounds = array<i64: 2, 8>}, {transform_indices = @transform_4, window_bounds = array<i64: 8, 2>}, {transform_indices = @transform_5, window_bounds = array<i64: 32, 256>}]} {
    %c0 = arith.constant 0 : index
    %c0_0 = arith.constant 0 : index
    %0 = vector.load %arg1[%c0, %c0_0] : memref<32x256xf32, #tpu.memory_space<vmem>>, vector<32x256xf32>
    %c0_1 = arith.constant 0 : index
    %c0_2 = arith.constant 0 : index
    %1 = vector.load %arg2[%c0_1, %c0_2] : memref<256x256xf32, #tpu.memory_space<vmem>>, vector<256x256xf32>
    %cst = arith.constant dense<0.000000e+00> : vector<32x256xf32>
    %2 = tpu.matmul %0, %1, %cst {dimension_numbers = #tpu.dot_dimension_numbers<[1], [0], [0], [1], [0, 0, 1, 1], [], []>} : vector<32x256xf32>, vector<256x256xf32>, vector<32x256xf32> -> vector<32x256xf32>
    %c0_3 = arith.constant 0 : index
    %c0_4 = arith.constant 0 : index
    %3 = vector.load %arg3[%c0_3, %c0_4] : memref<1x256xf32, #tpu.memory_space<vmem>>, vector<1x256xf32>
    %4 = vector.broadcast %3 : vector<1x256xf32> to vector<32x256xf32>
    %5 = arith.addf %2, %4 : vector<32x256xf32>
    %6 = vector.extract_strided_slice %5 {offsets = [0, 0], sizes = [32, 32], strides = [1, 1]} : vector<32x256xf32> to vector<32x32xf32>
    %cst_5 = arith.constant dense<0.000000e+00> : vector<32xf32>
    %7 = vector.multi_reduction <add>, %6, %cst_5 [1] : vector<32x32xf32> to vector<32xf32>
    %8 = vector.shape_cast %7 : vector<32xf32> to vector<32x1xf32>
    %cst_6 = arith.constant 3.200000e+01 : f32
    %9 = vector.broadcast %cst_6 : f32 to vector<32x1xf32>
    %10 = arith.divf %8, %9 : vector<32x1xf32>
    %cst_7 = arith.constant dense<0xFF800000> : vector<32xf32>
    %11 = vector.multi_reduction <maximumf>, %6, %cst_7 [1] : vector<32x32xf32> to vector<32xf32>
    %12 = vector.shape_cast %11 : vector<32xf32> to vector<32x1xf32>
    %13 = vector.extract_strided_slice %5 {offsets = [0, 32], sizes = [32, 32], strides = [1, 1]} : vector<32x256xf32> to vector<32x32xf32>
    %cst_8 = arith.constant dense<0.000000e+00> : vector<32xf32>
    %14 = vector.multi_reduction <add>, %13, %cst_8 [1] : vector<32x32xf32> to vector<32xf32>
    %15 = vector.shape_cast %14 : vector<32xf32> to vector<32x1xf32>
    %cst_9 = arith.constant 3.200000e+01 : f32
    %16 = vector.broadcast %cst_9 : f32 to vector<32x1xf32>
    %17 = arith.divf %15, %16 : vector<32x1xf32>
    %cst_10 = arith.constant dense<0xFF800000> : vector<32xf32>
    %18 = vector.multi_reduction <maximumf>, %13, %cst_10 [1] : vector<32x32xf32> to vector<32xf32>
    %19 = vector.shape_cast %18 : vector<32xf32> to vector<32x1xf32>
    %20 = vector.extract_strided_slice %5 {offsets = [0, 64], sizes = [32, 32], strides = [1, 1]} : vector<32x256xf32> to vector<32x32xf32>
    %cst_11 = arith.constant dense<0.000000e+00> : vector<32xf32>
    %21 = vector.multi_reduction <add>, %20, %cst_11 [1] : vector<32x32xf32> to vector<32xf32>
    %22 = vector.shape_cast %21 : vector<32xf32> to vector<32x1xf32>
    %cst_12 = arith.constant 3.200000e+01 : f32
    %23 = vector.broadcast %cst_12 : f32 to vector<32x1xf32>
    %24 = arith.divf %22, %23 : vector<32x1xf32>
    %cst_13 = arith.constant dense<0xFF800000> : vector<32xf32>
    %25 = vector.multi_reduction <maximumf>, %20, %cst_13 [1] : vector<32x32xf32> to vector<32xf32>
    %26 = vector.shape_cast %25 : vector<32xf32> to vector<32x1xf32>
    %27 = vector.extract_strided_slice %5 {offsets = [0, 96], sizes = [32, 32], strides = [1, 1]} : vector<32x256xf32> to vector<32x32xf32>
    %cst_14 = arith.constant dense<0.000000e+00> : vector<32xf32>
    %28 = vector.multi_reduction <add>, %27, %cst_14 [1] : vector<32x32xf32> to vector<32xf32>
    %29 = vector.shape_cast %28 : vector<32xf32> to vector<32x1xf32>
    %cst_15 = arith.constant 3.200000e+01 : f32
    %30 = vector.broadcast %cst_15 : f32 to vector<32x1xf32>
    %31 = arith.divf %29, %30 : vector<32x1xf32>
    %cst_16 = arith.constant dense<0xFF800000> : vector<32xf32>
    %32 = vector.multi_reduction <maximumf>, %27, %cst_16 [1] : vector<32x32xf32> to vector<32xf32>
    %33 = vector.shape_cast %32 : vector<32xf32> to vector<32x1xf32>
    %34 = vector.extract_strided_slice %5 {offsets = [0, 128], sizes = [32, 32], strides = [1, 1]} : vector<32x256xf32> to vector<32x32xf32>
    %cst_17 = arith.constant dense<0.000000e+00> : vector<32xf32>
    %35 = vector.multi_reduction <add>, %34, %cst_17 [1] : vector<32x32xf32> to vector<32xf32>
    %36 = vector.shape_cast %35 : vector<32xf32> to vector<32x1xf32>
    %cst_18 = arith.constant 3.200000e+01 : f32
    %37 = vector.broadcast %cst_18 : f32 to vector<32x1xf32>
    %38 = arith.divf %36, %37 : vector<32x1xf32>
    %cst_19 = arith.constant dense<0xFF800000> : vector<32xf32>
    %39 = vector.multi_reduction <maximumf>, %34, %cst_19 [1] : vector<32x32xf32> to vector<32xf32>
    %40 = vector.shape_cast %39 : vector<32xf32> to vector<32x1xf32>
    %41 = vector.extract_strided_slice %5 {offsets = [0, 160], sizes = [32, 32], strides = [1, 1]} : vector<32x256xf32> to vector<32x32xf32>
    %cst_20 = arith.constant dense<0.000000e+00> : vector<32xf32>
    %42 = vector.multi_reduction <add>, %41, %cst_20 [1] : vector<32x32xf32> to vector<32xf32>
    %43 = vector.shape_cast %42 : vector<32xf32> to vector<32x1xf32>
    %cst_21 = arith.constant 3.200000e+01 : f32
    %44 = vector.broadcast %cst_21 : f32 to vector<32x1xf32>
    %45 = arith.divf %43, %44 : vector<32x1xf32>
    %cst_22 = arith.constant dense<0xFF800000> : vector<32xf32>
    %46 = vector.multi_reduction <maximumf>, %41, %cst_22 [1] : vector<32x32xf32> to vector<32xf32>
    %47 = vector.shape_cast %46 : vector<32xf32> to vector<32x1xf32>
    %48 = vector.extract_strided_slice %5 {offsets = [0, 192], sizes = [32, 32], strides = [1, 1]} : vector<32x256xf32> to vector<32x32xf32>
    %cst_23 = arith.constant dense<0.000000e+00> : vector<32xf32>
    %49 = vector.multi_reduction <add>, %48, %cst_23 [1] : vector<32x32xf32> to vector<32xf32>
    %50 = vector.shape_cast %49 : vector<32xf32> to vector<32x1xf32>
    %cst_24 = arith.constant 3.200000e+01 : f32
    %51 = vector.broadcast %cst_24 : f32 to vector<32x1xf32>
    %52 = arith.divf %50, %51 : vector<32x1xf32>
    %cst_25 = arith.constant dense<0xFF800000> : vector<32xf32>
    %53 = vector.multi_reduction <maximumf>, %48, %cst_25 [1] : vector<32x32xf32> to vector<32xf32>
    %54 = vector.shape_cast %53 : vector<32xf32> to vector<32x1xf32>
    %55 = vector.extract_strided_slice %5 {offsets = [0, 224], sizes = [32, 32], strides = [1, 1]} : vector<32x256xf32> to vector<32x32xf32>
    %cst_26 = arith.constant dense<0.000000e+00> : vector<32xf32>
    %56 = vector.multi_reduction <add>, %55, %cst_26 [1] : vector<32x32xf32> to vector<32xf32>
    %57 = vector.shape_cast %56 : vector<32xf32> to vector<32x1xf32>
    %cst_27 = arith.constant 3.200000e+01 : f32
    %58 = vector.broadcast %cst_27 : f32 to vector<32x1xf32>
    %59 = arith.divf %57, %58 : vector<32x1xf32>
    %cst_28 = arith.constant dense<0xFF800000> : vector<32xf32>
    %60 = vector.multi_reduction <maximumf>, %55, %cst_28 [1] : vector<32x32xf32> to vector<32xf32>
    %61 = vector.shape_cast %60 : vector<32xf32> to vector<32x1xf32>
    %c0_29 = arith.constant 0 : index
    %c0_30 = arith.constant 0 : index
    %62 = memref.load %arg4[%c0_29, %c0_30] : memref<2x8xf32, #tpu.memory_space<smem>>
    %63 = vector.broadcast %62 : f32 to vector<32x1xf32>
    %64 = arith.mulf %10, %63 : vector<32x1xf32>
    %c0_31 = arith.constant 0 : index
    %c1 = arith.constant 1 : index
    %65 = memref.load %arg4[%c0_31, %c1] : memref<2x8xf32, #tpu.memory_space<smem>>
    %66 = vector.broadcast %65 : f32 to vector<32x1xf32>
    %67 = arith.mulf %17, %66 : vector<32x1xf32>
    %68 = arith.addf %64, %67 : vector<32x1xf32>
    %c0_32 = arith.constant 0 : index
    %c2 = arith.constant 2 : index
    %69 = memref.load %arg4[%c0_32, %c2] : memref<2x8xf32, #tpu.memory_space<smem>>
    %70 = vector.broadcast %69 : f32 to vector<32x1xf32>
    %71 = arith.mulf %24, %70 : vector<32x1xf32>
    %72 = arith.addf %68, %71 : vector<32x1xf32>
    %c0_33 = arith.constant 0 : index
    %c3 = arith.constant 3 : index
    %73 = memref.load %arg4[%c0_33, %c3] : memref<2x8xf32, #tpu.memory_space<smem>>
    %74 = vector.broadcast %73 : f32 to vector<32x1xf32>
    %75 = arith.mulf %31, %74 : vector<32x1xf32>
    %76 = arith.addf %72, %75 : vector<32x1xf32>
    %c0_34 = arith.constant 0 : index
    %c4 = arith.constant 4 : index
    %77 = memref.load %arg4[%c0_34, %c4] : memref<2x8xf32, #tpu.memory_space<smem>>
    %78 = vector.broadcast %77 : f32 to vector<32x1xf32>
    %79 = arith.mulf %38, %78 : vector<32x1xf32>
    %80 = arith.addf %76, %79 : vector<32x1xf32>
    %c0_35 = arith.constant 0 : index
    %c5 = arith.constant 5 : index
    %81 = memref.load %arg4[%c0_35, %c5] : memref<2x8xf32, #tpu.memory_space<smem>>
    %82 = vector.broadcast %81 : f32 to vector<32x1xf32>
    %83 = arith.mulf %45, %82 : vector<32x1xf32>
    %84 = arith.addf %80, %83 : vector<32x1xf32>
    %c0_36 = arith.constant 0 : index
    %c6 = arith.constant 6 : index
    %85 = memref.load %arg4[%c0_36, %c6] : memref<2x8xf32, #tpu.memory_space<smem>>
    %86 = vector.broadcast %85 : f32 to vector<32x1xf32>
    %87 = arith.mulf %52, %86 : vector<32x1xf32>
    %88 = arith.addf %84, %87 : vector<32x1xf32>
    %c0_37 = arith.constant 0 : index
    %c7 = arith.constant 7 : index
    %89 = memref.load %arg4[%c0_37, %c7] : memref<2x8xf32, #tpu.memory_space<smem>>
    %90 = vector.broadcast %89 : f32 to vector<32x1xf32>
    %91 = arith.mulf %59, %90 : vector<32x1xf32>
    %92 = arith.addf %88, %91 : vector<32x1xf32>
    %cst_38 = arith.constant 0.000000e+00 : f32
    %93 = vector.broadcast %cst_38 : f32 to vector<32x1xf32>
    %94 = arith.maximumf %92, %93 : vector<32x1xf32>
    %c1_39 = arith.constant 1 : index
    %c0_40 = arith.constant 0 : index
    %95 = memref.load %arg4[%c1_39, %c0_40] : memref<2x8xf32, #tpu.memory_space<smem>>
    %96 = vector.broadcast %95 : f32 to vector<32x1xf32>
    %97 = arith.mulf %10, %96 : vector<32x1xf32>
    %c1_41 = arith.constant 1 : index
    %c1_42 = arith.constant 1 : index
    %98 = memref.load %arg4[%c1_41, %c1_42] : memref<2x8xf32, #tpu.memory_space<smem>>
    %99 = vector.broadcast %98 : f32 to vector<32x1xf32>
    %100 = arith.mulf %17, %99 : vector<32x1xf32>
    %101 = arith.addf %97, %100 : vector<32x1xf32>
    %c1_43 = arith.constant 1 : index
    %c2_44 = arith.constant 2 : index
    %102 = memref.load %arg4[%c1_43, %c2_44] : memref<2x8xf32, #tpu.memory_space<smem>>
    %103 = vector.broadcast %102 : f32 to vector<32x1xf32>
    %104 = arith.mulf %24, %103 : vector<32x1xf32>
    %105 = arith.addf %101, %104 : vector<32x1xf32>
    %c1_45 = arith.constant 1 : index
    %c3_46 = arith.constant 3 : index
    %106 = memref.load %arg4[%c1_45, %c3_46] : memref<2x8xf32, #tpu.memory_space<smem>>
    %107 = vector.broadcast %106 : f32 to vector<32x1xf32>
    %108 = arith.mulf %31, %107 : vector<32x1xf32>
    %109 = arith.addf %105, %108 : vector<32x1xf32>
    %c1_47 = arith.constant 1 : index
    %c4_48 = arith.constant 4 : index
    %110 = memref.load %arg4[%c1_47, %c4_48] : memref<2x8xf32, #tpu.memory_space<smem>>
    %111 = vector.broadcast %110 : f32 to vector<32x1xf32>
    %112 = arith.mulf %38, %111 : vector<32x1xf32>
    %113 = arith.addf %109, %112 : vector<32x1xf32>
    %c1_49 = arith.constant 1 : index
    %c5_50 = arith.constant 5 : index
    %114 = memref.load %arg4[%c1_49, %c5_50] : memref<2x8xf32, #tpu.memory_space<smem>>
    %115 = vector.broadcast %114 : f32 to vector<32x1xf32>
    %116 = arith.mulf %45, %115 : vector<32x1xf32>
    %117 = arith.addf %113, %116 : vector<32x1xf32>
    %c1_51 = arith.constant 1 : index
    %c6_52 = arith.constant 6 : index
    %118 = memref.load %arg4[%c1_51, %c6_52] : memref<2x8xf32, #tpu.memory_space<smem>>
    %119 = vector.broadcast %118 : f32 to vector<32x1xf32>
    %120 = arith.mulf %52, %119 : vector<32x1xf32>
    %121 = arith.addf %117, %120 : vector<32x1xf32>
    %c1_53 = arith.constant 1 : index
    %c7_54 = arith.constant 7 : index
    %122 = memref.load %arg4[%c1_53, %c7_54] : memref<2x8xf32, #tpu.memory_space<smem>>
    %123 = vector.broadcast %122 : f32 to vector<32x1xf32>
    %124 = arith.mulf %59, %123 : vector<32x1xf32>
    %125 = arith.addf %121, %124 : vector<32x1xf32>
    %cst_55 = arith.constant 0.000000e+00 : f32
    %126 = vector.broadcast %cst_55 : f32 to vector<32x1xf32>
    %127 = arith.maximumf %125, %126 : vector<32x1xf32>
    %c0_56 = arith.constant 0 : index
    %c0_57 = arith.constant 0 : index
    %128 = memref.load %arg5[%c0_56, %c0_57] : memref<8x2xf32, #tpu.memory_space<smem>>
    %129 = vector.broadcast %128 : f32 to vector<32x1xf32>
    %130 = arith.mulf %94, %129 : vector<32x1xf32>
    %c0_58 = arith.constant 0 : index
    %c1_59 = arith.constant 1 : index
    %131 = memref.load %arg5[%c0_58, %c1_59] : memref<8x2xf32, #tpu.memory_space<smem>>
    %132 = vector.broadcast %131 : f32 to vector<32x1xf32>
    %133 = arith.mulf %127, %132 : vector<32x1xf32>
    %134 = arith.addf %130, %133 : vector<32x1xf32>
    %c1_60 = arith.constant 1 : index
    %c0_61 = arith.constant 0 : index
    %135 = memref.load %arg5[%c1_60, %c0_61] : memref<8x2xf32, #tpu.memory_space<smem>>
    %136 = vector.broadcast %135 : f32 to vector<32x1xf32>
    %137 = arith.mulf %94, %136 : vector<32x1xf32>
    %c1_62 = arith.constant 1 : index
    %c1_63 = arith.constant 1 : index
    %138 = memref.load %arg5[%c1_62, %c1_63] : memref<8x2xf32, #tpu.memory_space<smem>>
    %139 = vector.broadcast %138 : f32 to vector<32x1xf32>
    %140 = arith.mulf %127, %139 : vector<32x1xf32>
    %141 = arith.addf %137, %140 : vector<32x1xf32>
    %c2_64 = arith.constant 2 : index
    %c0_65 = arith.constant 0 : index
    %142 = memref.load %arg5[%c2_64, %c0_65] : memref<8x2xf32, #tpu.memory_space<smem>>
    %143 = vector.broadcast %142 : f32 to vector<32x1xf32>
    %144 = arith.mulf %94, %143 : vector<32x1xf32>
    %c2_66 = arith.constant 2 : index
    %c1_67 = arith.constant 1 : index
    %145 = memref.load %arg5[%c2_66, %c1_67] : memref<8x2xf32, #tpu.memory_space<smem>>
    %146 = vector.broadcast %145 : f32 to vector<32x1xf32>
    %147 = arith.mulf %127, %146 : vector<32x1xf32>
    %148 = arith.addf %144, %147 : vector<32x1xf32>
    %c3_68 = arith.constant 3 : index
    %c0_69 = arith.constant 0 : index
    %149 = memref.load %arg5[%c3_68, %c0_69] : memref<8x2xf32, #tpu.memory_space<smem>>
    %150 = vector.broadcast %149 : f32 to vector<32x1xf32>
    %151 = arith.mulf %94, %150 : vector<32x1xf32>
    %c3_70 = arith.constant 3 : index
    %c1_71 = arith.constant 1 : index
    %152 = memref.load %arg5[%c3_70, %c1_71] : memref<8x2xf32, #tpu.memory_space<smem>>
    %153 = vector.broadcast %152 : f32 to vector<32x1xf32>
    %154 = arith.mulf %127, %153 : vector<32x1xf32>
    %155 = arith.addf %151, %154 : vector<32x1xf32>
    %c4_72 = arith.constant 4 : index
    %c0_73 = arith.constant 0 : index
    %156 = memref.load %arg5[%c4_72, %c0_73] : memref<8x2xf32, #tpu.memory_space<smem>>
    %157 = vector.broadcast %156 : f32 to vector<32x1xf32>
    %158 = arith.mulf %94, %157 : vector<32x1xf32>
    %c4_74 = arith.constant 4 : index
    %c1_75 = arith.constant 1 : index
    %159 = memref.load %arg5[%c4_74, %c1_75] : memref<8x2xf32, #tpu.memory_space<smem>>
    %160 = vector.broadcast %159 : f32 to vector<32x1xf32>
    %161 = arith.mulf %127, %160 : vector<32x1xf32>
    %162 = arith.addf %158, %161 : vector<32x1xf32>
    %c5_76 = arith.constant 5 : index
    %c0_77 = arith.constant 0 : index
    %163 = memref.load %arg5[%c5_76, %c0_77] : memref<8x2xf32, #tpu.memory_space<smem>>
    %164 = vector.broadcast %163 : f32 to vector<32x1xf32>
    %165 = arith.mulf %94, %164 : vector<32x1xf32>
    %c5_78 = arith.constant 5 : index
    %c1_79 = arith.constant 1 : index
    %166 = memref.load %arg5[%c5_78, %c1_79] : memref<8x2xf32, #tpu.memory_space<smem>>
    %167 = vector.broadcast %166 : f32 to vector<32x1xf32>
    %168 = arith.mulf %127, %167 : vector<32x1xf32>
    %169 = arith.addf %165, %168 : vector<32x1xf32>
    %c6_80 = arith.constant 6 : index
    %c0_81 = arith.constant 0 : index
    %170 = memref.load %arg5[%c6_80, %c0_81] : memref<8x2xf32, #tpu.memory_space<smem>>
    %171 = vector.broadcast %170 : f32 to vector<32x1xf32>
    %172 = arith.mulf %94, %171 : vector<32x1xf32>
    %c6_82 = arith.constant 6 : index
    %c1_83 = arith.constant 1 : index
    %173 = memref.load %arg5[%c6_82, %c1_83] : memref<8x2xf32, #tpu.memory_space<smem>>
    %174 = vector.broadcast %173 : f32 to vector<32x1xf32>
    %175 = arith.mulf %127, %174 : vector<32x1xf32>
    %176 = arith.addf %172, %175 : vector<32x1xf32>
    %c7_84 = arith.constant 7 : index
    %c0_85 = arith.constant 0 : index
    %177 = memref.load %arg5[%c7_84, %c0_85] : memref<8x2xf32, #tpu.memory_space<smem>>
    %178 = vector.broadcast %177 : f32 to vector<32x1xf32>
    %179 = arith.mulf %94, %178 : vector<32x1xf32>
    %c7_86 = arith.constant 7 : index
    %c1_87 = arith.constant 1 : index
    %180 = memref.load %arg5[%c7_86, %c1_87] : memref<8x2xf32, #tpu.memory_space<smem>>
    %181 = vector.broadcast %180 : f32 to vector<32x1xf32>
    %182 = arith.mulf %127, %181 : vector<32x1xf32>
    %183 = arith.addf %179, %182 : vector<32x1xf32>
    %c0_88 = arith.constant 0 : index
    %c0_89 = arith.constant 0 : index
    %184 = memref.load %arg4[%c0_88, %c0_89] : memref<2x8xf32, #tpu.memory_space<smem>>
    %185 = vector.broadcast %184 : f32 to vector<32x1xf32>
    %186 = arith.mulf %12, %185 : vector<32x1xf32>
    %c0_90 = arith.constant 0 : index
    %c1_91 = arith.constant 1 : index
    %187 = memref.load %arg4[%c0_90, %c1_91] : memref<2x8xf32, #tpu.memory_space<smem>>
    %188 = vector.broadcast %187 : f32 to vector<32x1xf32>
    %189 = arith.mulf %19, %188 : vector<32x1xf32>
    %190 = arith.addf %186, %189 : vector<32x1xf32>
    %c0_92 = arith.constant 0 : index
    %c2_93 = arith.constant 2 : index
    %191 = memref.load %arg4[%c0_92, %c2_93] : memref<2x8xf32, #tpu.memory_space<smem>>
    %192 = vector.broadcast %191 : f32 to vector<32x1xf32>
    %193 = arith.mulf %26, %192 : vector<32x1xf32>
    %194 = arith.addf %190, %193 : vector<32x1xf32>
    %c0_94 = arith.constant 0 : index
    %c3_95 = arith.constant 3 : index
    %195 = memref.load %arg4[%c0_94, %c3_95] : memref<2x8xf32, #tpu.memory_space<smem>>
    %196 = vector.broadcast %195 : f32 to vector<32x1xf32>
    %197 = arith.mulf %33, %196 : vector<32x1xf32>
    %198 = arith.addf %194, %197 : vector<32x1xf32>
    %c0_96 = arith.constant 0 : index
    %c4_97 = arith.constant 4 : index
    %199 = memref.load %arg4[%c0_96, %c4_97] : memref<2x8xf32, #tpu.memory_space<smem>>
    %200 = vector.broadcast %199 : f32 to vector<32x1xf32>
    %201 = arith.mulf %40, %200 : vector<32x1xf32>
    %202 = arith.addf %198, %201 : vector<32x1xf32>
    %c0_98 = arith.constant 0 : index
    %c5_99 = arith.constant 5 : index
    %203 = memref.load %arg4[%c0_98, %c5_99] : memref<2x8xf32, #tpu.memory_space<smem>>
    %204 = vector.broadcast %203 : f32 to vector<32x1xf32>
    %205 = arith.mulf %47, %204 : vector<32x1xf32>
    %206 = arith.addf %202, %205 : vector<32x1xf32>
    %c0_100 = arith.constant 0 : index
    %c6_101 = arith.constant 6 : index
    %207 = memref.load %arg4[%c0_100, %c6_101] : memref<2x8xf32, #tpu.memory_space<smem>>
    %208 = vector.broadcast %207 : f32 to vector<32x1xf32>
    %209 = arith.mulf %54, %208 : vector<32x1xf32>
    %210 = arith.addf %206, %209 : vector<32x1xf32>
    %c0_102 = arith.constant 0 : index
    %c7_103 = arith.constant 7 : index
    %211 = memref.load %arg4[%c0_102, %c7_103] : memref<2x8xf32, #tpu.memory_space<smem>>
    %212 = vector.broadcast %211 : f32 to vector<32x1xf32>
    %213 = arith.mulf %61, %212 : vector<32x1xf32>
    %214 = arith.addf %210, %213 : vector<32x1xf32>
    %cst_104 = arith.constant 0.000000e+00 : f32
    %215 = vector.broadcast %cst_104 : f32 to vector<32x1xf32>
    %216 = arith.maximumf %214, %215 : vector<32x1xf32>
    %c1_105 = arith.constant 1 : index
    %c0_106 = arith.constant 0 : index
    %217 = memref.load %arg4[%c1_105, %c0_106] : memref<2x8xf32, #tpu.memory_space<smem>>
    %218 = vector.broadcast %217 : f32 to vector<32x1xf32>
    %219 = arith.mulf %12, %218 : vector<32x1xf32>
    %c1_107 = arith.constant 1 : index
    %c1_108 = arith.constant 1 : index
    %220 = memref.load %arg4[%c1_107, %c1_108] : memref<2x8xf32, #tpu.memory_space<smem>>
    %221 = vector.broadcast %220 : f32 to vector<32x1xf32>
    %222 = arith.mulf %19, %221 : vector<32x1xf32>
    %223 = arith.addf %219, %222 : vector<32x1xf32>
    %c1_109 = arith.constant 1 : index
    %c2_110 = arith.constant 2 : index
    %224 = memref.load %arg4[%c1_109, %c2_110] : memref<2x8xf32, #tpu.memory_space<smem>>
    %225 = vector.broadcast %224 : f32 to vector<32x1xf32>
    %226 = arith.mulf %26, %225 : vector<32x1xf32>
    %227 = arith.addf %223, %226 : vector<32x1xf32>
    %c1_111 = arith.constant 1 : index
    %c3_112 = arith.constant 3 : index
    %228 = memref.load %arg4[%c1_111, %c3_112] : memref<2x8xf32, #tpu.memory_space<smem>>
    %229 = vector.broadcast %228 : f32 to vector<32x1xf32>
    %230 = arith.mulf %33, %229 : vector<32x1xf32>
    %231 = arith.addf %227, %230 : vector<32x1xf32>
    %c1_113 = arith.constant 1 : index
    %c4_114 = arith.constant 4 : index
    %232 = memref.load %arg4[%c1_113, %c4_114] : memref<2x8xf32, #tpu.memory_space<smem>>
    %233 = vector.broadcast %232 : f32 to vector<32x1xf32>
    %234 = arith.mulf %40, %233 : vector<32x1xf32>
    %235 = arith.addf %231, %234 : vector<32x1xf32>
    %c1_115 = arith.constant 1 : index
    %c5_116 = arith.constant 5 : index
    %236 = memref.load %arg4[%c1_115, %c5_116] : memref<2x8xf32, #tpu.memory_space<smem>>
    %237 = vector.broadcast %236 : f32 to vector<32x1xf32>
    %238 = arith.mulf %47, %237 : vector<32x1xf32>
    %239 = arith.addf %235, %238 : vector<32x1xf32>
    %c1_117 = arith.constant 1 : index
    %c6_118 = arith.constant 6 : index
    %240 = memref.load %arg4[%c1_117, %c6_118] : memref<2x8xf32, #tpu.memory_space<smem>>
    %241 = vector.broadcast %240 : f32 to vector<32x1xf32>
    %242 = arith.mulf %54, %241 : vector<32x1xf32>
    %243 = arith.addf %239, %242 : vector<32x1xf32>
    %c1_119 = arith.constant 1 : index
    %c7_120 = arith.constant 7 : index
    %244 = memref.load %arg4[%c1_119, %c7_120] : memref<2x8xf32, #tpu.memory_space<smem>>
    %245 = vector.broadcast %244 : f32 to vector<32x1xf32>
    %246 = arith.mulf %61, %245 : vector<32x1xf32>
    %247 = arith.addf %243, %246 : vector<32x1xf32>
    %cst_121 = arith.constant 0.000000e+00 : f32
    %248 = vector.broadcast %cst_121 : f32 to vector<32x1xf32>
    %249 = arith.maximumf %247, %248 : vector<32x1xf32>
    %c0_122 = arith.constant 0 : index
    %c0_123 = arith.constant 0 : index
    %250 = memref.load %arg5[%c0_122, %c0_123] : memref<8x2xf32, #tpu.memory_space<smem>>
    %251 = vector.broadcast %250 : f32 to vector<32x1xf32>
    %252 = arith.mulf %216, %251 : vector<32x1xf32>
    %c0_124 = arith.constant 0 : index
    %c1_125 = arith.constant 1 : index
    %253 = memref.load %arg5[%c0_124, %c1_125] : memref<8x2xf32, #tpu.memory_space<smem>>
    %254 = vector.broadcast %253 : f32 to vector<32x1xf32>
    %255 = arith.mulf %249, %254 : vector<32x1xf32>
    %256 = arith.addf %252, %255 : vector<32x1xf32>
    %c1_126 = arith.constant 1 : index
    %c0_127 = arith.constant 0 : index
    %257 = memref.load %arg5[%c1_126, %c0_127] : memref<8x2xf32, #tpu.memory_space<smem>>
    %258 = vector.broadcast %257 : f32 to vector<32x1xf32>
    %259 = arith.mulf %216, %258 : vector<32x1xf32>
    %c1_128 = arith.constant 1 : index
    %c1_129 = arith.constant 1 : index
    %260 = memref.load %arg5[%c1_128, %c1_129] : memref<8x2xf32, #tpu.memory_space<smem>>
    %261 = vector.broadcast %260 : f32 to vector<32x1xf32>
    %262 = arith.mulf %249, %261 : vector<32x1xf32>
    %263 = arith.addf %259, %262 : vector<32x1xf32>
    %c2_130 = arith.constant 2 : index
    %c0_131 = arith.constant 0 : index
    %264 = memref.load %arg5[%c2_130, %c0_131] : memref<8x2xf32, #tpu.memory_space<smem>>
    %265 = vector.broadcast %264 : f32 to vector<32x1xf32>
    %266 = arith.mulf %216, %265 : vector<32x1xf32>
    %c2_132 = arith.constant 2 : index
    %c1_133 = arith.constant 1 : index
    %267 = memref.load %arg5[%c2_132, %c1_133] : memref<8x2xf32, #tpu.memory_space<smem>>
    %268 = vector.broadcast %267 : f32 to vector<32x1xf32>
    %269 = arith.mulf %249, %268 : vector<32x1xf32>
    %270 = arith.addf %266, %269 : vector<32x1xf32>
    %c3_134 = arith.constant 3 : index
    %c0_135 = arith.constant 0 : index
    %271 = memref.load %arg5[%c3_134, %c0_135] : memref<8x2xf32, #tpu.memory_space<smem>>
    %272 = vector.broadcast %271 : f32 to vector<32x1xf32>
    %273 = arith.mulf %216, %272 : vector<32x1xf32>
    %c3_136 = arith.constant 3 : index
    %c1_137 = arith.constant 1 : index
    %274 = memref.load %arg5[%c3_136, %c1_137] : memref<8x2xf32, #tpu.memory_space<smem>>
    %275 = vector.broadcast %274 : f32 to vector<32x1xf32>
    %276 = arith.mulf %249, %275 : vector<32x1xf32>
    %277 = arith.addf %273, %276 : vector<32x1xf32>
    %c4_138 = arith.constant 4 : index
    %c0_139 = arith.constant 0 : index
    %278 = memref.load %arg5[%c4_138, %c0_139] : memref<8x2xf32, #tpu.memory_space<smem>>
    %279 = vector.broadcast %278 : f32 to vector<32x1xf32>
    %280 = arith.mulf %216, %279 : vector<32x1xf32>
    %c4_140 = arith.constant 4 : index
    %c1_141 = arith.constant 1 : index
    %281 = memref.load %arg5[%c4_140, %c1_141] : memref<8x2xf32, #tpu.memory_space<smem>>
    %282 = vector.broadcast %281 : f32 to vector<32x1xf32>
    %283 = arith.mulf %249, %282 : vector<32x1xf32>
    %284 = arith.addf %280, %283 : vector<32x1xf32>
    %c5_142 = arith.constant 5 : index
    %c0_143 = arith.constant 0 : index
    %285 = memref.load %arg5[%c5_142, %c0_143] : memref<8x2xf32, #tpu.memory_space<smem>>
    %286 = vector.broadcast %285 : f32 to vector<32x1xf32>
    %287 = arith.mulf %216, %286 : vector<32x1xf32>
    %c5_144 = arith.constant 5 : index
    %c1_145 = arith.constant 1 : index
    %288 = memref.load %arg5[%c5_144, %c1_145] : memref<8x2xf32, #tpu.memory_space<smem>>
    %289 = vector.broadcast %288 : f32 to vector<32x1xf32>
    %290 = arith.mulf %249, %289 : vector<32x1xf32>
    %291 = arith.addf %287, %290 : vector<32x1xf32>
    %c6_146 = arith.constant 6 : index
    %c0_147 = arith.constant 0 : index
    %292 = memref.load %arg5[%c6_146, %c0_147] : memref<8x2xf32, #tpu.memory_space<smem>>
    %293 = vector.broadcast %292 : f32 to vector<32x1xf32>
    %294 = arith.mulf %216, %293 : vector<32x1xf32>
    %c6_148 = arith.constant 6 : index
    %c1_149 = arith.constant 1 : index
    %295 = memref.load %arg5[%c6_148, %c1_149] : memref<8x2xf32, #tpu.memory_space<smem>>
    %296 = vector.broadcast %295 : f32 to vector<32x1xf32>
    %297 = arith.mulf %249, %296 : vector<32x1xf32>
    %298 = arith.addf %294, %297 : vector<32x1xf32>
    %c7_150 = arith.constant 7 : index
    %c0_151 = arith.constant 0 : index
    %299 = memref.load %arg5[%c7_150, %c0_151] : memref<8x2xf32, #tpu.memory_space<smem>>
    %300 = vector.broadcast %299 : f32 to vector<32x1xf32>
    %301 = arith.mulf %216, %300 : vector<32x1xf32>
    %c7_152 = arith.constant 7 : index
    %c1_153 = arith.constant 1 : index
    %302 = memref.load %arg5[%c7_152, %c1_153] : memref<8x2xf32, #tpu.memory_space<smem>>
    %303 = vector.broadcast %302 : f32 to vector<32x1xf32>
    %304 = arith.mulf %249, %303 : vector<32x1xf32>
    %305 = arith.addf %301, %304 : vector<32x1xf32>
    %306 = arith.addf %134, %256 : vector<32x1xf32>
    %307 = arith.negf %306 : vector<32x1xf32>
    %308 = math.exp %307 : vector<32x1xf32>
    %cst_154 = arith.constant 1.000000e+00 : f32
    %309 = vector.broadcast %cst_154 : f32 to vector<32x1xf32>
    %310 = arith.addf %309, %308 : vector<32x1xf32>
    %311 = arith.divf %309, %310 : vector<32x1xf32>
    %312 = arith.addf %141, %263 : vector<32x1xf32>
    %313 = arith.negf %312 : vector<32x1xf32>
    %314 = math.exp %313 : vector<32x1xf32>
    %cst_155 = arith.constant 1.000000e+00 : f32
    %315 = vector.broadcast %cst_155 : f32 to vector<32x1xf32>
    %316 = arith.addf %315, %314 : vector<32x1xf32>
    %317 = arith.divf %315, %316 : vector<32x1xf32>
    %318 = arith.addf %148, %270 : vector<32x1xf32>
    %319 = arith.negf %318 : vector<32x1xf32>
    %320 = math.exp %319 : vector<32x1xf32>
    %cst_156 = arith.constant 1.000000e+00 : f32
    %321 = vector.broadcast %cst_156 : f32 to vector<32x1xf32>
    %322 = arith.addf %321, %320 : vector<32x1xf32>
    %323 = arith.divf %321, %322 : vector<32x1xf32>
    %324 = arith.addf %155, %277 : vector<32x1xf32>
    %325 = arith.negf %324 : vector<32x1xf32>
    %326 = math.exp %325 : vector<32x1xf32>
    %cst_157 = arith.constant 1.000000e+00 : f32
    %327 = vector.broadcast %cst_157 : f32 to vector<32x1xf32>
    %328 = arith.addf %327, %326 : vector<32x1xf32>
    %329 = arith.divf %327, %328 : vector<32x1xf32>
    %330 = arith.addf %162, %284 : vector<32x1xf32>
    %331 = arith.negf %330 : vector<32x1xf32>
    %332 = math.exp %331 : vector<32x1xf32>
    %cst_158 = arith.constant 1.000000e+00 : f32
    %333 = vector.broadcast %cst_158 : f32 to vector<32x1xf32>
    %334 = arith.addf %333, %332 : vector<32x1xf32>
    %335 = arith.divf %333, %334 : vector<32x1xf32>
    %336 = arith.addf %169, %291 : vector<32x1xf32>
    %337 = arith.negf %336 : vector<32x1xf32>
    %338 = math.exp %337 : vector<32x1xf32>
    %cst_159 = arith.constant 1.000000e+00 : f32
    %339 = vector.broadcast %cst_159 : f32 to vector<32x1xf32>
    %340 = arith.addf %339, %338 : vector<32x1xf32>
    %341 = arith.divf %339, %340 : vector<32x1xf32>
    %342 = arith.addf %176, %298 : vector<32x1xf32>
    %343 = arith.negf %342 : vector<32x1xf32>
    %344 = math.exp %343 : vector<32x1xf32>
    %cst_160 = arith.constant 1.000000e+00 : f32
    %345 = vector.broadcast %cst_160 : f32 to vector<32x1xf32>
    %346 = arith.addf %345, %344 : vector<32x1xf32>
    %347 = arith.divf %345, %346 : vector<32x1xf32>
    %348 = arith.addf %183, %305 : vector<32x1xf32>
    %349 = arith.negf %348 : vector<32x1xf32>
    %350 = math.exp %349 : vector<32x1xf32>
    %cst_161 = arith.constant 1.000000e+00 : f32
    %351 = vector.broadcast %cst_161 : f32 to vector<32x1xf32>
    %352 = arith.addf %351, %350 : vector<32x1xf32>
    %353 = arith.divf %351, %352 : vector<32x1xf32>
    %cst_162 = arith.constant 0.000000e+00 : f32
    %354 = vector.broadcast %cst_162 : f32 to vector<32x32xf32>
    %355 = vector.extract_strided_slice %5 {offsets = [0, 0], sizes = [32, 32], strides = [1, 1]} : vector<32x256xf32> to vector<32x32xf32>
    %356 = vector.broadcast %311 : vector<32x1xf32> to vector<32x32xf32>
    %357 = arith.mulf %355, %356 : vector<32x32xf32>
    %358 = arith.addf %354, %357 : vector<32x32xf32>
    %cst_163 = arith.constant 3.000000e-01 : f32
    %359 = vector.broadcast %cst_163 : f32 to vector<32x32xf32>
    %360 = arith.cmpf ogt, %358, %359 : vector<32x32xf32>
    %361 = arith.extui %360 : vector<32x32xi1> to vector<32x32xi32>
    %362 = arith.sitofp %361 : vector<32x32xi32> to vector<32x32xf32>
    %363 = arith.truncf %362 : vector<32x32xf32> to vector<32x32xbf16>
    %c0_164 = arith.constant 0 : index
    %c0_165 = arith.constant 0 : index
    %364 = vector.load %arg6[%c0_164, %c0_165] : memref<32x256xbf16, #tpu.memory_space<vmem>>, vector<32x32xbf16>
    tpu.vector_store %arg6[%c0_164, %c0_165], %363 {strides = array<i32>} : memref<32x256xbf16, #tpu.memory_space<vmem>>, vector<32x32xbf16>,
    %cst_166 = arith.constant 3.000000e-01 : f32
    %365 = vector.broadcast %cst_166 : f32 to vector<32x32xf32>
    %366 = arith.mulf %365, %358 : vector<32x32xf32>
    %cst_167 = arith.constant 1.000000e+00 : f32
    %367 = vector.broadcast %cst_167 : f32 to vector<32x32xf32>
    %368 = arith.subf %367, %362 : vector<32x32xf32>
    %369 = arith.mulf %366, %368 : vector<32x32xf32>
    %cst_168 = arith.constant 0.000000e+00 : f32
    %370 = vector.broadcast %cst_168 : f32 to vector<32x32xf32>
    %371 = arith.mulf %370, %362 : vector<32x32xf32>
    %372 = arith.addf %369, %371 : vector<32x32xf32>
    %cst_169 = arith.constant 0.000000e+00 : f32
    %373 = vector.broadcast %cst_169 : f32 to vector<32x32xf32>
    %374 = arith.addf %372, %373 : vector<32x32xf32>
    %375 = vector.extract_strided_slice %5 {offsets = [0, 32], sizes = [32, 32], strides = [1, 1]} : vector<32x256xf32> to vector<32x32xf32>
    %376 = vector.broadcast %317 : vector<32x1xf32> to vector<32x32xf32>
    %377 = arith.mulf %375, %376 : vector<32x32xf32>
    %378 = arith.addf %374, %377 : vector<32x32xf32>
    %cst_170 = arith.constant 3.000000e-01 : f32
    %379 = vector.broadcast %cst_170 : f32 to vector<32x32xf32>
    %380 = arith.cmpf ogt, %378, %379 : vector<32x32xf32>
    %381 = arith.extui %380 : vector<32x32xi1> to vector<32x32xi32>
    %382 = arith.sitofp %381 : vector<32x32xi32> to vector<32x32xf32>
    %383 = arith.truncf %382 : vector<32x32xf32> to vector<32x32xbf16>
    %c0_171 = arith.constant 0 : index
    %c32 = arith.constant 32 : index
    %384 = vector.load %arg6[%c0_171, %c32] : memref<32x256xbf16, #tpu.memory_space<vmem>>, vector<32x32xbf16>
    tpu.vector_store %arg6[%c0_171, %c32], %383 {strides = array<i32>} : memref<32x256xbf16, #tpu.memory_space<vmem>>, vector<32x32xbf16>,
    %cst_172 = arith.constant 3.000000e-01 : f32
    %385 = vector.broadcast %cst_172 : f32 to vector<32x32xf32>
    %386 = arith.mulf %385, %378 : vector<32x32xf32>
    %cst_173 = arith.constant 1.000000e+00 : f32
    %387 = vector.broadcast %cst_173 : f32 to vector<32x32xf32>
    %388 = arith.subf %387, %382 : vector<32x32xf32>
    %389 = arith.mulf %386, %388 : vector<32x32xf32>
    %cst_174 = arith.constant 0.000000e+00 : f32
    %390 = vector.broadcast %cst_174 : f32 to vector<32x32xf32>
    %391 = arith.mulf %390, %382 : vector<32x32xf32>
    %392 = arith.addf %389, %391 : vector<32x32xf32>
    %cst_175 = arith.constant 0.000000e+00 : f32
    %393 = vector.broadcast %cst_175 : f32 to vector<32x32xf32>
    %394 = arith.addf %392, %393 : vector<32x32xf32>
    %395 = vector.extract_strided_slice %5 {offsets = [0, 64], sizes = [32, 32], strides = [1, 1]} : vector<32x256xf32> to vector<32x32xf32>
    %396 = vector.broadcast %323 : vector<32x1xf32> to vector<32x32xf32>
    %397 = arith.mulf %395, %396 : vector<32x32xf32>
    %398 = arith.addf %394, %397 : vector<32x32xf32>
    %cst_176 = arith.constant 3.000000e-01 : f32
    %399 = vector.broadcast %cst_176 : f32 to vector<32x32xf32>
    %400 = arith.cmpf ogt, %398, %399 : vector<32x32xf32>
    %401 = arith.extui %400 : vector<32x32xi1> to vector<32x32xi32>
    %402 = arith.sitofp %401 : vector<32x32xi32> to vector<32x32xf32>
    %403 = arith.truncf %402 : vector<32x32xf32> to vector<32x32xbf16>
    %c0_177 = arith.constant 0 : index
    %c64 = arith.constant 64 : index
    %404 = vector.load %arg6[%c0_177, %c64] : memref<32x256xbf16, #tpu.memory_space<vmem>>, vector<32x32xbf16>
    tpu.vector_store %arg6[%c0_177, %c64], %403 {strides = array<i32>} : memref<32x256xbf16, #tpu.memory_space<vmem>>, vector<32x32xbf16>,
    %cst_178 = arith.constant 3.000000e-01 : f32
    %405 = vector.broadcast %cst_178 : f32 to vector<32x32xf32>
    %406 = arith.mulf %405, %398 : vector<32x32xf32>
    %cst_179 = arith.constant 1.000000e+00 : f32
    %407 = vector.broadcast %cst_179 : f32 to vector<32x32xf32>
    %408 = arith.subf %407, %402 : vector<32x32xf32>
    %409 = arith.mulf %406, %408 : vector<32x32xf32>
    %cst_180 = arith.constant 0.000000e+00 : f32
    %410 = vector.broadcast %cst_180 : f32 to vector<32x32xf32>
    %411 = arith.mulf %410, %402 : vector<32x32xf32>
    %412 = arith.addf %409, %411 : vector<32x32xf32>
    %cst_181 = arith.constant 0.000000e+00 : f32
    %413 = vector.broadcast %cst_181 : f32 to vector<32x32xf32>
    %414 = arith.addf %412, %413 : vector<32x32xf32>
    %415 = vector.extract_strided_slice %5 {offsets = [0, 96], sizes = [32, 32], strides = [1, 1]} : vector<32x256xf32> to vector<32x32xf32>
    %416 = vector.broadcast %329 : vector<32x1xf32> to vector<32x32xf32>
    %417 = arith.mulf %415, %416 : vector<32x32xf32>
    %418 = arith.addf %414, %417 : vector<32x32xf32>
    %cst_182 = arith.constant 3.000000e-01 : f32
    %419 = vector.broadcast %cst_182 : f32 to vector<32x32xf32>
    %420 = arith.cmpf ogt, %418, %419 : vector<32x32xf32>
    %421 = arith.extui %420 : vector<32x32xi1> to vector<32x32xi32>
    %422 = arith.sitofp %421 : vector<32x32xi32> to vector<32x32xf32>
    %423 = arith.truncf %422 : vector<32x32xf32> to vector<32x32xbf16>
    %c0_183 = arith.constant 0 : index
    %c96 = arith.constant 96 : index
    %424 = vector.load %arg6[%c0_183, %c96] : memref<32x256xbf16, #tpu.memory_space<vmem>>, vector<32x32xbf16>
    tpu.vector_store %arg6[%c0_183, %c96], %423 {strides = array<i32>} : memref<32x256xbf16, #tpu.memory_space<vmem>>, vector<32x32xbf16>,
    %cst_184 = arith.constant 3.000000e-01 : f32
    %425 = vector.broadcast %cst_184 : f32 to vector<32x32xf32>
    %426 = arith.mulf %425, %418 : vector<32x32xf32>
    %cst_185 = arith.constant 1.000000e+00 : f32
    %427 = vector.broadcast %cst_185 : f32 to vector<32x32xf32>
    %428 = arith.subf %427, %422 : vector<32x32xf32>
    %429 = arith.mulf %426, %428 : vector<32x32xf32>
    %cst_186 = arith.constant 0.000000e+00 : f32
    %430 = vector.broadcast %cst_186 : f32 to vector<32x32xf32>
    %431 = arith.mulf %430, %422 : vector<32x32xf32>
    %432 = arith.addf %429, %431 : vector<32x32xf32>
    %cst_187 = arith.constant 0.000000e+00 : f32
    %433 = vector.broadcast %cst_187 : f32 to vector<32x32xf32>
    %434 = arith.addf %432, %433 : vector<32x32xf32>
    %435 = vector.extract_strided_slice %5 {offsets = [0, 128], sizes = [32, 32], strides = [1, 1]} : vector<32x256xf32> to vector<32x32xf32>
    %436 = vector.broadcast %335 : vector<32x1xf32> to vector<32x32xf32>
    %437 = arith.mulf %435, %436 : vector<32x32xf32>
    %438 = arith.addf %434, %437 : vector<32x32xf32>
    %cst_188 = arith.constant 3.000000e-01 : f32
    %439 = vector.broadcast %cst_188 : f32 to vector<32x32xf32>
    %440 = arith.cmpf ogt, %438, %439 : vector<32x32xf32>
    %441 = arith.extui %440 : vector<32x32xi1> to vector<32x32xi32>
    %442 = arith.sitofp %441 : vector<32x32xi32> to vector<32x32xf32>
    %443 = arith.truncf %442 : vector<32x32xf32> to vector<32x32xbf16>
    %c0_189 = arith.constant 0 : index
    %c128 = arith.constant 128 : index
    %444 = vector.load %arg6[%c0_189, %c128] : memref<32x256xbf16, #tpu.memory_space<vmem>>, vector<32x32xbf16>
    tpu.vector_store %arg6[%c0_189, %c128], %443 {strides = array<i32>} : memref<32x256xbf16, #tpu.memory_space<vmem>>, vector<32x32xbf16>,
    %cst_190 = arith.constant 3.000000e-01 : f32
    %445 = vector.broadcast %cst_190 : f32 to vector<32x32xf32>
    %446 = arith.mulf %445, %438 : vector<32x32xf32>
    %cst_191 = arith.constant 1.000000e+00 : f32
    %447 = vector.broadcast %cst_191 : f32 to vector<32x32xf32>
    %448 = arith.subf %447, %442 : vector<32x32xf32>
    %449 = arith.mulf %446, %448 : vector<32x32xf32>
    %cst_192 = arith.constant 0.000000e+00 : f32
    %450 = vector.broadcast %cst_192 : f32 to vector<32x32xf32>
    %451 = arith.mulf %450, %442 : vector<32x32xf32>
    %452 = arith.addf %449, %451 : vector<32x32xf32>
    %cst_193 = arith.constant 0.000000e+00 : f32
    %453 = vector.broadcast %cst_193 : f32 to vector<32x32xf32>
    %454 = arith.addf %452, %453 : vector<32x32xf32>
    %455 = vector.extract_strided_slice %5 {offsets = [0, 160], sizes = [32, 32], strides = [1, 1]} : vector<32x256xf32> to vector<32x32xf32>
    %456 = vector.broadcast %341 : vector<32x1xf32> to vector<32x32xf32>
    %457 = arith.mulf %455, %456 : vector<32x32xf32>
    %458 = arith.addf %454, %457 : vector<32x32xf32>
    %cst_194 = arith.constant 3.000000e-01 : f32
    %459 = vector.broadcast %cst_194 : f32 to vector<32x32xf32>
    %460 = arith.cmpf ogt, %458, %459 : vector<32x32xf32>
    %461 = arith.extui %460 : vector<32x32xi1> to vector<32x32xi32>
    %462 = arith.sitofp %461 : vector<32x32xi32> to vector<32x32xf32>
    %463 = arith.truncf %462 : vector<32x32xf32> to vector<32x32xbf16>
    %c0_195 = arith.constant 0 : index
    %c160 = arith.constant 160 : index
    %464 = vector.load %arg6[%c0_195, %c160] : memref<32x256xbf16, #tpu.memory_space<vmem>>, vector<32x32xbf16>
    tpu.vector_store %arg6[%c0_195, %c160], %463 {strides = array<i32>} : memref<32x256xbf16, #tpu.memory_space<vmem>>, vector<32x32xbf16>,
    %cst_196 = arith.constant 3.000000e-01 : f32
    %465 = vector.broadcast %cst_196 : f32 to vector<32x32xf32>
    %466 = arith.mulf %465, %458 : vector<32x32xf32>
    %cst_197 = arith.constant 1.000000e+00 : f32
    %467 = vector.broadcast %cst_197 : f32 to vector<32x32xf32>
    %468 = arith.subf %467, %462 : vector<32x32xf32>
    %469 = arith.mulf %466, %468 : vector<32x32xf32>
    %cst_198 = arith.constant 0.000000e+00 : f32
    %470 = vector.broadcast %cst_198 : f32 to vector<32x32xf32>
    %471 = arith.mulf %470, %462 : vector<32x32xf32>
    %472 = arith.addf %469, %471 : vector<32x32xf32>
    %cst_199 = arith.constant 0.000000e+00 : f32
    %473 = vector.broadcast %cst_199 : f32 to vector<32x32xf32>
    %474 = arith.addf %472, %473 : vector<32x32xf32>
    %475 = vector.extract_strided_slice %5 {offsets = [0, 192], sizes = [32, 32], strides = [1, 1]} : vector<32x256xf32> to vector<32x32xf32>
    %476 = vector.broadcast %347 : vector<32x1xf32> to vector<32x32xf32>
    %477 = arith.mulf %475, %476 : vector<32x32xf32>
    %478 = arith.addf %474, %477 : vector<32x32xf32>
    %cst_200 = arith.constant 3.000000e-01 : f32
    %479 = vector.broadcast %cst_200 : f32 to vector<32x32xf32>
    %480 = arith.cmpf ogt, %478, %479 : vector<32x32xf32>
    %481 = arith.extui %480 : vector<32x32xi1> to vector<32x32xi32>
    %482 = arith.sitofp %481 : vector<32x32xi32> to vector<32x32xf32>
    %483 = arith.truncf %482 : vector<32x32xf32> to vector<32x32xbf16>
    %c0_201 = arith.constant 0 : index
    %c192 = arith.constant 192 : index
    %484 = vector.load %arg6[%c0_201, %c192] : memref<32x256xbf16, #tpu.memory_space<vmem>>, vector<32x32xbf16>
    tpu.vector_store %arg6[%c0_201, %c192], %483 {strides = array<i32>} : memref<32x256xbf16, #tpu.memory_space<vmem>>, vector<32x32xbf16>,
    %cst_202 = arith.constant 3.000000e-01 : f32
    %485 = vector.broadcast %cst_202 : f32 to vector<32x32xf32>
    %486 = arith.mulf %485, %478 : vector<32x32xf32>
    %cst_203 = arith.constant 1.000000e+00 : f32
    %487 = vector.broadcast %cst_203 : f32 to vector<32x32xf32>
    %488 = arith.subf %487, %482 : vector<32x32xf32>
    %489 = arith.mulf %486, %488 : vector<32x32xf32>
    %cst_204 = arith.constant 0.000000e+00 : f32
    %490 = vector.broadcast %cst_204 : f32 to vector<32x32xf32>
    %491 = arith.mulf %490, %482 : vector<32x32xf32>
    %492 = arith.addf %489, %491 : vector<32x32xf32>
    %cst_205 = arith.constant 0.000000e+00 : f32
    %493 = vector.broadcast %cst_205 : f32 to vector<32x32xf32>
    %494 = arith.addf %492, %493 : vector<32x32xf32>
    %495 = vector.extract_strided_slice %5 {offsets = [0, 224], sizes = [32, 32], strides = [1, 1]} : vector<32x256xf32> to vector<32x32xf32>
    %496 = vector.broadcast %353 : vector<32x1xf32> to vector<32x32xf32>
    %497 = arith.mulf %495, %496 : vector<32x32xf32>
    %498 = arith.addf %494, %497 : vector<32x32xf32>
    %cst_206 = arith.constant 3.000000e-01 : f32
    %499 = vector.broadcast %cst_206 : f32 to vector<32x32xf32>
    %500 = arith.cmpf ogt, %498, %499 : vector<32x32xf32>
    %501 = arith.extui %500 : vector<32x32xi1> to vector<32x32xi32>
    %502 = arith.sitofp %501 : vector<32x32xi32> to vector<32x32xf32>
    %503 = arith.truncf %502 : vector<32x32xf32> to vector<32x32xbf16>
    %c0_207 = arith.constant 0 : index
    %c224 = arith.constant 224 : index
    %504 = vector.load %arg6[%c0_207, %c224] : memref<32x256xbf16, #tpu.memory_space<vmem>>, vector<32x32xbf16>
    tpu.vector_store %arg6[%c0_207, %c224], %503 {strides = array<i32>} : memref<32x256xbf16, #tpu.memory_space<vmem>>, vector<32x32xbf16>,
    return
  }
  func.func @transform_0(%arg0: i32) -> (i32, i32) {
    %c0_i32 = arith.constant 0 : i32
    %c0_i32_0 = arith.constant 0 : i32
    return %arg0, %c0_i32 : i32, i32
  }
  func.func @transform_1(%arg0: i32) -> (i32, i32) {
    %c0_i32 = arith.constant 0 : i32
    %c0_i32_0 = arith.constant 0 : i32
    %c0_i32_1 = arith.constant 0 : i32
    return %c0_i32, %c0_i32_0 : i32, i32
  }
  func.func @transform_2(%arg0: i32) -> (i32, i32) {
    %c0_i32 = arith.constant 0 : i32
    %c0_i32_0 = arith.constant 0 : i32
    %c0_i32_1 = arith.constant 0 : i32
    return %c0_i32, %c0_i32_0 : i32, i32
  }
  func.func @transform_3(%arg0: i32) -> (i32, i32) {
    %c0_i32 = arith.constant 0 : i32
    %c0_i32_0 = arith.constant 0 : i32
    %c0_i32_1 = arith.constant 0 : i32
    return %c0_i32, %c0_i32_0 : i32, i32
  }
  func.func @transform_4(%arg0: i32) -> (i32, i32) {
    %c0_i32 = arith.constant 0 : i32
    %c0_i32_0 = arith.constant 0 : i32
    %c0_i32_1 = arith.constant 0 : i32
    return %c0_i32, %c0_i32_0 : i32, i32
  }
  func.func @transform_5(%arg0: i32) -> (i32, i32) {
    %c0_i32 = arith.constant 0 : i32
    %c0_i32_0 = arith.constant 0 : i32
    return %arg0, %c0_i32 : i32, i32
  }
}

</mosaic_0001>

<bundles_post_ra>
// kernel: tpu_custom_call.1
= control target key start
LH: loop header
LB: loop body
LE: loop exit
PB: predicated region body
PF: predicated region fallthrough
CT: control target
= control target key end

     0   :  { %10 = vsyncpa [#allocation3], 0  ;;  %s3690_s0 = inlined_call_operand.hbm [shape: f32[32,256], index: 0, kind: input, shape index: {}]   ;;  %s3691_s1 = inlined_call_operand.hbm [shape: f32[256,256], index: 1, kind: input, shape index: {}]   ;;  %s3692_s2 = inlined_call_operand.vmem [shape: f32[1,256], index: 2, kind: input, shape index: {}]   ;;  %s3693_s3 = inlined_call_operand.vmem [shape: f32[2,8], index: 3, kind: input, shape index: {}]   ;;  %s3694_s4 = inlined_call_operand.vmem [shape: f32[8,2], index: 4, kind: input, shape index: {}]   ;;  %s3695_s5 = inlined_call_operand.hbm [shape: bf16[32,256], index: 5, kind: output, shape index: {}]  }
   0x1   :  { %11 = vsyncpa [#allocation7], 0 }
   0x2   :  { %12 = vsyncpa [#allocation5], 0 }
   0x3   :  { %13 = vsyncpa [#allocation10], 0 }
   0x4   :  { %14 = vsyncpa [#allocation4], 0  ;;  %s2405_s18 = smov [#allocation2]  }
   0x5   :  { %s20_s19 = sshll.u32 %s2405_s18, 4  ;;  %s21_s19 = int_to_ptr.vmem [resolvable:$true] %s20_s19 }
   0x6   :  { %s2319_s20 = scalar_lea.vmem %s21_s19, 1024  ;;  %p2324_p1 = scmp.lt.s32.totalorder %s21_s19, %s21_s19 }
   0x7   :  { %p2320_p0 = scmp.ne.s32.totalorder %s21_s19, %s2319_s20  ;;  %p2325_p2 = scmp.lt.s32.totalorder %s2319_s20, %s2319_s20 }
   0x9   :  { %p2326_p3 = por %p2325_p2, %p2324_p1 }
   0xb   :  { %p2327_p4 = pnand %p2326_p3, %p2320_p0 }
   0xd   :  { %2330 = shalt.err (!%p2327_p4)
}
   0xe   :  { %s2406_s21 = smov 256   ;;  %s2407_s22 = smov 16  }
   0xf   :  { %26 = dma.hbm_to_vmem [thread:$0]  %s3690_s0, 1024, %s21_s19, [#allocation3], %s2406_s21, %s2406_s21, %s2407_s22  }
  0x10   :  { %s2408_s25 = smov [#allocation6]   ;;  %s47_s29 = sshll.u32 %s3693_s3, 4  ;;  %s48_s29 = int_to_ptr.vmem [resolvable:$true] %s47_s29 }
  0x11   :  { %s32_s26 = sshll.u32 %s2408_s25, 4  ;;  %s33_s26 = int_to_ptr.vmem [resolvable:$true] %s32_s26 }
  0x12   :  { %s2339_s30 = scalar_lea.vmem %s33_s26, 8192  ;;  %p2344_p6 = scmp.lt.s32.totalorder %s33_s26, %s33_s26 }
  0x13   :  { %p2340_p5 = scmp.ne.s32.totalorder %s33_s26, %s2339_s30  ;;  %p2345_p7 = scmp.lt.s32.totalorder %s2339_s30, %s2339_s30 }
  0x15   :  { %p2346_p8 = por %p2345_p7, %p2344_p6 }
  0x17   :  { %p2347_p9 = pnand %p2346_p8, %p2340_p5 }
  0x19   :  { %2350 = shalt.err (!%p2347_p9)
}
  0x1a   :  { %38 = dma.hbm_to_vmem [thread:$0]  %s3691_s1, 8192, %s33_s26, [#allocation7], %s2406_s21, %s2406_s21, %s2407_s22  }
  0x1b   :  { %s57_s9 = sshll.u32 %s3694_s4, 4  ;;  %s2351_s10 = scalar_lea.vmem %s48_s29, 32  ;;  %s58_s9 = int_to_ptr.vmem [resolvable:$true] %s57_s9 }
  0x1c   :  { %p2352_p10 = scmp.ne.s32.totalorder %s48_s29, %s2351_s10  ;;  %p2356_p11 = scmp.lt.s32.totalorder %s48_s29, %s48_s29 }
  0x1d   :  { %p2357_p12 = scmp.lt.s32.totalorder %s2351_s10, %s2351_s10 }
  0x1f   :  { %p2358_p13 = por %p2357_p12, %p2356_p11 }
  0x21   :  { %p2359_p0 = pnand %p2358_p13, %p2352_p10 }
  0x23   :  { %2362 = shalt.err (!%p2359_p0)
}
  0x24   :  { %s2409_s3 = smov [#allocation8]   ;;  %s2363_s11 = scalar_lea.vmem %s58_s9, 128 }
  0x25   :  { %50 = dma.vmem_to_smem %s48_s29, 32, %s2409_s3, [#allocation5]  }
  0x26   :  { %p2364_p1 = scmp.ne.s32.totalorder %s58_s9, %s2363_s11  ;;  %p2368_p2 = scmp.lt.s32.totalorder %s58_s9, %s58_s9 }
  0x27   :  { %p2369_p3 = scmp.lt.s32.totalorder %s2363_s11, %s2363_s11 }
  0x29   :  { %p2370_p4 = por %p2369_p3, %p2368_p2 }
  0x2b   :  { %p2371_p5 = pnand %p2370_p4, %p2364_p1 }
  0x2d   :  { %2374 = shalt.err (!%p2371_p5)
}
  0x2e   :  { %s2410_s1 = smov [#allocation9]  }
  0x2f   :  { %60 = dma.vmem_to_smem %s58_s9, 128, %s2410_s1, [#allocation10]  }
  0x30   :  { %2395 = dma.done.wait [#allocation3], 1024  }
  0x31   :  { %2396 = vsyncadd [#allocation3], 4294966272 }
  0x32   :  { %2397 = dma.done.wait [#allocation7], 8192  }
  0x33   :  { %2398 = vsyncadd [#allocation7], 4294959104 }
  0x34   :  { %2399 = dma.done.wait [#allocation5], 32  }
  0x35   :  { %2400 = vsyncadd [#allocation5], 4294967264 }
  0x36   :  { %2401 = dma.done.wait [#allocation10], 128  }
  0x37   :  { %2402 = vsyncadd [#allocation10], 4294967168 }
  0x38   :  { %73 = sfence }
  0x39   :  { %v113_v0 = vld [vmem:[#allocation6 + $0xf8] sm:$0xff]  ;;  %v112_v1 = vld [vmem:[#allocation6 + $0xf0] sm:$0xff]  ;;  %v111_v2 = vld [vmem:[#allocation6 + $0xe8] sm:$0xff]  ;;  %s2411_s13 = smov 96   ;;  %s2412_s14 = smov 64   ;;  %vm247_vm0 = vcmask 261120  }
  0x3a   :  { %158 = vmatprep.subr.mxu0 %v113_v0  ;;  %2106 = vmatprep.subr.mxu1 %v113_v0  ;;  %v110_v3 = vld [vmem:[#allocation6 + $0xe0] sm:$0xff]  ;;  %v109_v4 = vld [vmem:[#allocation6 + $0xd8] sm:$0xff]  ;;  %v108_v5 = vld [vmem:[#allocation6 + $0xd0] sm:$0xff]  ;;  %vm309_vm1 = vcmask 523520   ;;  %vm350_vm2 = vcmask 785920   ;;  %vm391_vm3 = vcmask 1048320  }
  0x3b   :  { %159 = vmatpush1.msra.mxu0 %v112_v1  ;;  %2138 = vmatpush1.msra.mxu1 %v112_v1  ;;  %v107_v6 = vld [vmem:[#allocation6 + $0xc8] sm:$0xff]  ;;  %v106_v7 = vld [vmem:[#allocation6 + $0xc0] sm:$0xff]  ;;  %v105_v8 = vld [vmem:[#allocation6 + $0xb8] sm:$0xff]  ;;  %s2625_s15 = sld [smem:[#allocation8]]  ;;  %vm1328_vm5 = vcmask 257024  }
  0x3c   :  { %160 = vmatprep.subr.mxu0 %v111_v2  ;;  %2107 = vmatprep.subr.mxu1 %v111_v2  ;;  %v104_v9 = vld [vmem:[#allocation6 + $0xb0] sm:$0xff]  ;;  %v103_v10 = vld [vmem:[#allocation6 + $0xa8] sm:$0xff]  ;;  %v102_v11 = vld [vmem:[#allocation6 + $0xa0] sm:$0xff]  ;;  %s2629_s16 = sld [smem:[#allocation8 + $0x80]] }
  0x3d   :  { %161 = vmatpush1.msra.mxu0 %v110_v3  ;;  %2139 = vmatpush1.msra.mxu1 %v110_v3  ;;  %v101_v12 = vld [vmem:[#allocation6 + $0x98] sm:$0xff]  ;;  %v100_v13 = vld [vmem:[#allocation6 + $0x90] sm:$0xff]  ;;  %v99_v14 = vld [vmem:[#allocation6 + $0x88] sm:$0xff]  ;;  %s1948_s17 = sld [smem:[#allocation8 + $0x1]] }
  0x3e   :  { %162 = vmatprep.subr.mxu0 %v109_v4  ;;  %2108 = vmatprep.subr.mxu1 %v109_v4  ;;  %v98_v15 = vld [vmem:[#allocation6 + $0x80] sm:$0xff]  ;;  %v97_v16 = vld [vmem:[#allocation6 + $0x78] sm:$0xff]  ;;  %v96_v17 = vld [vmem:[#allocation6 + $0x70] sm:$0xff]  ;;  %s1956_s18 = sld [smem:[#allocation8 + $0x81]] }
  0x3f   :  { %163 = vmatpush1.msra.mxu0 %v108_v5  ;;  %2140 = vmatpush1.msra.mxu1 %v108_v5  ;;  %v95_v18 = vld [vmem:[#allocation6 + $0x68] sm:$0xff]  ;;  %v94_v19 = vld [vmem:[#allocation6 + $0x60] sm:$0xff]  ;;  %v93_v20 = vld [vmem:[#allocation6 + $0x58] sm:$0xff]  ;;  %s1949_s19 = sld [smem:[#allocation8 + $0x2]] }
  0x40   :  { %164 = vmatprep.subr.mxu0 %v107_v6  ;;  %2109 = vmatprep.subr.mxu1 %v107_v6  ;;  %v92_v21 = vld [vmem:[#allocation6 + $0x50] sm:$0xff]  ;;  %v91_v22 = vld [vmem:[#allocation6 + $0x48] sm:$0xff]  ;;  %v90_v23 = vld [vmem:[#allocation6 + $0x40] sm:$0xff]  ;;  %s1957_s20 = sld [smem:[#allocation8 + $0x82]] }
  0x41   :  { %165 = vmatpush1.msra.mxu0 %v106_v7  ;;  %2141 = vmatpush1.msra.mxu1 %v106_v7  ;;  %v89_v24 = vld [vmem:[#allocation6 + $0x38] sm:$0xff]  ;;  %v88_v25 = vld [vmem:[#allocation6 + $0x30] sm:$0xff]  ;;  %v87_v26 = vld [vmem:[#allocation6 + $0x28] sm:$0xff]  ;;  %s1950_s21 = sld [smem:[#allocation8 + $0x3]] }
  0x42   :  { %166 = vmatprep.subr.mxu0 %v105_v8  ;;  %2110 = vmatprep.subr.mxu1 %v105_v8  ;;  %v86_v27 = vld [vmem:[#allocation6 + $0x20] sm:$0xff]  ;;  %v85_v28 = vld [vmem:[#allocation6 + $0x18] sm:$0xff]  ;;  %v84_v29 = vld [vmem:[#allocation6 + $0x10] sm:$0xff]  ;;  %v148_v8 = vlaneseq  ;;  %s1958_s22 = sld [smem:[#allocation8 + $0x83]] }
  0x43   :  { %167 = vmatpush1.msra.mxu0 %v104_v9  ;;  %2142 = vmatpush1.msra.mxu1 %v104_v9  ;;  %v83_v30 = vld [vmem:[#allocation6 + $0x8] sm:$0xff]  ;;  %v82_v31 = vld [vmem:[#allocation6] sm:$0xff]  ;;  %v145_v32 = vld [vmem:[#allocation6 + $0x1f8] sm:$0xff]  ;;  %s2640_s23 = sld [smem:[#allocation8 + $0x4]] }
  0x44   :  { %168 = vmatprep.subr.mxu0 %v103_v10  ;;  %2111 = vmatprep.subr.mxu1 %v103_v10  ;;  %v144_v33 = vld [vmem:[#allocation6 + $0x1f0] sm:$0xff]  ;;  %v143_v34 = vld [vmem:[#allocation6 + $0x1e8] sm:$0xff]  ;;  %v142_v35 = vld [vmem:[#allocation6 + $0x1e0] sm:$0xff]  ;;  %v149_v9 = vshrl.u32 %v148_v8, 7  ;;  %s2646_s24 = sld [smem:[#allocation8 + $0x84]] }
  0x45   :  { %169 = vmatpush1.msra.mxu0 %v102_v11  ;;  %2143 = vmatpush1.msra.mxu1 %v102_v11  ;;  %v141_v36 = vld [vmem:[#allocation6 + $0x1d8] sm:$0xff]  ;;  %v140_v37 = vld [vmem:[#allocation6 + $0x1d0] sm:$0xff]  ;;  %v139_v38 = vld [vmem:[#allocation6 + $0x1c8] sm:$0xff]  ;;  %s2666_s25 = sld [smem:[#allocation8 + $0x5]] }
  0x46   :  { %170 = vmatprep.subr.mxu0 %v101_v12  ;;  %2112 = vmatprep.subr.mxu1 %v101_v12  ;;  %v138_v39 = vld [vmem:[#allocation6 + $0x1c0] sm:$0xff]  ;;  %v137_v40 = vld [vmem:[#allocation6 + $0x1b8] sm:$0xff]  ;;  %v136_v41 = vld [vmem:[#allocation6 + $0x1b0] sm:$0xff]  ;;  %v150_v10 = vsub.s32 0, %v149_v9  ;;  %s2676_s26 = sld [smem:[#allocation8 + $0x85]] }
  0x47   :  { %171 = vmatpush1.msra.mxu0 %v100_v13  ;;  %2144 = vmatpush1.msra.mxu1 %v100_v13  ;;  %v135_v42 = vld [vmem:[#allocation6 + $0x1a8] sm:$0xff]  ;;  %v134_v43 = vld [vmem:[#allocation6 + $0x1a0] sm:$0xff]  ;;  %v133_v44 = vld [vmem:[#allocation6 + $0x198] sm:$0xff]  ;;  %s2725_s27 = sld [smem:[#allocation8 + $0x6]] }
  0x48   :  { %172 = vmatprep.subr.mxu0 %v99_v14  ;;  %2113 = vmatprep.subr.mxu1 %v99_v14  ;;  %v132_v45 = vld [vmem:[#allocation6 + $0x190] sm:$0xff]  ;;  %v131_v46 = vld [vmem:[#allocation6 + $0x188] sm:$0xff]  ;;  %v130_v47 = vld [vmem:[#allocation6 + $0x180] sm:$0xff]  ;;  %s1961_s28 = sld [smem:[#allocation8 + $0x86]] }
  0x49   :  { %173 = vmatpush1.msra.mxu0 %v98_v15  ;;  %2145 = vmatpush1.msra.mxu1 %v98_v15  ;;  %v129_v48 = vld [vmem:[#allocation6 + $0x178] sm:$0xff]  ;;  %v128_v49 = vld [vmem:[#allocation6 + $0x170] sm:$0xff]  ;;  %v127_v50 = vld [vmem:[#allocation6 + $0x168] sm:$0xff]  ;;  %s1954_s29 = sld [smem:[#allocation8 + $0x7]] }
  0x4a   :  { %174 = vmatprep.subr.mxu0 %v97_v16  ;;  %2114 = vmatprep.subr.mxu1 %v97_v16  ;;  %v126_v51 = vld [vmem:[#allocation6 + $0x160] sm:$0xff]  ;;  %v125_v52 = vld [vmem:[#allocation6 + $0x158] sm:$0xff]  ;;  %v124_v53 = vld [vmem:[#allocation6 + $0x150] sm:$0xff]  ;;  %s1962_s30 = sld [smem:[#allocation8 + $0x87]] }
  0x4b   :  { %175 = vmatpush1.msra.mxu0 %v96_v17  ;;  %2146 = vmatpush1.msra.mxu1 %v96_v17  ;;  %v123_v54 = vld [vmem:[#allocation6 + $0x148] sm:$0xff]  ;;  %v122_v55 = vld [vmem:[#allocation6 + $0x140] sm:$0xff]  ;;  %v121_v56 = vld [vmem:[#allocation6 + $0x138] sm:$0xff]  ;;  %s2796_s6 = sld [smem:[#allocation9 + $0x80]] }
  0x4c   :  { %176 = vmatprep.subr.mxu0 %v95_v18  ;;  %2115 = vmatprep.subr.mxu1 %v95_v18  ;;  %v120_v57 = vld [vmem:[#allocation6 + $0x130] sm:$0xff]  ;;  %v119_v58 = vld [vmem:[#allocation6 + $0x128] sm:$0xff]  ;;  %v118_v59 = vld [vmem:[#allocation6 + $0x120] sm:$0xff]  ;;  %s2819_s7 = sld [smem:[#allocation9 + $0x81]] }
  0x4d   :  { %177 = vmatpush1.msra.mxu0 %v94_v19  ;;  %2147 = vmatpush1.msra.mxu1 %v94_v19  ;;  %v117_v60 = vld [vmem:[#allocation6 + $0x118] sm:$0xff]  ;;  %v116_v61 = vld [vmem:[#allocation6 + $0x110] sm:$0xff]  ;;  %v115_v62 = vld [vmem:[#allocation6 + $0x108] sm:$0xff]  ;;  %s2835_s0 = sld [smem:[#allocation9 + $0x100]] }
  0x4e   :  { %178 = vmatprep.subr.mxu0 %v93_v20  ;;  %2116 = vmatprep.subr.mxu1 %v93_v20  ;;  %v114_v63 = vld [vmem:[#allocation6 + $0x100] sm:$0xff]  ;;  %v75_v0 = vld [vmem:[#allocation2 + $0x8] sm:$0xff]  ;;  %v77_v4 = vld [vmem:[#allocation2 + $0x18] sm:$0xff]  ;;  %s2850_s8 = sld [smem:[#allocation9 + $0x101]] }
  0x4f   :  { %179 = vmatpush1.msra.mxu0 %v92_v21  ;;  %2148 = vmatpush1.msra.mxu1 %v92_v21  ;;  %v79_v1 = vld [vmem:[#allocation2 + $0x28] sm:$0xff]  ;;  %v74_v2 = vld [vmem:[#allocation2] sm:$0xff]  ;;  %v81_v5 = vld [vmem:[#allocation2 + $0x38] sm:$0xff]  ;;  %s2856_s9 = sld [smem:[#allocation9 + $0x180]] }
  0x50   :  { %180 = vmatprep.subr.mxu0 %v91_v22  ;;  %2117 = vmatprep.subr.mxu1 %v91_v22  ;;  %v78_v3 = vld [vmem:[#allocation2 + $0x20] sm:$0xff]  ;;  %v76_v6 = vld [vmem:[#allocation2 + $0x10] sm:$0xff]  ;;  %s2862_s10 = sld [smem:[#allocation9 + $0x181]] }
  0x51   :  { %181 = vmatpush1.msra.mxu0 %v90_v23  ;;  %2149 = vmatpush1.msra.mxu1 %v90_v23  ;;  %v80_v7 = vld [vmem:[#allocation2 + $0x30] sm:$0xff]  ;;  %v146_v11 = vld [vmem:[%s3692_s2] sm:$0x3]  ;;  %s2413_s2 = smov 32   ;;  %s2866_s3 = sld [smem:[#allocation9 + $0x280]] }
  0x52   :  { %182 = vmatprep.subr.mxu0 %v89_v24  ;;  %2118 = vmatprep.subr.mxu1 %v89_v24  ;;  %v151_v12 = vrot.slane %v146_v11, %v150_v10  ;;  %s2879_s11 = sld [smem:[#allocation9 + $0x281]] }
  0x53   :  { %183 = vmatpush1.msra.mxu0 %v88_v25  ;;  %2150 = vmatpush1.msra.mxu1 %v88_v25  ;;  %s2889_s1 = sld [smem:[#allocation9 + $0x300]] }
  0x54   :  { %184 = vmatprep.subr.mxu0 %v87_v26  ;;  %2119 = vmatprep.subr.mxu1 %v87_v26  ;;  %v154_v26 = vsub.s32 1, %v149_v9  ;;  %s2894_s4 = sld [smem:[#allocation9 + $0x301]] }
  0x55   :  { %185 = vmatpush1.msra.mxu0 %v86_v27  ;;  %2151 = vmatpush1.msra.mxu1 %v86_v27  ;;  %s2898_s12 = sld [smem:[#allocation9 + $0x380]] }
  0x56   :  { %186 = vmatprep.subr.mxu0 %v85_v28  ;;  %2120 = vmatprep.subr.mxu1 %v85_v28 }
  0x57   :  { %187 = vmatpush1.msra.mxu0 %v84_v29  ;;  %2152 = vmatpush1.msra.mxu1 %v84_v29  ;;  %v155_v29 = vrot.slane %v146_v11, %v154_v26 }
  0x58   :  { %188 = vmatprep.subr.mxu0 %v83_v30  ;;  %2121 = vmatprep.subr.mxu1 %v83_v30 }
  0x59   :  { %189 = vmatpush1.msra.mxu0 %v82_v31  ;;  %2153 = vmatpush1.msra.mxu1 %v82_v31 }
  0x5a   :  { %190 = vmatprep.subr.mxu0 %v145_v32  ;;  %2122 = vmatprep.subr.mxu1 %v145_v32 }
  0x5b   :  { %191 = vmatpush2.msra.mxu0 %v144_v33  ;;  %2154 = vmatpush2.msra.mxu1 %v144_v33 }
  0x5c   :  { %192 = vmatprep.subr.mxu0 %v143_v34  ;;  %2123 = vmatprep.subr.mxu1 %v143_v34 }
  0x5d   :  { %193 = vmatpush2.msra.mxu0 %v142_v35  ;;  %2155 = vmatpush2.msra.mxu1 %v142_v35 }
  0x5e   :  { %194 = vmatprep.subr.mxu0 %v141_v36  ;;  %2124 = vmatprep.subr.mxu1 %v141_v36 }
  0x5f   :  { %195 = vmatpush2.msra.mxu0 %v140_v37  ;;  %2156 = vmatpush2.msra.mxu1 %v140_v37 }
  0x60   :  { %196 = vmatprep.subr.mxu0 %v139_v38  ;;  %2125 = vmatprep.subr.mxu1 %v139_v38 }
  0x61   :  { %197 = vmatpush2.msra.mxu0 %v138_v39  ;;  %2157 = vmatpush2.msra.mxu1 %v138_v39 }
  0x62   :  { %198 = vmatprep.subr.mxu0 %v137_v40  ;;  %2126 = vmatprep.subr.mxu1 %v137_v40 }
  0x63   :  { %199 = vmatpush2.msra.mxu0 %v136_v41  ;;  %2158 = vmatpush2.msra.mxu1 %v136_v41 }
  0x64   :  { %200 = vmatprep.subr.mxu0 %v135_v42  ;;  %2127 = vmatprep.subr.mxu1 %v135_v42 }
  0x65   :  { %201 = vmatpush2.msra.mxu0 %v134_v43  ;;  %2159 = vmatpush2.msra.mxu1 %v134_v43 }
  0x66   :  { %202 = vmatprep.subr.mxu0 %v133_v44  ;;  %2128 = vmatprep.subr.mxu1 %v133_v44 }
  0x67   :  { %203 = vmatpush2.msra.mxu0 %v132_v45  ;;  %2160 = vmatpush2.msra.mxu1 %v132_v45 }
  0x68   :  { %204 = vmatprep.subr.mxu0 %v131_v46  ;;  %2129 = vmatprep.subr.mxu1 %v131_v46 }
  0x69   :  { %205 = vmatpush2.msra.mxu0 %v130_v47  ;;  %2161 = vmatpush2.msra.mxu1 %v130_v47 }
  0x6a   :  { %206 = vmatprep.subr.mxu0 %v129_v48  ;;  %2130 = vmatprep.subr.mxu1 %v129_v48 }
  0x6b   :  { %207 = vmatpush2.msra.mxu0 %v128_v49  ;;  %2162 = vmatpush2.msra.mxu1 %v128_v49 }
  0x6c   :  { %208 = vmatprep.subr.mxu0 %v127_v50  ;;  %2131 = vmatprep.subr.mxu1 %v127_v50 }
  0x6d   :  { %209 = vmatpush2.msra.mxu0 %v126_v51  ;;  %2163 = vmatpush2.msra.mxu1 %v126_v51 }
  0x6e   :  { %210 = vmatprep.subr.mxu0 %v125_v52  ;;  %2132 = vmatprep.subr.mxu1 %v125_v52 }
  0x6f   :  { %211 = vmatpush2.msra.mxu0 %v124_v53  ;;  %2164 = vmatpush2.msra.mxu1 %v124_v53 }
  0x70   :  { %212 = vmatprep.subr.mxu0 %v123_v54  ;;  %2133 = vmatprep.subr.mxu1 %v123_v54 }
  0x71   :  { %213 = vmatpush2.msra.mxu0 %v122_v55  ;;  %2165 = vmatpush2.msra.mxu1 %v122_v55 }
  0x72   :  { %214 = vmatprep.subr.mxu0 %v121_v56  ;;  %2134 = vmatprep.subr.mxu1 %v121_v56 }
  0x73   :  { %215 = vmatpush2.msra.mxu0 %v120_v57  ;;  %2166 = vmatpush2.msra.mxu1 %v120_v57 }
  0x74   :  { %216 = vmatprep.subr.mxu0 %v119_v58  ;;  %2135 = vmatprep.subr.mxu1 %v119_v58 }
  0x75   :  { %217 = vmatpush2.msra.mxu0 %v118_v59  ;;  %2167 = vmatpush2.msra.mxu1 %v118_v59 }
  0x76   :  { %218 = vmatprep.subr.mxu0 %v117_v60  ;;  %2136 = vmatprep.subr.mxu1 %v117_v60 }
  0x77   :  { %219 = vmatpush2.msra.mxu0 %v116_v61  ;;  %2168 = vmatpush2.msra.mxu1 %v116_v61 }
  0x78   :  { %220 = vmatprep.subr.mxu0 %v115_v62  ;;  %2137 = vmatprep.subr.mxu1 %v115_v62 }
  0x79   :  { %221 = vmatpush2.msra.mxu0 %v114_v63  ;;  %2169 = vmatpush2.msra.mxu1 %v114_v63 }
  0x7a   :  { %222 = vmatprep.mubr.f32.mxu0 %v75_v0  ;;  %234 = vmatprep.mubr.f32.mxu1 %v79_v1 }
  0x7b   :  { %223 = vmatmul.mubr.f32.vlgmr.msra.gmra.mxu0 %v74_v2  ;;  %235 = vmatmul.mubr.f32.vlgmr.msra.gmra.mxu1 %v78_v3 }
  0x7c   :  { %228 = vmatprep.mubr.f32.mxu0 %v77_v4  ;;  %240 = vmatprep.mubr.f32.mxu1 %v81_v5 }
  0x7f   :  { %229 = vmatmul.mubr.f32.gmra.mxu0 %v76_v6  ;;  %241 = vmatmul.mubr.f32.gmra.mxu1 %v80_v7 }
 0x13b   :  { %v224_v13 = vpop.f32.mrf.mxu0  ;;  %v236_v14 = vpop.f32.mrf.mxu1 }
 0x13c   :  { %v2463_v15 = vadd.f32 %v224_v13, %v151_v12  ;;  %v2465_v16 = vadd.f32 %v236_v14, %v151_v12 }
 0x13d   :  { %v226_v28 = vpop.f32.mrf.mxu0  ;;  %v238_v31 = vpop.f32.mrf.mxu1 }
 0x13e   :  { %3744 = vst [vmem:[#allocation17_spill] sm:$0xff] %v2463_v15  ;;  %3745 = vst [vmem:[#allocation18_spill] sm:$0xff] %v2465_v16  ;;  %285 = vrot.lane.b32.xlu1 %v2465_v16, %s2411_s13  ;;  %281 = vrot.lane.b32.xlu0 %v2463_v15, %s2411_s13  ;;  %v248_v17 = vsel %vm247_vm0, %v2463_v15, 0.0  ;;  %v265_v18 = vsel %vm247_vm0, %v2463_v15, -inf  ;;  %v271_v19 = vsel %vm247_vm0, %v2465_v16, -inf  ;;  %v310_v20 = vsel %vm309_vm1, %v2463_v15, -inf }
 0x13f   :  { %v316_v21 = vsel %vm309_vm1, %v2465_v16, -inf  ;;  %v351_v22 = vsel %vm350_vm2, %v2463_v15, -inf  ;;  %v254_v23 = vsel %vm247_vm0, %v2465_v16, 0.0  ;;  %v357_v24 = vsel %vm350_vm2, %v2465_v16, -inf  ;;  %v230_v33 = vpop.f32.mrf.mxu0  ;;  %v242_v35 = vpop.f32.mrf.mxu1 }
 0x140   :  { %v392_v25 = vsel %vm391_vm3, %v2463_v15, -inf  ;;  %v398_v27 = vsel %vm391_vm3, %v2465_v16, -inf  ;;  %v2499_v30 = vadd.f32 %v226_v28, %v155_v29  ;;  %v2503_v32 = vadd.f32 %v238_v31, %v155_v29 }
 0x141   :  { %v2507_v34 = vadd.f32 %v230_v33, %v151_v12  ;;  %v2511_v36 = vadd.f32 %v242_v35, %v151_v12  ;;  %v232_v54 = vpop.f32.mrf.mxu0  ;;  %v244_v57 = vpop.f32.mrf.mxu1 }
 0x142   :  { %322 = vrot.lane.b32.xlu1 %v2463_v15, %s2412_s14  ;;  %3746 = vst [vmem:[#allocation19_spill] sm:$0xff] %v2499_v30  ;;  %3747 = vst [vmem:[#allocation20_spill] sm:$0xff] %v2503_v32  ;;  %v404_v37 = vsel %vm247_vm0, %v2499_v30, 0.0  ;;  %v410_v38 = vsel %vm247_vm0, %v2503_v32, 0.0  ;;  %v420_v39 = vsel %vm247_vm0, %v2499_v30, -inf  ;;  %v426_v41 = vsel %vm247_vm0, %v2503_v32, -inf }
 0x143   :  { %3748 = vst [vmem:[#allocation21_spill] sm:$0xff] %v2507_v34  ;;  %3749 = vst [vmem:[#allocation22_spill] sm:$0xff] %v2511_v36  ;;  %v257_v40 = vsel %vm247_vm0, %v2511_v36, 0.0  ;;  %v268_v42 = vsel %vm247_vm0, %v2507_v34, -inf  ;;  %v464_v43 = vsel %vm309_vm1, %v2499_v30, -inf  ;;  %v274_v44 = vsel %vm247_vm0, %v2511_v36, -inf }
 0x144   :  { %v470_v45 = vsel %vm309_vm1, %v2503_v32, -inf  ;;  %v313_v46 = vsel %vm309_vm1, %v2507_v34, -inf  ;;  %v504_v47 = vsel %vm350_vm2, %v2499_v30, -inf  ;;  %v319_v48 = vsel %vm309_vm1, %v2511_v36, -inf }
 0x145   :  { %v510_v49 = vsel %vm350_vm2, %v2503_v32, -inf  ;;  %v354_v50 = vsel %vm350_vm2, %v2507_v34, -inf  ;;  %v360_v51 = vsel %vm350_vm2, %v2511_v36, -inf  ;;  %v395_v52 = vsel %vm391_vm3, %v2507_v34, -inf }
 0x146   :  { %326 = vrot.lane.b32.xlu1 %v2465_v16, %s2412_s14  ;;  %v401_v53 = vsel %vm391_vm3, %v2511_v36, -inf  ;;  %v2565_v56 = vadd.f32 %v232_v54, %v155_v29  ;;  %v2571_v59 = vadd.f32 %v244_v57, %v155_v29  ;;  %v251_v2 = vsel %vm247_vm0, %v2507_v34, 0.0 }
 0x147   :  { %v2662_v57 = vstv %s1957_s20 }
 0x148   :  { %3750 = vst [vmem:[#allocation23_spill] sm:$0xff] %v2565_v56  ;;  %3751 = vst [vmem:[#allocation24_spill] sm:$0xff] %v2571_v59  ;;  %v413_v28 = vsel %vm247_vm0, %v2571_v59, 0.0  ;;  %v423_v33 = vsel %vm247_vm0, %v2565_v56, -inf  ;;  %v513_v54 = vsel %vm350_vm2, %v2571_v59, -inf }
 0x14a   :  { %363 = vrot.lane.b32.xlu1 %v2463_v15, %s2413_s2 }
 0x14e   :  { %367 = vrot.lane.b32.xlu1 %v2465_v16, %s2413_s2 }
 0x15d   :  { %249 = vadd.xlane.f32.xlu0 %v248_v17 }
 0x161   :  { %266 = vmax.xlane.f32.xlu0 %v265_v18 }
 0x165   :  { %272 = vmax.xlane.f32.xlu0 %v271_v19 }
 0x169   :  { %311 = vmax.xlane.f32.xlu0 %v310_v20 }
 0x16d   :  { %317 = vmax.xlane.f32.xlu0 %v316_v21 }
 0x171   :  { %352 = vmax.xlane.f32.xlu0 %v351_v22 }
 0x172   :  { %255 = vadd.xlane.f32.xlu1 %v254_v23 }
 0x175   :  { %358 = vmax.xlane.f32.xlu0 %v357_v24 }
 0x179   :  { %393 = vmax.xlane.f32.xlu0 %v392_v25  ;;  %v407_v25 = vsel %vm247_vm0, %v2565_v56, 0.0 }
 0x17d   :  { %399 = vmax.xlane.f32.xlu0 %v398_v27 }
 0x183   :  { %436 = vrot.lane.b32.xlu1 %v2499_v30, %s2411_s13 }
 0x187   :  { %440 = vrot.lane.b32.xlu1 %v2503_v32, %s2411_s13 }
 0x18b   :  { %476 = vrot.lane.b32.xlu1 %v2499_v30, %s2412_s14 }
 0x18f   :  { %283 = vrot.lane.b32.xlu1 %v2507_v34, %s2411_s13 }
 0x193   :  { %287 = vrot.lane.b32.xlu1 %v2511_v36, %s2411_s13  ;;  %480 = vrot.lane.b32.xlu0 %v2503_v32, %s2412_s14 }
 0x197   :  { %324 = vrot.lane.b32.xlu1 %v2507_v34, %s2412_s14  ;;  %516 = vrot.lane.b32.xlu0 %v2499_v30, %s2413_s2 }
 0x19b   :  { %328 = vrot.lane.b32.xlu1 %v2511_v36, %s2412_s14  ;;  %520 = vrot.lane.b32.xlu0 %v2503_v32, %s2413_s2 }
 0x19f   :  { %365 = vrot.lane.b32.xlu1 %v2507_v34, %s2413_s2 }
 0x1b0   :  { %v282_v55 = vpop.permute.xlu0 %281  ;;  %v2575_v60 = vpop.permute.xlu1 %285 }
 0x1b1   :  { %v293_v5 = vsel %vm247_vm0, %v282_v55, 0.0 }
 0x1b4   :  { %v323_v62 = vpop.permute.xlu1 %322 }
 0x1b5   :  { %v334_v7 = vsel %vm247_vm0, %v323_v62, 0.0 }
 0x1b8   :  { %v327_v0 = vpop.permute.xlu1 %326 }
 0x1b9   :  { %v340_v10 = vsel %vm247_vm0, %v327_v0, 0.0  ;;  %v2669_v0 = vstv %s2625_s15  ;;  %s2906_s15 = sld [smem:[#allocation9 + $0x381]] }
 0x1ba   :  { %405 = vadd.xlane.f32.xlu0 %v404_v37 }
 0x1bc   :  { %v364_v3 = vpop.permute.xlu1 %363 }
 0x1bd   :  { %v375_v12 = vsel %vm247_vm0, %v364_v3, 0.0 }
 0x1be   :  { %411 = vadd.xlane.f32.xlu0 %v410_v38  ;;  %v429_v38 = vsel %vm247_vm0, %v2571_v59, -inf }
 0x1c0   :  { %v368_v6 = vpop.permute.xlu1 %367 }
 0x1c1   :  { %v381_v14 = vsel %vm247_vm0, %v368_v6, 0.0 }
 0x1c2   :  { %421 = vmax.xlane.f32.xlu0 %v420_v39 }
 0x1c3   :  { %258 = vadd.xlane.f32.xlu1 %v257_v40 }
 0x1c6   :  { %427 = vmax.xlane.f32.xlu0 %v426_v41  ;;  %v467_v41 = vsel %vm309_vm1, %v2565_v56, -inf }
 0x1c7   :  { %269 = vmax.xlane.f32.xlu1 %v268_v42 }
 0x1ca   :  { %465 = vmax.xlane.f32.xlu0 %v464_v43 }
 0x1cb   :  { %275 = vmax.xlane.f32.xlu1 %v274_v44  ;;  %v473_v44 = vsel %vm309_vm1, %v2571_v59, -inf }
 0x1ce   :  { %471 = vmax.xlane.f32.xlu0 %v470_v45 }
 0x1cf   :  { %314 = vmax.xlane.f32.xlu1 %v313_v46  ;;  %v544_v46 = vsel %vm391_vm3, %v2499_v30, -inf }
 0x1d2   :  { %505 = vmax.xlane.f32.xlu0 %v504_v47 }
 0x1d3   :  { %320 = vmax.xlane.f32.xlu1 %v319_v48  ;;  %v507_v48 = vsel %vm350_vm2, %v2565_v56, -inf }
 0x1d6   :  { %511 = vmax.xlane.f32.xlu0 %v510_v49  ;;  %v2648_v49 = vstv %s1948_s17  ;;  %s2922_s17 = sld [smem:[#allocation9 + $0x1]] }
 0x1d7   :  { %355 = vmax.xlane.f32.xlu1 %v354_v50  ;;  %v2650_v50 = vstv %s1956_s18  ;;  %s2926_s18 = sld [smem:[#allocation9 + $0x200]] }
 0x1db   :  { %361 = vmax.xlane.f32.xlu1 %v360_v51  ;;  %v550_v51 = vsel %vm391_vm3, %v2503_v32, -inf }
 0x1df   :  { %396 = vmax.xlane.f32.xlu1 %v395_v52  ;;  %v2654_v52 = vstv %s1949_s19  ;;  %s2936_s19 = sld [smem:[#allocation9 + $0x201]] }
 0x1e3   :  { %402 = vmax.xlane.f32.xlu1 %v401_v53 }
 0x1e6   :  { %v2569_v58 = vpop.xlane.xlu0 %249 }
 0x1ea   :  { %v2577_v61 = vpop.xlane.xlu0 %266 }
 0x1ec   :  { %369 = vrot.lane.b32.xlu0 %v2511_v36, %s2413_s2  ;;  %v2848_v36 = vstv %s2796_s6 }
 0x1ed   :  { %3759 = vst [vmem:[#allocation32_spill] sm:$0xff] %v2848_v36 }
 0x1ee   :  { %v2583_v63 = vpop.xlane.xlu0 %272 }
 0x1f2   :  { %v2587_v1 = vpop.xlane.xlu0 %311 }
 0x1f3   :  { %v848_v55 = vmul.f32 %v2648_v49, %v2587_v1  ;;  %v912_v3 = vmul.f32 %v2650_v50, %v2587_v1  ;;  %v299_v1 = vsel %vm247_vm0, %v2575_v60, 0.0 }
 0x1f4   :  { %438 = vrot.lane.b32.xlu1 %v2565_v56, %s2411_s13 }
 0x1f6   :  { %v2593_v4 = vpop.xlane.xlu0 %317 }
 0x1f8   :  { %442 = vrot.lane.b32.xlu1 %v2571_v59, %s2411_s13 }
 0x1fa   :  { %v2597_v8 = vpop.xlane.xlu0 %352 }
 0x1fb   :  { %v2599_v9 = vpop.xlane.xlu1 %255  ;;  %v856_v6 = vmul.f32 %v2654_v52, %v2597_v8 }
 0x1fc   :  { %478 = vrot.lane.b32.xlu1 %v2565_v56, %s2412_s14 }
 0x1fe   :  { %v2602_v11 = vpop.xlane.xlu0 %358 }
 0x1ff   :  { %v437_v13 = vpop.permute.xlu1 %436 }
 0x200   :  { %482 = vrot.lane.b32.xlu1 %v2571_v59, %s2412_s14  ;;  %v448_v19 = vsel %vm247_vm0, %v437_v13, 0.0  ;;  %v920_v13 = vmul.f32 %v2662_v57, %v2597_v8  ;;  %v914_v8 = vmul.f32 %v2650_v50, %v2593_v4 }
 0x202   :  { %v2606_v17 = vpop.xlane.xlu0 %393 }
 0x203   :  { %v441_v18 = vpop.permute.xlu1 %440 }
 0x204   :  { %518 = vrot.lane.b32.xlu1 %v2565_v56, %s2413_s2  ;;  %v454_v21 = vsel %vm247_vm0, %v441_v18, 0.0  ;;  %v547_v18 = vsel %vm391_vm3, %v2565_v56, -inf }
 0x206   :  { %v2609_v20 = vpop.xlane.xlu0 %399 }
 0x207   :  { %v477_v22 = vpop.permute.xlu1 %476 }
 0x208   :  { %522 = vrot.lane.b32.xlu1 %v2571_v59, %s2413_s2  ;;  %v488_v23 = vsel %vm247_vm0, %v477_v22, 0.0  ;;  %v2697_v22 = vstv %s2640_s23 }
 0x20a   :  { %v481_v24 = vpop.permute.xlu0 %480 }
 0x20b   :  { %252 = vadd.xlane.f32.xlu0 %v251_v2  ;;  %v284_v26 = vpop.permute.xlu1 %283  ;;  %v494_v27 = vsel %vm247_vm0, %v481_v24, 0.0  ;;  %v2672_v2 = vstv %s2629_s16  ;;  %s2912_s16 = sld [smem:[#allocation9]] }
 0x20c   :  { %v296_v29 = vsel %vm247_vm0, %v284_v26, 0.0  ;;  %v846_v26 = vmul.f32 %v2669_v0, %v2583_v63 }
 0x20e   :  { %v517_v35 = vpop.permute.xlu0 %516 }
 0x20f   :  { %294 = vadd.xlane.f32.xlu0 %v293_v5  ;;  %v288_v31 = vpop.permute.xlu1 %287  ;;  %v528_v39 = vsel %vm247_vm0, %v517_v35, 0.0  ;;  %v844_v5 = vmul.f32 %v2669_v0, %v2577_v61 }
 0x210   :  { %v302_v37 = vsel %vm247_vm0, %v288_v31, 0.0 }
 0x212   :  { %v521_v40 = vpop.permute.xlu0 %520 }
 0x213   :  { %335 = vadd.xlane.f32.xlu0 %v334_v7  ;;  %v2631_v42 = vpop.permute.xlu1 %324  ;;  %v534_v43 = vsel %vm247_vm0, %v521_v40, 0.0  ;;  %v2682_v7 = vstv %s1950_s21 }
 0x214   :  { %3752 = vst [vmem:[#allocation25_spill] sm:$0xff] %v2682_v7  ;;  %v864_v60 = vmul.f32 %v2682_v7, %v2606_v17 }
 0x217   :  { %341 = vadd.xlane.f32.xlu0 %v340_v10  ;;  %v2636_v45 = vpop.permute.xlu1 %328  ;;  %v2684_v10 = vstv %s1958_s22 }
 0x218   :  { %3753 = vst [vmem:[#allocation26_spill] sm:$0xff] %v2684_v10 }
 0x21b   :  { %376 = vadd.xlane.f32.xlu0 %v375_v12  ;;  %v2664_v62 = vpop.permute.xlu1 %365  ;;  %v908_v12 = vmul.f32 %v2672_v2, %v2577_v61 }
 0x21d   :  { %v916_v24 = vadd.f32 %v912_v3, %v908_v12  ;;  %v337_v3 = vsel %vm247_vm0, %v2631_v42, 0.0  ;;  %v343_v42 = vsel %vm247_vm0, %v2636_v45, 0.0 }
 0x21f   :  { %382 = vadd.xlane.f32.xlu0 %v381_v14  ;;  %v924_v31 = vadd.f32 %v920_v13, %v916_v24 }
 0x223   :  { %449 = vadd.xlane.f32.xlu0 %v448_v19  ;;  %v852_v19 = vadd.f32 %v848_v55, %v844_v5 }
 0x227   :  { %455 = vadd.xlane.f32.xlu0 %v454_v21  ;;  %v850_v21 = vmul.f32 %v2648_v49, %v2593_v4  ;;  %v922_v4 = vmul.f32 %v2662_v57, %v2602_v11 }
 0x22b   :  { %489 = vadd.xlane.f32.xlu0 %v488_v23  ;;  %v2700_v23 = vstv %s2646_s24 }
 0x22c   :  { %408 = vadd.xlane.f32.xlu1 %v407_v25  ;;  %v928_v25 = vmul.f32 %v2684_v10, %v2606_v17 }
 0x22f   :  { %495 = vadd.xlane.f32.xlu0 %v494_v27  ;;  %v910_v27 = vmul.f32 %v2672_v2, %v2583_v63 }
 0x230   :  { %414 = vadd.xlane.f32.xlu1 %v413_v28  ;;  %v860_v28 = vadd.f32 %v856_v6, %v852_v19 }
 0x231   :  { %v918_v63 = vadd.f32 %v914_v8, %v910_v27  ;;  %v2749_v27 = vstv %s2725_s27 }
 0x232   :  { %v868_v40 = vadd.f32 %v864_v60, %v860_v28  ;;  %v2751_v28 = vstv %s1961_s28 }
 0x233   :  { %297 = vadd.xlane.f32.xlu0 %v296_v29  ;;  %v858_v29 = vmul.f32 %v2654_v52, %v2602_v11 }
 0x234   :  { %424 = vmax.xlane.f32.xlu1 %v423_v33 }
 0x237   :  { %303 = vadd.xlane.f32.xlu0 %v302_v37  ;;  %v854_v37 = vadd.f32 %v850_v21, %v846_v26 }
 0x238   :  { %430 = vmax.xlane.f32.xlu1 %v429_v38 }
 0x239   :  { %v862_v11 = vadd.f32 %v858_v29, %v854_v37 }
 0x23b   :  { %529 = vadd.xlane.f32.xlu0 %v528_v39  ;;  %v2723_v39 = vstv %s2666_s25 }
 0x23c   :  { %468 = vmax.xlane.f32.xlu1 %v467_v41  ;;  %v932_v41 = vadd.f32 %v928_v25, %v924_v31 }
 0x23f   :  { %535 = vadd.xlane.f32.xlu0 %v534_v43  ;;  %v2728_v43 = vstv %s2676_s26 }
 0x240   :  { %474 = vmax.xlane.f32.xlu1 %v473_v44  ;;  %v866_v44 = vmul.f32 %v2682_v7, %v2609_v20 }
 0x243   :  { %545 = vmax.xlane.f32.xlu0 %v544_v46  ;;  %v2642_v47 = vpop.xlane.xlu0 %405  ;;  %v930_v46 = vmul.f32 %v2684_v10, %v2609_v20  ;;  %v870_v20 = vadd.f32 %v866_v44, %v862_v11 }
 0x244   :  { %508 = vmax.xlane.f32.xlu1 %v507_v48  ;;  %v926_v48 = vadd.f32 %v922_v4, %v918_v63 }
 0x247   :  { %551 = vmax.xlane.f32.xlu0 %v550_v51  ;;  %v2656_v53 = vpop.xlane.xlu0 %411 }
 0x248   :  { %514 = vmax.xlane.f32.xlu1 %v513_v54 }
 0x24b   :  { %v422_v14 = vpop.xlane.xlu0 %421 }
 0x24c   :  { %300 = vadd.xlane.f32.xlu1 %v299_v1  ;;  %v2702_v61 = vpop.xlane.xlu1 %258  ;;  %v872_v33 = vmul.f32 %v2697_v22, %v422_v14  ;;  %v936_v35 = vmul.f32 %v2700_v23, %v422_v14  ;;  %v934_v1 = vadd.f32 %v930_v46, %v926_v48 }
 0x24e   :  { %v876_v51 = vadd.f32 %v872_v33, %v868_v40  ;;  %v940_v54 = vadd.f32 %v936_v35, %v932_v41  ;;  %v378_v33 = vsel %vm247_vm0, %v2664_v62, 0.0 }
 0x24f   :  { %v428_v17 = vpop.xlane.xlu0 %427 }
 0x250   :  { %548 = vmax.xlane.f32.xlu1 %v547_v18  ;;  %v2720_v38 = vpop.xlane.xlu1 %269  ;;  %v874_v5 = vmul.f32 %v2697_v22, %v428_v17  ;;  %v938_v6 = vmul.f32 %v2700_v23, %v428_v17 }
 0x251   :  { %v909_v56 = vmul.f32 %v2672_v2, %v2720_v38 }
 0x252   :  { %v878_v24 = vadd.f32 %v874_v5, %v870_v20  ;;  %v942_v8 = vadd.f32 %v938_v6, %v934_v1 }
 0x253   :  { %v466_v55 = vpop.xlane.xlu0 %465 }
 0x254   :  { %v880_v12 = vmul.f32 %v2723_v39, %v466_v55  ;;  %v944_v13 = vmul.f32 %v2728_v43, %v466_v55  ;;  %338 = vadd.xlane.f32.xlu1 %v337_v3  ;;  %v2740_v14 = vpop.xlane.xlu1 %275 }
 0x256   :  { %v884_v18 = vadd.f32 %v880_v12, %v876_v51  ;;  %v948_v19 = vadd.f32 %v944_v13, %v940_v54 }
 0x257   :  { %v472_v21 = vpop.xlane.xlu0 %471 }
 0x258   :  { %v882_v60 = vmul.f32 %v2723_v39, %v472_v21  ;;  %v946_v25 = vmul.f32 %v2728_v43, %v472_v21  ;;  %344 = vadd.xlane.f32.xlu1 %v343_v42  ;;  %v2746_v26 = vpop.xlane.xlu1 %314 }
 0x25a   :  { %v886_v29 = vadd.f32 %v882_v60, %v878_v24  ;;  %v950_v31 = vadd.f32 %v946_v25, %v942_v8  ;;  %v553_v60 = vsel %vm391_vm3, %v2571_v59, -inf }
 0x25b   :  { %v506_v4 = vpop.xlane.xlu0 %505 }
 0x25c   :  { %v888_v45 = vmul.f32 %v2749_v27, %v506_v4  ;;  %v952_v35 = vmul.f32 %v2751_v28, %v506_v4  ;;  %379 = vadd.xlane.f32.xlu1 %v378_v33  ;;  %v2757_v17 = vpop.xlane.xlu1 %320 }
 0x25e   :  { %v2759_v37 = vadd.f32 %v888_v45, %v884_v18  ;;  %v2761_v63 = vadd.f32 %v952_v35, %v948_v19 }
 0x25f   :  { %v512_v40 = vpop.xlane.xlu0 %511 }
 0x260   :  { %v890_v41 = vmul.f32 %v2749_v27, %v512_v40  ;;  %v954_v11 = vmul.f32 %v2751_v28, %v512_v40  ;;  %v2765_v44 = vpop.xlane.xlu1 %355 }
 0x262   :  { %v2767_v46 = vadd.f32 %v890_v41, %v886_v29  ;;  %v2769_v62 = vadd.f32 %v954_v11, %v950_v31  ;;  %v261_v41 = vmul.f32 0.03125, %v2569_v58 }
 0x263   :  { %v370_v48 = vpop.permute.xlu0 %369 }
 0x264   :  { %3754 = vst [vmem:[#allocation27_spill] sm:$0xff] %v2767_v46  ;;  %3755 = vst [vmem:[#allocation28_spill] sm:$0xff] %v2769_v62  ;;  %v2771_v51 = vpop.xlane.xlu1 %361  ;;  %v384_v54 = vsel %vm247_vm0, %v370_v48, 0.0  ;;  %v263_v48 = vmul.f32 0.03125, %v2599_v9  ;;  %v2892_v62 = vstv %s2835_s0 }
 0x265   :  { %385 = vadd.xlane.f32.xlu1 %v384_v54  ;;  %v416_v54 = vmul.f32 0.03125, %v2642_v47 }
 0x266   :  { %v2805_v9 = vmul.f32 %v2669_v0, %v263_v48  ;;  %v2808_v47 = vmul.f32 %v2672_v2, %v263_v48 }
 0x268   :  { %v2774_v55 = vpop.xlane.xlu1 %396 }
 0x26c   :  { %v2776_v3 = vpop.xlane.xlu1 %402 }
 0x270   :  { %v439_v5 = vpop.permute.xlu1 %438 }
 0x271   :  { %v451_v6 = vsel %vm247_vm0, %v439_v5, 0.0  ;;  %v418_v5 = vmul.f32 0.03125, %v2656_v53 }
 0x272   :  { %452 = vadd.xlane.f32.xlu1 %v451_v6 }
 0x274   :  { %v443_v12 = vpop.permute.xlu1 %442 }
 0x275   :  { %v457_v13 = vsel %vm247_vm0, %v443_v12, 0.0 }
 0x276   :  { %458 = vadd.xlane.f32.xlu1 %v457_v13 }
 0x278   :  { %v479_v20 = vpop.permute.xlu1 %478 }
 0x279   :  { %v491_v1 = vsel %vm247_vm0, %v479_v20, 0.0  ;;  %v558_v20 = vmul.f32 %v2669_v0, %v261_v41 }
 0x27a   :  { %492 = vadd.xlane.f32.xlu1 %v491_v1  ;;  %v264_v1 = vmul.f32 0.03125, %v2702_v61 }
 0x27c   :  { %v483_v18 = vpop.permute.xlu1 %482 }
 0x27d   :  { %v497_v19 = vsel %vm247_vm0, %v483_v18, 0.0 }
 0x27e   :  { %498 = vadd.xlane.f32.xlu1 %v497_v19  ;;  %v638_v19 = vmul.f32 %v2672_v2, %v261_v41  ;;  %v2829_v41 = vstv %s1962_s30 }
 0x27f   :  { %3757 = vst [vmem:[#allocation30_spill] sm:$0xff] %v2829_v41 }
 0x280   :  { %v519_v21 = vpop.permute.xlu1 %518 }
 0x281   :  { %v531_v42 = vsel %vm247_vm0, %v519_v21, 0.0  ;;  %v594_v21 = vmul.f32 %v2697_v22, %v416_v54 }
 0x282   :  { %532 = vadd.xlane.f32.xlu1 %v531_v42  ;;  %v674_v42 = vmul.f32 %v2700_v23, %v416_v54 }
 0x284   :  { %v523_v24 = vpop.permute.xlu1 %522 }
 0x285   :  { %v537_v8 = vsel %vm247_vm0, %v523_v24, 0.0  ;;  %v2814_v24 = vmul.f32 %v2697_v22, %v418_v5 }
 0x286   :  { %538 = vadd.xlane.f32.xlu1 %v537_v8 }
 0x28a   :  { %554 = vmax.xlane.f32.xlu1 %v553_v60  ;;  %v2822_v60 = vmul.f32 %v2700_v23, %v418_v5  ;;  %v2838_v5 = vmul.f32 %v2672_v2, %v264_v1 }
 0x28c   :  { %3756 = vst [vmem:[#allocation29_spill] sm:$0xff] %v2822_v60  ;;  %3758 = vst [vmem:[#allocation31_spill] sm:$0xff] %v2838_v5 }
 0x294   :  { %v253_v25 = vpop.xlane.xlu0 %252 }
 0x295   :  { %v262_v48 = vmul.f32 0.03125, %v253_v25  ;;  %v849_v25 = vmul.f32 %v2648_v49, %v2746_v26 }
 0x298   :  { %v295_v29 = vpop.xlane.xlu0 %294 }
 0x299   :  { %v305_v11 = vmul.f32 0.03125, %v295_v29 }
 0x29b   :  { %v564_v18 = vmul.f32 %v2648_v49, %v305_v11  ;;  %v644_v53 = vmul.f32 %v2650_v50, %v305_v11  ;;  %v2832_v11 = vmul.f32 %v2669_v0, %v264_v1  ;;  %v913_v1 = vmul.f32 %v2650_v50, %v2746_v26 }
 0x29c   :  { %v336_v31 = vpop.xlane.xlu0 %335 }
 0x29d   :  { %v346_v6 = vmul.f32 0.03125, %v336_v31  ;;  %v568_v54 = vadd.f32 %v564_v18, %v558_v20  ;;  %v648_v59 = vadd.f32 %v644_v53, %v638_v19 }
 0x29f   :  { %v574_v61 = vmul.f32 %v2654_v52, %v346_v6  ;;  %v654_v29 = vmul.f32 %v2662_v57, %v346_v6  ;;  %v845_v6 = vmul.f32 %v2669_v0, %v2720_v38  ;;  %v851_v38 = vmul.f32 %v2648_v49, %v2757_v17 }
 0x2a0   :  { %v2786_v4 = vpop.xlane.xlu0 %341 }
 0x2a1   :  { %v578_v20 = vadd.f32 %v574_v61, %v568_v54  ;;  %v658_v16 = vadd.f32 %v654_v29, %v648_v59  ;;  %v639_v61 = vmul.f32 %v2672_v2, %v262_v48  ;;  %v847_v29 = vmul.f32 %v2669_v0, %v2740_v14 }
 0x2a4   :  { %v377_v33 = vpop.xlane.xlu0 %376 }
 0x2a5   :  { %v387_v58 = vmul.f32 0.03125, %v377_v33  ;;  %v2827_v33 = vstv %s1954_s29 }
 0x2a7   :  { %v584_v32 = vmul.f32 %v2682_v7, %v387_v58  ;;  %v664_v30 = vmul.f32 %v2684_v10, %v387_v58  ;;  %v559_v58 = vmul.f32 %v2669_v0, %v262_v48 }
 0x2a8   :  { %v2788_v45 = vpop.xlane.xlu0 %382 }
 0x2a9   :  { %v588_v54 = vadd.f32 %v584_v32, %v578_v20  ;;  %v668_v15 = vadd.f32 %v664_v30, %v658_v16  ;;  %v915_v32 = vmul.f32 %v2650_v50, %v2757_v17  ;;  %v2877_v16 = vstv %s2819_s7 }
 0x2aa   :  { %3760 = vst [vmem:[#allocation33_spill] sm:$0xff] %v2877_v16  ;;  %v855_v17 = vadd.f32 %v851_v38, %v847_v29 }
 0x2ab   :  { %v598_v46 = vadd.f32 %v594_v21, %v588_v54  ;;  %v678_v5 = vadd.f32 %v674_v42, %v668_v15  ;;  %v923_v15 = vmul.f32 %v2662_v57, %v2771_v51  ;;  %v929_v54 = vmul.f32 %v2684_v10, %v2774_v55 }
 0x2ac   :  { %v450_v35 = vpop.xlane.xlu0 %449 }
 0x2ad   :  { %v460_v34 = vmul.f32 0.03125, %v450_v35 }
 0x2af   :  { %v604_v30 = vmul.f32 %v2723_v39, %v460_v34 }
 0x2b0   :  { %v2790_v40 = vpop.xlane.xlu0 %455 }
 0x2b1   :  { %v608_v21 = vadd.f32 %v604_v30, %v598_v46  ;;  %v931_v46 = vmul.f32 %v2684_v10, %v2776_v3 }
 0x2b4   :  { %v490_v12 = vpop.xlane.xlu0 %489 }
 0x2b5   :  { %v2798_v13 = vpop.xlane.xlu1 %408  ;;  %v500_v26 = vmul.f32 0.03125, %v490_v12  ;;  %v684_v12 = vmul.f32 %v2728_v43, %v460_v34 }
 0x2b7   :  { %v614_v60 = vmul.f32 %v2749_v27, %v500_v26  ;;  %v694_v34 = vmul.f32 %v2751_v28, %v500_v26  ;;  %v688_v42 = vadd.f32 %v684_v12, %v678_v5  ;;  %v867_v26 = vmul.f32 %v2682_v7, %v2776_v3 }
 0x2b8   :  { %v2817_v8 = vpop.xlane.xlu0 %495  ;;  %v2934_v3 = vstv %s2856_s9 }
 0x2b9   :  { %v2825_v31 = vpop.xlane.xlu1 %414  ;;  %v698_v5 = vadd.f32 %v694_v34, %v688_v42 }
 0x2bc   :  { %v298_v18 = vpop.xlane.xlu0 %297 }
 0x2bd   :  { %v306_v19 = vmul.f32 0.03125, %v298_v18  ;;  %v2854_v53 = vpop.xlane.xlu1 %424  ;;  %v911_v18 = vmul.f32 %v2672_v2, %v2740_v14  ;;  %v853_v2 = vadd.f32 %v849_v25, %v845_v6  ;;  %v917_v14 = vadd.f32 %v913_v1, %v909_v56 }
 0x2be   :  { %v921_v56 = vmul.f32 %v2662_v57, %v2765_v44  ;;  %v859_v6 = vmul.f32 %v2654_v52, %v2771_v51  ;;  %v618_v51 = vadd.f32 %v614_v60, %v608_v21  ;;  %v2941_v21 = vstv %s2862_s10 }
 0x2bf   :  { %v565_v59 = vmul.f32 %v2648_v49, %v306_v19  ;;  %v645_v35 = vmul.f32 %v2650_v50, %v306_v19 }
 0x2c0   :  { %v2874_v48 = vpop.xlane.xlu0 %303  ;;  %v925_v29 = vadd.f32 %v921_v56, %v917_v14  ;;  %v863_v60 = vadd.f32 %v859_v6, %v855_v17  ;;  %v2947_v14 = vstv %s2879_s11  ;;  %v348_v6 = vmul.f32 0.03125, %v2786_v4 }
 0x2c1   :  { %v2883_v20 = vadd.f32 %v565_v59, %v559_v58  ;;  %v2885_v19 = vadd.f32 %v645_v35, %v639_v61  ;;  %v2887_v0 = vpop.xlane.xlu1 %430  ;;  %v919_v58 = vadd.f32 %v915_v32, %v911_v18  ;;  %v857_v61 = vmul.f32 %v2654_v52, %v2765_v44 }
 0x2c2   :  { %v865_v44 = vmul.f32 %v2682_v7, %v2774_v55  ;;  %v2931_v32 = vstv %s2850_s8  ;;  %v2952_v42 = vadd.f32 %v929_v54, %v925_v29  ;;  %v2954_v17 = vadd.f32 %v867_v26, %v863_v60 }
 0x2c3   :  { %3761 = vst [vmem:[#allocation34_spill] sm:$0xff] %v2883_v20  ;;  %3762 = vst [vmem:[#allocation35_spill] sm:$0xff] %v2885_v19  ;;  %v861_v55 = vadd.f32 %v857_v61, %v853_v2  ;;  %v927_v30 = vadd.f32 %v923_v15, %v919_v58  ;;  %v2944_v2 = vstv %s2866_s3  ;;  %v2950_v61 = vstv %s2889_s1 }
 0x2c4   :  { %v530_v25 = vpop.xlane.xlu0 %529  ;;  %3763 = vst [vmem:[#allocation36_spill] sm:$0xff] %v2950_v61  ;;  %v389_v4 = vmul.f32 0.03125, %v2788_v45  ;;  %v2982_v29 = vstv %s2922_s17  ;;  %v417_v60 = vmul.f32 0.03125, %v2798_v13  ;;  %v502_v45 = vmul.f32 0.03125, %v2817_v8 }
 0x2c5   :  { %v540_v1 = vmul.f32 0.03125, %v530_v25  ;;  %v2910_v38 = vpop.xlane.xlu1 %468  ;;  %v869_v56 = vadd.f32 %v865_v44, %v861_v55  ;;  %v2956_v58 = vadd.f32 %v931_v46, %v927_v30  ;;  %v2979_v55 = vstv %s2912_s16  ;;  %3770 = vst [vmem:[#allocation43_spill] sm:$0xff] %v2982_v29 }
 0x2c6   :  { %3769 = vst [vmem:[#allocation42_spill] sm:$0xff] %v2979_v55  ;;  %v586_v13 = vmul.f32 %v2682_v7, %v389_v4  ;;  %v308_v20 = vmul.f32 0.03125, %v2874_v48 }
 0x2c7   :  { %v624_v59 = vmul.f32 %v2827_v33, %v540_v1  ;;  %v704_v35 = vmul.f32 %v2829_v41, %v540_v1  ;;  %v2960_v1 = vstv %s2894_s4 }
 0x2c8   :  { %v2928_v18 = vpop.xlane.xlu0 %535  ;;  %3764 = vst [vmem:[#allocation37_spill] sm:$0xff] %v2960_v1 }
 0x2c9   :  { %v628_v12 = vadd.f32 %v624_v59, %v618_v51  ;;  %v708_v34 = vadd.f32 %v704_v35, %v698_v5  ;;  %v2938_v25 = vpop.xlane.xlu1 %474  ;;  %v2963_v51 = vstv %s2898_s12  ;;  %v2966_v5 = vstv %s2906_s15 }
 0x2ca   :  { %3765 = vst [vmem:[#allocation38_spill] sm:$0xff] %v2963_v51  ;;  %3766 = vst [vmem:[#allocation39_spill] sm:$0xff] %v2966_v5  ;;  %v462_v35 = vmul.f32 0.03125, %v2790_v40  ;;  %v656_v5 = vmul.f32 %v2662_v57, %v348_v6  ;;  %v2994_v51 = vstv %s2936_s19 }
 0x2cb   :  { %v2968_v59 = vmax.f32 %v628_v12, 0.0  ;;  %v2970_v44 = vmax.f32 %v708_v34, 0.0  ;;  %v2988_v34 = vstv %s2926_s18  ;;  %3772 = vst [vmem:[#allocation45_spill] sm:$0xff] %v2994_v51 }
 0x2cc   :  { %v546_v15 = vpop.xlane.xlu0 %545  ;;  %3771 = vst [vmem:[#allocation44_spill] sm:$0xff] %v2988_v34  ;;  %v3009_v8 = vmul.f32 %v2723_v39, %v462_v35  ;;  %v3023_v34 = vmul.f32 %v2700_v23, %v417_v60 }
 0x2cd   :  { %3767 = vst [vmem:[#allocation40_spill] sm:$0xff] %v2968_v59  ;;  %3768 = vst [vmem:[#allocation41_spill] sm:$0xff] %v2970_v44  ;;  %v896_v54 = vmul.f32 %v2827_v33, %v546_v15  ;;  %v960_v26 = vmul.f32 %v2829_v41, %v546_v15  ;;  %v2974_v46 = vpop.xlane.xlu1 %508  ;;  %v576_v15 = vmul.f32 %v2654_v52, %v348_v6 }
 0x2ce   :  { %v666_v6 = vmul.f32 %v2684_v10, %v389_v4  ;;  %3775 = vst [vmem:[#allocation48_spill] sm:$0xff] %v3023_v34  ;;  %v873_v4 = vmul.f32 %v2697_v22, %v2854_v53 }
 0x2cf   :  { %v900_v30 = vadd.f32 %v896_v54, %v2759_v37  ;;  %v964_v12 = vadd.f32 %v960_v26, %v2761_v63  ;;  %v734_v37 = vmul.f32 %v2848_v36, %v2968_v59  ;;  %v740_v63 = vmul.f32 %v2877_v16, %v2970_v44 }
 0x2d0   :  { %v3012_v54 = vmul.f32 %v2728_v43, %v462_v35  ;;  %v3015_v26 = vmul.f32 %v2697_v22, %v417_v60  ;;  %v696_v60 = vmul.f32 %v2751_v28, %v502_v45 }
 0x2d1   :  { %v2996_v40 = vmax.f32 %v900_v30, 0.0  ;;  %v2998_v55 = vmax.f32 %v964_v12, 0.0  ;;  %v3000_v29 = vpop.xlane.xlu1 %514  ;;  %v419_v30 = vmul.f32 0.03125, %v2825_v31  ;;  %v3032_v31 = vmul.f32 %v2749_v27, %v502_v45 }
 0x2d2   :  { %3773 = vst [vmem:[#allocation46_spill] sm:$0xff] %v3000_v29  ;;  %3774 = vst [vmem:[#allocation47_spill] sm:$0xff] %v3015_v26  ;;  %v744_v29 = vadd.f32 %v740_v63, %v734_v37  ;;  %v937_v63 = vmul.f32 %v2700_v23, %v2854_v53  ;;  %v750_v53 = vmul.f32 %v2892_v62, %v2968_v59 }
 0x2d3   :  { %v984_v12 = vmul.f32 %v2996_v40, %v2848_v36  ;;  %v988_v51 = vmul.f32 %v2998_v55, %v2877_v16  ;;  %v996_v35 = vmul.f32 %v2996_v40, %v2892_v62  ;;  %v1000_v1 = vmul.f32 %v2998_v55, %v2931_v32 }
 0x2d4   :  { %v1008_v16 = vmul.f32 %v2996_v40, %v2934_v3  ;;  %v1012_v10 = vmul.f32 %v2998_v55, %v2941_v21  ;;  %v3040_v7 = vmul.f32 %v2697_v22, %v419_v30  ;;  %v3043_v19 = vmul.f32 %v2700_v23, %v419_v30 }
 0x2d5   :  { %v301_v61 = vpop.xlane.xlu1 %300  ;;  %v992_v26 = vadd.f32 %v988_v51, %v984_v12  ;;  %v1004_v36 = vadd.f32 %v1000_v1, %v996_v35  ;;  %v877_v51 = vadd.f32 %v873_v4, %v869_v56  ;;  %v875_v1 = vmul.f32 %v2697_v22, %v2887_v0 }
 0x2d6   :  { %v307_v34 = vmul.f32 0.03125, %v301_v61  ;;  %3776 = vst [vmem:[#allocation49_spill] sm:$0xff] %v3043_v19  ;;  %v939_v12 = vmul.f32 %v2700_v23, %v2887_v0  ;;  %v1016_v19 = vadd.f32 %v1012_v10, %v1008_v16  ;;  %v766_v22 = vmul.f32 %v2934_v3, %v2968_v59 }
 0x2d7   :  { %v1096_v37 = vadd.f32 %v992_v26, %v744_v29  ;;  %v756_v29 = vmul.f32 %v2931_v32, %v2970_v44  ;;  %v772_v23 = vmul.f32 %v2941_v21, %v2970_v44  ;;  %v941_v10 = vadd.f32 %v937_v63, %v2952_v42 }
 0x2d8   :  { %v566_v45 = vmul.f32 %v2648_v49, %v307_v34  ;;  %v646_v61 = vmul.f32 %v2650_v50, %v307_v34  ;;  %v567_v34 = vmul.f32 %v2648_v49, %v308_v20  ;;  %v879_v26 = vadd.f32 %v875_v1, %v2954_v17 }
 0x2d9   :  { %v3054_v35 = vpop.xlane.xlu1 %548  ;;  %v1982_v30 = vmul.f32 -1.442695, %v1096_v37  ;;  %v943_v4 = vadd.f32 %v939_v12, %v2956_v58  ;;  %v881_v49 = vmul.f32 %v2723_v39, %v2910_v38  ;;  %v945_v37 = vmul.f32 %v2728_v43, %v2910_v38 }
 0x2da   :  { %v570_v48 = vadd.f32 %v566_v45, %v2805_v9  ;;  %v650_v56 = vadd.f32 %v646_v61, %v2808_v47  ;;  %v647_v9 = vmul.f32 %v2650_v50, %v308_v20  ;;  %v552_v47 = vpop.xlane.xlu0 %551  ;;  %v542_v61 = vmul.f32 0.03125, %v2928_v18 }
 0x2db   :  { %2183 = vpow2.f32 %v1982_v30  ;;  %v760_v63 = vadd.f32 %v756_v29, %v750_v53  ;;  %v3077_v50 = vadd.f32 %v567_v34, %v2832_v11  ;;  %v898_v20 = vmul.f32 %v2827_v33, %v552_v47 }
 0x2dc   :  { %v580_v16 = vadd.f32 %v576_v15, %v570_v48  ;;  %v660_v0 = vadd.f32 %v656_v5, %v650_v56  ;;  %v962_v17 = vmul.f32 %v2829_v41, %v552_v47  ;;  %v776_v58 = vadd.f32 %v772_v23, %v766_v22  ;;  %v3777_v15 = vld [vmem:[#allocation29_spill] sm:$0xff]  ;;  %v3778_v48 = vld [vmem:[#allocation31_spill] sm:$0xff]  ;;  %v3780_v47 = vld [vmem:[#allocation28_spill] sm:$0xff] }
 0x2dd   :  { %v339_v45 = vpop.xlane.xlu1 %338  ;;  %v1124_v38 = vadd.f32 %v1004_v36, %v760_v63  ;;  %v3084_v56 = vadd.f32 %v647_v9, %v3778_v48  ;;  %v885_v18 = vadd.f32 %v881_v49, %v877_v51  ;;  %v883_v11 = vmul.f32 %v2723_v39, %v2938_v25  ;;  %v3779_v23 = vld [vmem:[#allocation27_spill] sm:$0xff] }
 0x2de   :  { %v590_v30 = vadd.f32 %v586_v13, %v580_v16  ;;  %v670_v42 = vadd.f32 %v666_v6, %v660_v0  ;;  %v347_v12 = vmul.f32 0.03125, %v339_v45  ;;  %v949_v13 = vadd.f32 %v945_v37, %v941_v10 }
 0x2df   :  { %v626_v53 = vmul.f32 %v2827_v33, %v542_v61  ;;  %v706_v22 = vmul.f32 %v2829_v41, %v542_v61  ;;  %v902_v36 = vadd.f32 %v898_v20, %v3779_v23  ;;  %v966_v9 = vadd.f32 %v962_v17, %v3780_v47  ;;  %v3789_v47 = vld [vmem:[#allocation32_spill] sm:$0xff] }
 0x2e0   :  { %v600_v5 = vadd.f32 %v2814_v24, %v590_v30  ;;  %v680_v1 = vadd.f32 %v3777_v15, %v670_v42  ;;  %v1152_v24 = vadd.f32 %v1016_v19, %v776_v58  ;;  %v1032_v51 = vmul.f32 %v2996_v40, %v2944_v2  ;;  %v3783_v58 = vld [vmem:[#allocation34_spill] sm:$0xff] }
 0x2e1   :  { %v345_v6 = vpop.xlane.xlu1 %344  ;;  %v575_v0 = vmul.f32 %v2654_v52, %v347_v12  ;;  %v1986_v49 = vmul.f32 -1.442695, %v1124_v38  ;;  %v3098_v37 = vadd.f32 %v883_v11, %v879_v26  ;;  %v947_v19 = vmul.f32 %v2728_v43, %v2938_v25  ;;  %v3785_v38 = vld [vmem:[#allocation25_spill] sm:$0xff]  ;;  %v3786_v11 = vld [vmem:[#allocation26_spill] sm:$0xff] }
 0x2e2   :  { %v610_v29 = vadd.f32 %v3009_v8, %v600_v5  ;;  %v690_v34 = vadd.f32 %v3012_v54, %v680_v1  ;;  %v655_v8 = vmul.f32 %v2662_v57, %v347_v12  ;;  %v1036_v45 = vmul.f32 %v2998_v55, %v2947_v14  ;;  %v3784_v1 = vld [vmem:[#allocation35_spill] sm:$0xff] }
 0x2e3   :  { %v889_v61 = vmul.f32 %v2749_v27, %v2974_v46  ;;  %v953_v42 = vmul.f32 %v2751_v28, %v2974_v46  ;;  %v3109_v26 = vmax.f32 %v902_v36, 0.0  ;;  %v3113_v17 = vmax.f32 %v966_v9, 0.0 }
 0x2e4   :  { %v620_v10 = vadd.f32 %v3032_v31, %v610_v29  ;;  %v700_v16 = vadd.f32 %v696_v60, %v690_v34  ;;  %v1990_v60 = vmul.f32 -1.442695, %v1152_v24  ;;  %v3111_v20 = vadd.f32 %v1036_v45, %v1032_v51  ;;  %v3790_v51 = vld [vmem:[#allocation33_spill] sm:$0xff] }
 0x2e5   :  { %v380_v54 = vpop.xlane.xlu1 %379  ;;  %3781 = vst [vmem:[#allocation29_spill] sm:$0xff] %v3109_v26  ;;  %3782 = vst [vmem:[#allocation31_spill] sm:$0xff] %v3113_v17  ;;  %v579_v5 = vadd.f32 %v575_v0, %v3783_v58  ;;  %v349_v15 = vmul.f32 0.03125, %v345_v6  ;;  %2185 = vpow2.f32 %v1986_v49  ;;  %v659_v12 = vadd.f32 %v655_v8, %v3784_v1  ;;  %v3791_v0 = vld [vmem:[#allocation47_spill] sm:$0xff] }
 0x2e6   :  { %v630_v30 = vadd.f32 %v626_v53, %v620_v10  ;;  %v710_v31 = vadd.f32 %v706_v22, %v700_v16  ;;  %v388_v63 = vmul.f32 0.03125, %v380_v54  ;;  %v3119_v46 = vadd.f32 %v947_v19, %v943_v4  ;;  %v3792_v19 = vld [vmem:[#allocation48_spill] sm:$0xff] }
 0x2e7   :  { %v893_v34 = vadd.f32 %v889_v61, %v885_v18  ;;  %2187 = vpow2.f32 %v1990_v60  ;;  %v957_v6 = vadd.f32 %v953_v42, %v949_v13  ;;  %v986_v9 = vmul.f32 %v3109_v26, %v3789_v47  ;;  %v3793_v42 = vld [vmem:[#allocation46_spill] sm:$0xff] }
 0x2e8   :  { %v2184_v25 = vpop.eup %2183  ;;  %v585_v48 = vmul.f32 %v3785_v38, %v388_v63  ;;  %v665_v53 = vmul.f32 %v3786_v11, %v388_v63  ;;  %v3121_v24 = vmax.f32 %v630_v30, 0.0  ;;  %v3123_v22 = vmax.f32 %v710_v31, 0.0 }
 0x2e9   :  { %v1112_v29 = vadd.f32 1.0, %v2184_v25  ;;  %v990_v10 = vmul.f32 %v3113_v17, %v3790_v51  ;;  %v798_v4 = vmul.f32 %v2944_v2, %v2968_v59  ;;  %v577_v18 = vmul.f32 %v2654_v52, %v349_v15 }
 0x2ea   :  { %3787 = vst [vmem:[#allocation27_spill] sm:$0xff] %v3121_v24  ;;  %3788 = vst [vmem:[#allocation28_spill] sm:$0xff] %v3123_v22  ;;  %v589_v23 = vadd.f32 %v585_v48, %v579_v5  ;;  %v669_v36 = vadd.f32 %v665_v53, %v659_v12  ;;  %v657_v16 = vmul.f32 %v2662_v57, %v349_v15 }
 0x2eb   :  { %2189 = vrcp.f32 %v1112_v29  ;;  %v897_v13 = vmul.f32 %v2827_v33, %v3054_v35  ;;  %v961_v54 = vmul.f32 %v2829_v41, %v3054_v35  ;;  %v736_v61 = vmul.f32 %v3789_v47, %v3121_v24 }
 0x2ec   :  { %v3134_v49 = vadd.f32 %v3791_v0, %v589_v23  ;;  %v3137_v8 = vadd.f32 %v3792_v19, %v669_v36  ;;  %v804_v52 = vmul.f32 %v2947_v14, %v2970_v44  ;;  %v742_v30 = vmul.f32 %v3790_v51, %v3123_v22 }
 0x2ed   :  { %v752_v31 = vmul.f32 %v2892_v62, %v3121_v24  ;;  %v758_v60 = vmul.f32 %v2931_v32, %v3123_v22  ;;  %v891_v35 = vmul.f32 %v2749_v27, %v3793_v42  ;;  %v994_v63 = vadd.f32 %v990_v10, %v986_v9 }
 0x2ee   :  { %v386_v45 = vpop.xlane.xlu1 %385  ;;  %v998_v25 = vmul.f32 %v3109_v26, %v2892_v62  ;;  %v1002_v58 = vmul.f32 %v3113_v17, %v2931_v32  ;;  %v581_v5 = vadd.f32 %v577_v18, %v3077_v50  ;;  %v661_v15 = vadd.f32 %v657_v16, %v3084_v56  ;;  %v3794_v56 = vld [vmem:[#allocation36_spill] sm:$0xff] }
 0x2ef   :  { %v390_v57 = vmul.f32 0.03125, %v386_v45  ;;  %v901_v48 = vadd.f32 %v897_v13, %v893_v34  ;;  %v965_v53 = vadd.f32 %v961_v54, %v957_v6  ;;  %v1010_v29 = vmul.f32 %v3109_v26, %v2934_v3 }
 0x2f0   :  { %v808_v23 = vadd.f32 %v804_v52, %v798_v4  ;;  %v746_v10 = vadd.f32 %v742_v30, %v736_v61  ;;  %v762_v0 = vadd.f32 %v758_v60, %v752_v31  ;;  %v768_v19 = vmul.f32 %v2934_v3, %v3121_v24  ;;  %v3796_v4 = vld [vmem:[#allocation49_spill] sm:$0xff] }
 0x2f1   :  { %v587_v1 = vmul.f32 %v3785_v38, %v390_v57  ;;  %v667_v12 = vmul.f32 %v3786_v11, %v390_v57  ;;  %v774_v50 = vmul.f32 %v2941_v21, %v3123_v22  ;;  %v1044_v38 = vmul.f32 %v2996_v40, %v3794_v56  ;;  %v3795_v11 = vld [vmem:[#allocation37_spill] sm:$0xff] }
 0x2f2   :  { %v1048_v34 = vmul.f32 %v2998_v55, %v3795_v11  ;;  %v2186_v6 = vpop.eup %2185  ;;  %v800_v13 = vmul.f32 %v2944_v2, %v3121_v24  ;;  %v806_v54 = vmul.f32 %v2947_v14, %v3123_v22  ;;  %v3183_v45 = vmax.f32 %v901_v48, 0.0  ;;  %v3800_v48 = vld [vmem:[#allocation17_spill] sm:$0xff] }
 0x2f3   :  { %v591_v36 = vadd.f32 %v587_v1, %v581_v5  ;;  %v671_v9 = vadd.f32 %v667_v12, %v661_v15  ;;  %v1006_v61 = vadd.f32 %v1002_v58, %v998_v25  ;;  %v1014_v52 = vmul.f32 %v3113_v17, %v2941_v21 }
 0x2f4   :  { %3798 = vst [vmem:[#allocation35_spill] sm:$0xff] %v3183_v45  ;;  %v3187_v57 = vadd.f32 %v1048_v34, %v1044_v38  ;;  %v2188_v30 = vpop.eup %2187  ;;  %v1208_v31 = vadd.f32 %v3111_v20, %v808_v23  ;;  %v1034_v60 = vmul.f32 %v3109_v26, %v2944_v2  ;;  %v1038_v5 = vmul.f32 %v3113_v17, %v2947_v14  ;;  %v3801_v34 = vld [vmem:[#allocation38_spill] sm:$0xff] }
 0x2f5   :  { %v3174_v18 = vadd.f32 %v3040_v7, %v591_v36  ;;  %v3177_v16 = vadd.f32 %v3796_v4, %v671_v9  ;;  %v3189_v7 = vmax.f32 %v965_v53, 0.0  ;;  %v3197_v1 = vadd.f32 %v891_v35, %v3098_v37 }
 0x2f6   :  { %v955_v25 = vmul.f32 %v2751_v28, %v3793_v42  ;;  %v1098_v58 = vadd.f32 %v994_v63, %v746_v10  ;;  %v778_v12 = vadd.f32 %v774_v50, %v768_v19  ;;  %v1140_v36 = vadd.f32 1.0, %v2186_v6 }
 0x2f7   :  { %3797 = vst [vmem:[#allocation34_spill] sm:$0xff] %v3177_v16  ;;  %3799 = vst [vmem:[#allocation25_spill] sm:$0xff] %v3189_v7  ;;  %v1126_v9 = vadd.f32 %v1006_v61, %v762_v0  ;;  %v810_v20 = vadd.f32 %v806_v54, %v800_v13  ;;  %v1168_v23 = vadd.f32 1.0, %v2188_v30  ;;  %v1018_v38 = vadd.f32 %v1014_v52, %v1010_v29  ;;  %v3802_v16 = vld [vmem:[#allocation39_spill] sm:$0xff] }
 0x2f8   :  { %v2190_v15 = vpop.eup %2189  ;;  %v1056_v4 = vmul.f32 %v2996_v40, %v3801_v34  ;;  %v1060_v41 = vmul.f32 %v2998_v55, %v3802_v16  ;;  %v985_v42 = vmul.f32 %v3183_v45, %v3789_v47  ;;  %v989_v35 = vmul.f32 %v3189_v7, %v3790_v51 }
 0x2f9   :  { %v1357_v53 = vmul.f32 %v2190_v15, %v3800_v48  ;;  %v1998_v63 = vmul.f32 -1.442695, %v1208_v31  ;;  %v1042_v10 = vadd.f32 %v1038_v5, %v1034_v60  ;;  %v1984_v0 = vmul.f32 -1.442695, %v1098_v58 }
 0x2fa   :  { %v997_v29 = vmul.f32 %v3183_v45, %v2892_v62  ;;  %v1154_v19 = vadd.f32 %v1018_v38, %v778_v12  ;;  %v3213_v50 = vadd.f32 %v1060_v41, %v1056_v4  ;;  %2191 = vrcp.f32 %v1140_v36 }
 0x2fb   :  { %v453_v37 = vpop.xlane.xlu1 %452  ;;  %1365 = vrot.lane.b32.xlu0 %v1357_v53, %s2411_s13  ;;  %v1001_v6 = vmul.f32 %v3189_v7, %v2931_v32  ;;  %v1988_v13 = vmul.f32 -1.442695, %v1126_v9  ;;  %v1210_v54 = vadd.f32 %v1042_v10, %v810_v20  ;;  %v3218_v61 = vadd.f32 %v955_v25, %v3119_v46 }
 0x2fc   :  { %3803 = vst [vmem:[#allocation26_spill] sm:$0xff] %v3213_v50  ;;  %2193 = vrcp.f32 %v1168_v23  ;;  %v814_v52 = vmul.f32 %v3794_v56, %v2968_v59  ;;  %v820_v30 = vmul.f32 %v3795_v11, %v2970_v44  ;;  %v3224_v60 = vadd.f32 %v989_v35, %v985_v42  ;;  %v3804_v35 = vld [vmem:[#allocation42_spill] sm:$0xff] }
 0x2fd   :  { %v1009_v41 = vmul.f32 %v3183_v45, %v2934_v3  ;;  %v1013_v5 = vmul.f32 %v3189_v7, %v2941_v21  ;;  %2195 = vpow2.f32 %v1998_v63  ;;  %v1992_v46 = vmul.f32 -1.442695, %v1154_v19 }
 0x2fe   :  { %2197 = vpow2.f32 %v1984_v0  ;;  %v1033_v15 = vmul.f32 %v3183_v45, %v2944_v2  ;;  %v1037_v25 = vmul.f32 %v3189_v7, %v2947_v14  ;;  %v461_v58 = vmul.f32 0.03125, %v453_v37 }
 0x2ff   :  { %v459_v31 = vpop.xlane.xlu1 %458  ;;  %v3234_v12 = vadd.f32 %v1001_v6, %v997_v29  ;;  %2199 = vpow2.f32 %v1988_v13  ;;  %v2000_v53 = vmul.f32 -1.442695, %v1210_v54  ;;  %v824_v36 = vadd.f32 %v820_v30, %v814_v52  ;;  %v3805_v13 = vld [vmem:[#allocation43_spill] sm:$0xff] }
 0x300   :  { %v1045_v9 = vmul.f32 %v3183_v45, %v3794_v56  ;;  %v1049_v20 = vmul.f32 %v3189_v7, %v3795_v11  ;;  %v816_v23 = vmul.f32 %v3794_v56, %v3121_v24  ;;  %v822_v4 = vmul.f32 %v3795_v11, %v3123_v22 }
 0x301   :  { %v1046_v37 = vmul.f32 %v3109_v26, %v3794_v56  ;;  %v1050_v42 = vmul.f32 %v3113_v17, %v3795_v11  ;;  %v972_v63 = vmul.f32 %v2996_v40, %v3804_v35  ;;  %v463_v10 = vmul.f32 0.03125, %v459_v31 }
 0x302   :  { %v3250_v0 = vadd.f32 %v1013_v5, %v1009_v41  ;;  %2201 = vpow2.f32 %v1992_v46  ;;  %v3252_v29 = vadd.f32 %v1037_v25, %v1033_v15  ;;  %v605_v19 = vmul.f32 %v2723_v39, %v461_v58 }
 0x303   :  { %v493_v38 = vpop.xlane.xlu1 %492  ;;  %2203 = vpow2.f32 %v2000_v53  ;;  %v1236_v6 = vadd.f32 %v3187_v57, %v824_v36  ;;  %v976_v54 = vmul.f32 %v2998_v55, %v3805_v13  ;;  %v685_v52 = vmul.f32 %v2728_v43, %v461_v58 }
 0x304   :  { %v501_v30 = vmul.f32 0.03125, %v493_v38  ;;  %v3259_v48 = vadd.f32 %v1049_v20, %v1045_v9  ;;  %v3263_v31 = vmul.f32 %v3183_v45, %v3801_v34  ;;  %v826_v5 = vadd.f32 %v822_v4, %v816_v23 }
 0x305   :  { %v1054_v46 = vadd.f32 %v1050_v42, %v1046_v37  ;;  %v3267_v15 = vmul.f32 %v3189_v7, %v3802_v16  ;;  %v980_v57 = vadd.f32 %v976_v54, %v972_v63  ;;  %v607_v25 = vmul.f32 %v2723_v39, %v463_v10 }
 0x306   :  { %3806 = vst [vmem:[#allocation32_spill] sm:$0xff] %v3259_v48  ;;  %v3272_v58 = vmul.f32 %v3801_v34, %v2968_v59  ;;  %v718_v53 = vmul.f32 %v3804_v35, %v2968_v59  ;;  %v724_v36 = vmul.f32 %v3805_v13, %v2970_v44  ;;  %v609_v9 = vadd.f32 %v605_v19, %v3134_v49 }
 0x307   :  { %v499_v41 = vpop.xlane.xlu1 %498  ;;  %v2002_v23 = vmul.f32 -1.442695, %v1236_v6  ;;  %v3281_v38 = vmul.f32 %v3802_v16, %v2970_v44  ;;  %v3283_v4 = vpop.eup %2191  ;;  %v689_v39 = vadd.f32 %v685_v52, %v3137_v8  ;;  %v687_v37 = vmul.f32 %v2728_v43, %v463_v10  ;;  %v3809_v6 = vld [vmem:[#allocation44_spill] sm:$0xff]  ;;  %v3810_v44 = vld [vmem:[#allocation45_spill] sm:$0xff] }
 0x308   :  { %v503_v20 = vmul.f32 0.03125, %v499_v41  ;;  %3807 = vst [vmem:[#allocation33_spill] sm:$0xff] %v3283_v4  ;;  %v615_v42 = vmul.f32 %v2749_v27, %v501_v30  ;;  %v695_v63 = vmul.f32 %v2751_v28, %v501_v30  ;;  %v720_v49 = vmul.f32 %v3804_v35, %v3121_v24 }
 0x309   :  { %v3289_v54 = vpop.eup %2193  ;;  %v726_v19 = vmul.f32 %v3805_v13, %v3123_v22  ;;  %v1021_v41 = vmul.f32 %v3183_v45, %v3809_v6  ;;  %v1025_v8 = vmul.f32 %v3189_v7, %v3810_v44  ;;  %v611_v10 = vadd.f32 %v607_v25, %v3174_v18  ;;  %v3813_v25 = vld [vmem:[#allocation30_spill] sm:$0xff] }
 0x30a   :  { %3808 = vst [vmem:[#allocation47_spill] sm:$0xff] %v3289_v54  ;;  %v3299_v43 = vpop.eup %2195  ;;  %v728_v30 = vadd.f32 %v724_v36, %v718_v53  ;;  %v978_v54 = vmul.f32 %v3113_v17, %v3805_v13  ;;  %v617_v50 = vmul.f32 %v2749_v27, %v503_v20  ;;  %v697_v48 = vmul.f32 %v2751_v28, %v503_v20  ;;  %v3814_v36 = vld [vmem:[#allocation34_spill] sm:$0xff] }
 0x30b   :  { %v533_v59 = vpop.xlane.xlu1 %532  ;;  %3811 = vst [vmem:[#allocation48_spill] sm:$0xff] %v3299_v43  ;;  %v3304_v4 = vpop.eup %2197  ;;  %v974_v22 = vmul.f32 %v3109_v26, %v3804_v35  ;;  %v3310_v45 = vadd.f32 %v1025_v8, %v1021_v41  ;;  %v619_v43 = vadd.f32 %v615_v42, %v609_v9  ;;  %v699_v18 = vadd.f32 %v695_v63, %v689_v39 }
 0x30c   :  { %v541_v52 = vmul.f32 0.03125, %v533_v59  ;;  %v3312_v7 = vpop.eup %2199  ;;  %v691_v17 = vadd.f32 %v687_v37, %v3814_v36  ;;  %v1068_v24 = vadd.f32 %v980_v57, %v728_v30  ;;  %v730_v27 = vadd.f32 %v726_v19, %v720_v49 }
 0x30d   :  { %3812 = vst [vmem:[#allocation46_spill] sm:$0xff] %v3310_v45  ;;  %v1020_v28 = vmul.f32 %v2996_v40, %v3809_v6  ;;  %v3319_v8 = vadd.f32 %v1054_v46, %v826_v5  ;;  %v621_v9 = vadd.f32 %v617_v50, %v611_v10  ;;  %v982_v42 = vadd.f32 %v978_v54, %v974_v22 }
 0x30e   :  { %v625_v59 = vmul.f32 %v2827_v33, %v541_v52  ;;  %v705_v53 = vmul.f32 %v3813_v25, %v541_v52  ;;  %v701_v39 = vadd.f32 %v697_v48, %v691_v17  ;;  %v1024_v63 = vmul.f32 %v2998_v55, %v3810_v44 }
 0x30f   :  { %v539_v13 = vpop.xlane.xlu1 %538  ;;  %v3321_v45 = vpop.eup %2201  ;;  %2205 = vpow2.f32 %v2002_v23  ;;  %v3333_v46 = vmul.f32 -1.442695, %v1068_v24  ;;  %v1070_v50 = vadd.f32 %v982_v42, %v730_v27 }
 0x310   :  { %v629_v20 = vadd.f32 %v625_v59, %v619_v43  ;;  %v709_v26 = vadd.f32 %v705_v53, %v699_v18  ;;  %v543_v41 = vmul.f32 0.03125, %v539_v13  ;;  %v3325_v37 = vpop.eup %2203  ;;  %v3335_v17 = vadd.f32 %v1024_v63, %v1020_v28 }
 0x312   :  { %v3327_v57 = vmax.f32 %v629_v20, 0.0  ;;  %v3329_v49 = vmax.f32 %v709_v26, 0.0  ;;  %v627_v40 = vmul.f32 %v2827_v33, %v543_v41  ;;  %v707_v13 = vmul.f32 %v3813_v25, %v543_v41 }
 0x313   :  { %v555_v5 = vpop.xlane.xlu1 %554 }
 0x314   :  { %v631_v22 = vadd.f32 %v627_v40, %v621_v9  ;;  %v711_v48 = vadd.f32 %v707_v13, %v701_v39  ;;  %v899_v55 = vmul.f32 %v2827_v33, %v555_v5  ;;  %v963_v54 = vmul.f32 %v3813_v25, %v555_v5 }
 0x315   :  { %v735_v26 = vmul.f32 %v3789_v47, %v3327_v57  ;;  %v741_v19 = vmul.f32 %v3790_v51, %v3329_v49  ;;  %v751_v23 = vmul.f32 %v2892_v62, %v3327_v57  ;;  %v757_v24 = vmul.f32 %v2931_v32, %v3329_v49 }
 0x316   :  { %v3347_v43 = vmax.f32 %v631_v22, 0.0  ;;  %v3349_v10 = vmax.f32 %v711_v48, 0.0  ;;  %v903_v33 = vadd.f32 %v899_v55, %v3197_v1  ;;  %v967_v52 = vadd.f32 %v963_v54, %v3218_v61 }
 0x317   :  { %v745_v30 = vadd.f32 %v741_v19, %v735_v26  ;;  %v761_v18 = vadd.f32 %v757_v24, %v751_v23  ;;  %v767_v59 = vmul.f32 %v2934_v3, %v3327_v57  ;;  %v773_v25 = vmul.f32 %v2941_v21, %v3329_v49 }
 0x318   :  { %v3357_v53 = vmax.f32 %v903_v33, 0.0  ;;  %v3359_v36 = vmax.f32 %v967_v52, 0.0  ;;  %v737_v27 = vmul.f32 %v3789_v47, %v3347_v43  ;;  %v743_v1 = vmul.f32 %v3790_v51, %v3349_v10 }
 0x319   :  { %v1097_v61 = vadd.f32 %v3224_v60, %v745_v30  ;;  %v1125_v28 = vadd.f32 %v3234_v12, %v761_v18  ;;  %v753_v20 = vmul.f32 %v2892_v62, %v3347_v43  ;;  %v759_v41 = vmul.f32 %v2931_v32, %v3349_v10 }
 0x31a   :  { %v747_v9 = vadd.f32 %v743_v1, %v737_v27  ;;  %v987_v39 = vmul.f32 %v3357_v53, %v3789_v47  ;;  %v991_v42 = vmul.f32 %v3359_v36, %v3790_v51  ;;  %v999_v63 = vmul.f32 %v3357_v53, %v2892_v62 }
 0x31b   :  { %v1983_v40 = vmul.f32 -1.442695, %v1097_v61  ;;  %v1987_v60 = vmul.f32 -1.442695, %v1125_v28  ;;  %v763_v13 = vadd.f32 %v759_v41, %v753_v20  ;;  %v1003_v12 = vmul.f32 %v3359_v36, %v2931_v32 }
 0x31c   :  { %v995_v5 = vadd.f32 %v991_v42, %v987_v39  ;;  %v777_v22 = vadd.f32 %v773_v25, %v767_v59  ;;  %v769_v48 = vmul.f32 %v2934_v3, %v3347_v43  ;;  %v775_v47 = vmul.f32 %v2941_v21, %v3349_v10  ;;  %v3392_v30 = vpop.eup %2205 }
 0x31d   :  { %2207 = vpow2.f32 %v1983_v40  ;;  %v1007_v55 = vadd.f32 %v1003_v12, %v999_v63  ;;  %v1011_v51 = vmul.f32 %v3357_v53, %v2934_v3  ;;  %v1015_v62 = vmul.f32 %v3359_v36, %v2941_v21  ;;  %v3815_v40 = vld [vmem:[#allocation27_spill] sm:$0xff] }
 0x31e   :  { %v1099_v54 = vadd.f32 %v995_v5, %v747_v9  ;;  %v1153_v26 = vadd.f32 %v3250_v0, %v777_v22  ;;  %v779_v32 = vadd.f32 %v775_v47, %v769_v48  ;;  %v1980_v19 = vmul.f32 -1.442695, %v1070_v50 }
 0x31f   :  { %v1127_v23 = vadd.f32 %v1007_v55, %v763_v13  ;;  %v1019_v24 = vadd.f32 %v1015_v62, %v1011_v51  ;;  %v799_v33 = vmul.f32 %v2944_v2, %v3327_v57  ;;  %v805_v52 = vmul.f32 %v2947_v14, %v3329_v49  ;;  %v3816_v55 = vld [vmem:[#allocation35_spill] sm:$0xff] }
 0x320   :  { %v1985_v18 = vmul.f32 -1.442695, %v1099_v54  ;;  %2209 = vpow2.f32 %v1987_v60  ;;  %v801_v3 = vmul.f32 %v2944_v2, %v3347_v43  ;;  %v807_v21 = vmul.f32 %v2947_v14, %v3349_v10  ;;  %v3817_v62 = vld [vmem:[#allocation43_spill] sm:$0xff]  ;;  %v3818_v54 = vld [vmem:[#allocation25_spill] sm:$0xff] }
 0x321   :  { %v1989_v0 = vmul.f32 -1.442695, %v1127_v23  ;;  %v1155_v50 = vadd.f32 %v1019_v24, %v779_v32  ;;  %v809_v59 = vadd.f32 %v805_v52, %v799_v33  ;;  %v1035_v25 = vmul.f32 %v3357_v53, %v2944_v2  ;;  %v3819_v24 = vld [vmem:[#allocation28_spill] sm:$0xff]  ;;  %v3820_v52 = vld [vmem:[#allocation29_spill] sm:$0xff] }
 0x322   :  { %2211 = vpow2.f32 %v1985_v18  ;;  %v1991_v27 = vmul.f32 -1.442695, %v1153_v26  ;;  %v811_v1 = vadd.f32 %v807_v21, %v801_v3  ;;  %v1039_v61 = vmul.f32 %v3359_v36, %v2947_v14  ;;  %v3821_v21 = vld [vmem:[#allocation32_spill] sm:$0xff] }
 0x323   :  { %v1114_v28 = vadd.f32 1.0, %v3304_v4  ;;  %2213 = vpow2.f32 %v1989_v0  ;;  %v2004_v20 = vmul.f32 -1.442695, %v3319_v8  ;;  %v3406_v41 = vadd.f32 %v3267_v15, %v3263_v31 }
 0x324   :  { %v1043_v9 = vadd.f32 %v1039_v61, %v1035_v25  ;;  %v815_v39 = vmul.f32 %v3794_v56, %v3327_v57  ;;  %v821_v2 = vmul.f32 %v3795_v11, %v3329_v49  ;;  %2215 = vpow2.f32 %v3333_v46 }
 0x325   :  { %v1993_v42 = vmul.f32 -1.442695, %v1155_v50  ;;  %v817_v14 = vmul.f32 %v3794_v56, %v3347_v43  ;;  %v840_v4 = vadd.f32 %v3281_v38, %v3272_v58  ;;  %2217 = vpow2.f32 %v1980_v19  ;;  %v3822_v50 = vld [vmem:[#allocation26_spill] sm:$0xff] }
 0x326   :  { %2219 = vpow2.f32 %v1991_v27  ;;  %v1209_v31 = vadd.f32 %v3252_v29, %v809_v59  ;;  %v825_v15 = vadd.f32 %v821_v2, %v815_v39  ;;  %v823_v8 = vmul.f32 %v3795_v11, %v3349_v10 }
 0x327   :  { %2221 = vpow2.f32 %v2004_v20  ;;  %v831_v63 = vmul.f32 %v3801_v34, %v3327_v57  ;;  %v837_v46 = vmul.f32 %v3802_v16, %v3329_v49  ;;  %v3426_v60 = vmul.f32 %v3801_v34, %v3815_v40 }
 0x328   :  { %2223 = vrcp.f32 %v1114_v28  ;;  %v1142_v58 = vadd.f32 1.0, %v3312_v7  ;;  %v1211_v38 = vadd.f32 %v1043_v9, %v811_v1  ;;  %v827_v29 = vadd.f32 %v823_v8, %v817_v14 }
 0x329   :  { %v1170_v13 = vadd.f32 1.0, %v3321_v45  ;;  %v841_v12 = vadd.f32 %v837_v46, %v831_v63  ;;  %v833_v5 = vmul.f32 %v3801_v34, %v3347_v43  ;;  %v839_v22 = vmul.f32 %v3802_v16, %v3349_v10 }
 0x32a   :  { %v2208_v48 = vpop.eup %2207  ;;  %2225 = vpow2.f32 %v1993_v42  ;;  %v1999_v47 = vmul.f32 -1.442695, %v1209_v31  ;;  %v973_v51 = vmul.f32 %v3816_v55, %v3804_v35  ;;  %v977_v7 = vmul.f32 %v3818_v54, %v3817_v62 }
 0x32b   :  { %v1113_v26 = vadd.f32 1.0, %v2208_v48  ;;  %v1047_v45 = vmul.f32 %v3357_v53, %v3794_v56  ;;  %v1051_v32 = vmul.f32 %v3359_v36, %v3795_v11  ;;  %v3442_v19 = vadd.f32 %v839_v22, %v833_v5  ;;  %v3823_v56 = vld [vmem:[#allocation31_spill] sm:$0xff] }
 0x32c   :  { %2227 = vrcp.f32 %v1142_v58  ;;  %v2001_v23 = vmul.f32 -1.442695, %v1211_v38  ;;  %v838_v33 = vmul.f32 %v3802_v16, %v3819_v24  ;;  %v1058_v18 = vmul.f32 %v3820_v52, %v3801_v34 }
 0x32d   :  { %v2210_v3 = vpop.eup %2209  ;;  %2229 = vrcp.f32 %v1113_v26  ;;  %v1237_v0 = vadd.f32 %v3821_v21, %v825_v15  ;;  %v3450_v59 = vadd.f32 %v3822_v50, %v840_v4  ;;  %v1062_v11 = vmul.f32 %v3823_v56, %v3802_v16 }
 0x32e   :  { %2231 = vrcp.f32 %v1170_v13  ;;  %v725_v25 = vmul.f32 %v3817_v62, %v3329_v49  ;;  %v981_v27 = vadd.f32 %v977_v7, %v973_v51  ;;  %v719_v1 = vmul.f32 %v3804_v35, %v3327_v57 }
 0x32f   :  { %v2212_v61 = vpop.eup %2211  ;;  %2233 = vpow2.f32 %v1999_v47  ;;  %v1055_v28 = vadd.f32 %v1051_v32, %v1047_v45  ;;  %v721_v20 = vmul.f32 %v3804_v35, %v3347_v43  ;;  %v727_v9 = vmul.f32 %v3817_v62, %v3349_v10 }
 0x330   :  { %v2214_v39 = vpop.eup %2213  ;;  %v1115_v2 = vadd.f32 1.0, %v2212_v61  ;;  %v1141_v42 = vadd.f32 1.0, %v2210_v3  ;;  %2235 = vpow2.f32 %v2001_v23  ;;  %v729_v14 = vadd.f32 %v725_v25, %v719_v1 }
 0x331   :  { %v2216_v4 = vpop.eup %2215  ;;  %v2003_v31 = vmul.f32 -1.442695, %v1237_v0  ;;  %v1059_v15 = vmul.f32 %v3357_v53, %v3801_v34  ;;  %v731_v8 = vadd.f32 %v727_v9, %v721_v20  ;;  %v975_v63 = vmul.f32 %v3357_v53, %v3804_v35 }
 0x332   :  { %v2218_v46 = vpop.eup %2217  ;;  %2237 = vrcp.f32 %v1115_v2  ;;  %v1063_v58 = vmul.f32 %v3359_v36, %v3802_v16  ;;  %v1069_v38 = vadd.f32 %v981_v27, %v729_v14  ;;  %v979_v13 = vmul.f32 %v3359_v36, %v3817_v62 }
 0x333   :  { %v2220_v5 = vpop.eup %2219  ;;  %v1143_v22 = vadd.f32 1.0, %v2214_v39  ;;  %v1239_v48 = vadd.f32 %v1055_v28, %v827_v29  ;;  %v783_v47 = vmul.f32 %v3809_v6, %v3327_v57  ;;  %v789_v34 = vmul.f32 %v3810_v44, %v3329_v49  ;;  %v3824_v49 = vld [vmem:[#allocation46_spill] sm:$0xff] }
 0x334   :  { %v3474_v55 = vpop.eup %2221  ;;  %2239 = vrcp.f32 %v1141_v42  ;;  %v1265_v35 = vadd.f32 %v3406_v41, %v841_v12  ;;  %v1084_v51 = vadd.f32 1.0, %v2216_v4  ;;  %v983_v16 = vadd.f32 %v979_v13, %v975_v63  ;;  %v3826_v42 = vld [vmem:[#allocation48_spill] sm:$0xff]  ;;  %v3828_v63 = vld [vmem:[#allocation22_spill] sm:$0xff]  ;;  %v3829_v13 = vld [vmem:[#allocation17_spill] sm:$0xff] }
 0x335   :  { %v2224_v54 = vpop.eup %2223  ;;  %2241 = vpow2.f32 %v2003_v31  ;;  %v1979_v7 = vmul.f32 -1.442695, %v1069_v38  ;;  %v793_v62 = vadd.f32 %v789_v34, %v783_v47  ;;  %v785_v29 = vmul.f32 %v3809_v6, %v3347_v43  ;;  %v3827_v31 = vld [vmem:[#allocation18_spill] sm:$0xff] }
 0x336   :  { %v1169_v26 = vadd.f32 1.0, %v2220_v5  ;;  %v1067_v45 = vadd.f32 %v1063_v58, %v1059_v15  ;;  %v1086_v57 = vadd.f32 1.0, %v2218_v46  ;;  %v1071_v32 = vadd.f32 %v983_v16, %v731_v8  ;;  %v3830_v5 = vld [vmem:[#allocation33_spill] sm:$0xff] }
 0x337   :  { %v2226_v23 = vpop.eup %2225  ;;  %2243 = vrcp.f32 %v1143_v22  ;;  %v3480_v3 = vadd.f32 %v3824_v49, %v793_v62  ;;  %v791_v41 = vmul.f32 %v3810_v44, %v3349_v10  ;;  %v1023_v12 = vmul.f32 %v3357_v53, %v3809_v6  ;;  %v3825_v53 = vld [vmem:[#allocation21_spill] sm:$0xff] }
 0x338   :  { %v2005_v21 = vmul.f32 -1.442695, %v1239_v48  ;;  %v842_v0 = vadd.f32 %v838_v33, %v3426_v60  ;;  %2245 = vrcp.f32 %v1084_v51  ;;  %v1027_v43 = vmul.f32 %v3359_v36, %v3810_v44 }
 0x339   :  { %v2228_v50 = vpop.eup %2227  ;;  %v1066_v25 = vadd.f32 %v1062_v11, %v1058_v18  ;;  %2247 = vpow2.f32 %v1979_v7  ;;  %v1981_v27 = vmul.f32 -1.442695, %v1071_v32  ;;  %v795_v1 = vadd.f32 %v791_v41, %v785_v29 }
 0x33a   :  { %v2230_v61 = vpop.eup %2229  ;;  %2249 = vrcp.f32 %v1169_v26  ;;  %v2007_v28 = vmul.f32 -1.442695, %v1265_v35  ;;  %v1267_v10 = vadd.f32 %v1067_v45, %v3442_v19  ;;  %v1031_v20 = vadd.f32 %v1027_v43, %v1023_v12 }
 0x33b   :  { %v3490_v9 = vpop.eup %2231  ;;  %v1358_v39 = vmul.f32 %v2230_v61, %v3825_v53  ;;  %v1171_v60 = vadd.f32 1.0, %v2226_v23  ;;  %2251 = vrcp.f32 %v1086_v57  ;;  %v2006_v36 = vmul.f32 -1.442695, %v3450_v59 }
 0x33c   :  { %v2234_v33 = vpop.eup %2233  ;;  %2253 = vpow2.f32 %v2005_v21  ;;  %v1266_v18 = vadd.f32 %v1066_v25, %v842_v0  ;;  %v3494_v11 = vadd.f32 %v1031_v20, %v795_v1  ;;  %v1224_v14 = vadd.f32 1.0, %v3826_v42 }
 0x33d   :  { %v2236_v2 = vpop.eup %2235  ;;  %1367 = vrot.lane.b32.xlu1 %v1358_v39, %s2411_s13  ;;  %2255 = vpow2.f32 %v1981_v27  ;;  %v2009_v19 = vmul.f32 -1.442695, %v1267_v10  ;;  %v1359_v15 = vmul.f32 %v2224_v54, %v3827_v31  ;;  %v1225_v8 = vadd.f32 1.0, %v2234_v33  ;;  %v3831_v27 = vld [vmem:[#allocation47_spill] sm:$0xff] }
 0x33e   :  { %2257 = vpow2.f32 %v2007_v28  ;;  %v2008_v59 = vmul.f32 -1.442695, %v1266_v18  ;;  %v1446_v22 = vmul.f32 %v3830_v5, %v3829_v13  ;;  %v1227_v48 = vadd.f32 1.0, %v2236_v2 }
 0x33f   :  { %v2238_v4 = vpop.eup %2237  ;;  %2259 = vrcp.f32 %v1171_v60  ;;  %v1226_v35 = vadd.f32 1.0, %v3325_v37  ;;  %v1252_v54 = vadd.f32 1.0, %v3392_v30  ;;  %v1448_v29 = vmul.f32 %v2228_v50, %v3827_v31 }
 0x340   :  { %v1360_v46 = vmul.f32 %v2238_v4, %v3828_v63  ;;  %2261 = vpow2.f32 %v2006_v36  ;;  %v2414_v23 = vmov 0.0   ;;  %v1254_v12 = vadd.f32 1.0, %v3474_v55 }
 0x341   :  { %v2240_v58 = vpop.eup %2239  ;;  %1369 = vrot.lane.b32.xlu1 %v1359_v15, %s2411_s13  ;;  %2263 = vrcp.f32 %v1224_v14  ;;  %v1535_v1 = vmul.f32 %v3831_v27, %v3829_v13 }
 0x342   :  { %v2242_v38 = vpop.eup %2241  ;;  %1371 = vrot.lane.b32.xlu0 %v1360_v46, %s2411_s13  ;;  %2265 = vpow2.f32 %v2009_v19  ;;  %v1447_v34 = vmul.f32 %v2240_v58, %v3825_v53  ;;  %v1537_v19 = vmul.f32 %v3490_v9, %v3827_v31  ;;  %v3832_v46 = vld [vmem:[#allocation23_spill] sm:$0xff] }
 0x343   :  { %2267 = vrcp.f32 %v1225_v8  ;;  %v1253_v57 = vadd.f32 1.0, %v2242_v38 }
 0x344   :  { %v2244_v47 = vpop.eup %2243  ;;  %2269 = vpow2.f32 %v2008_v59 }
 0x345   :  { %v2246_v51 = vpop.eup %2245  ;;  %1454 = vrot.lane.b32.xlu1 %v1446_v22, %s2412_s14  ;;  %2271 = vrcp.f32 %v1227_v48  ;;  %v1449_v37 = vmul.f32 %v2244_v47, %v3828_v63  ;;  %v3834_v47 = vld [vmem:[#allocation24_spill] sm:$0xff] }
 0x346   :  { %v2248_v16 = vpop.eup %2247  ;;  %1456 = vrot.lane.b32.xlu0 %v1447_v34, %s2412_s14  ;;  %v3510_v7 = vmul.f32 %v2246_v51, %v3829_v13  ;;  %2273 = vrcp.f32 %v1226_v35  ;;  %v3833_v13 = vld [vmem:[#allocation19_spill] sm:$0xff]  ;;  %v3835_v51 = vld [vmem:[#allocation20_spill] sm:$0xff] }
 0x347   :  { %v2250_v62 = vpop.eup %2249  ;;  %v1085_v26 = vadd.f32 1.0, %v2248_v16 }
 0x348   :  { %v2252_v45 = vpop.eup %2251  ;;  %vm1300_vm4 = vcmp.gt.f32.partialorder %v3510_v7, 0.3  ;;  %v1536_v43 = vmul.f32 %v2250_v62, %v3825_v53 }
 0x349   :  { %v2254_v32 = vpop.eup %2253  ;;  %1458 = vrot.lane.b32.xlu1 %v1448_v29, %s2412_s14  ;;  %v3517_v30 = vsel %vm1300_vm4, 1.0, %v2414_v23  ;;  %2275 = vrcp.f32 %v1085_v26  ;;  %v1294_v49 = vmul.f32 %v2252_v45, %v3827_v31 }
 0x34a   :  { %v2256_v41 = vpop.eup %2255  ;;  %1460 = vrot.lane.b32.xlu0 %v1449_v37, %s2412_s14  ;;  %2277 = vrcp.f32 %v1252_v54  ;;  %v2074_v21 = vpack.c.bf16 %v3517_v30, %v3517_v30  ;;  %v1255_v61 = vadd.f32 1.0, %v2254_v32 }
 0x34b   :  { %v2258_v0 = vpop.eup %2257  ;;  %vm1302_vm6 = vcmp.gt.f32.partialorder %v1294_v49, 0.3  ;;  %v1087_v50 = vadd.f32 1.0, %v2256_v41  ;;  %2279 = vrcp.f32 %v1253_v57  ;;  %v1335_v55 = vmul.f32 0.3, %v1294_v49 }
 0x34c   :  { %v2260_v25 = vpop.eup %2259  ;;  %v2012_v28 = vsel %vm1302_vm6, 1.0, %v2414_v23  ;;  %1329 = vst.msk [vmem:[#allocation11] sm:$0xf] %vm1328_vm5, %v2074_v21  ;;  %v1281_v18 = vadd.f32 1.0, %v2258_v0 }
 0x34d   :  { %v2262_v10 = vpop.eup %2261  ;;  %1545 = vrot.lane.b32.xlu1 %v1536_v43, %s2413_s2  ;;  %v1339_v20 = vsub.f32 1.0, %v2012_v28  ;;  %2281 = vrcp.f32 %v1087_v50  ;;  %v2076_v60 = vpack.c.bf16 %v2012_v28, %v2012_v28  ;;  %v1538_v36 = vmul.f32 %v2260_v25, %v3828_v63 }
 0x34e   :  { %v2264_v39 = vpop.eup %2263  ;;  %1543 = vrot.lane.b32.xlu0 %v1535_v1, %s2413_s2  ;;  %2283 = vrcp.f32 %v1254_v12  ;;  %v1347_v42 = vmul.f32 0.0, %v2012_v28  ;;  %v1280_v4 = vadd.f32 1.0, %v2262_v10 }
 0x34f   :  { %v2266_v33 = vpop.eup %2265  ;;  %v1343_v2 = vmul.f32 %v1339_v20, %v1335_v55  ;;  %2285 = vrcp.f32 %v1255_v61  ;;  %1331 = vst.msk [vmem:[#allocation11 + $0x10] sm:$0xf] %vm1328_vm5, %v2076_v60  ;;  %v1688_v5 = vmul.f32 %v2264_v39, %v3833_v13 }
 0x350   :  { %v2268_v14 = vpop.eup %2267  ;;  %2287 = vrcp.f32 %v1281_v18  ;;  %v1283_v58 = vadd.f32 1.0, %v2266_v33 }
 0x351   :  { %v2270_v15 = vpop.eup %2269  ;;  %1549 = vrot.lane.b32.xlu1 %v1538_v36, %s2413_s2  ;;  %v3536_v8 = vadd.f32 %v1347_v42, %v1343_v2  ;;  %v1689_v59 = vmul.f32 %v2268_v14, %v3832_v46  ;;  %2289 = vrcp.f32 %v1280_v4  ;;  %v1337_v36 = vsub.f32 1.0, %v3517_v30 }
 0x352   :  { %1547 = vrot.lane.b32.xlu0 %v1537_v19, %s2413_s2  ;;  %v2272_v38 = vpop.eup %2271  ;;  %v1282_v9 = vadd.f32 1.0, %v2270_v15  ;;  %2291 = vrcp.f32 %v1283_v58  ;;  %v1333_v2 = vmul.f32 0.3, %v3510_v7  ;;  %v1345_v4 = vmul.f32 0.0, %v3517_v30 }
 0x353   :  { %v2274_v31 = vpop.eup %2273  ;;  %v1691_v34 = vmul.f32 %v2272_v38, %v3834_v47 }
 0x354   :  { %v1690_v16 = vmul.f32 %v2274_v31, %v3835_v51  ;;  %2293 = vrcp.f32 %v1282_v9  ;;  %v1341_v19 = vmul.f32 %v1337_v36, %v1333_v2 }
 0x355   :  { %1698 = vrot.lane.b32.xlu1 %v1689_v59, %s2411_s13 }
 0x356   :  { %v2276_v22 = vpop.eup %2275  ;;  %1696 = vrot.lane.b32.xlu0 %v1688_v5, %s2411_s13  ;;  %v1349_v15 = vadd.f32 %v1345_v4, %v1341_v19 }
 0x357   :  { %v2278_v48 = vpop.eup %2277  ;;  %v1293_v35 = vmul.f32 %v2276_v22, %v3825_v53 }
 0x358   :  { %v2280_v54 = vpop.eup %2279  ;;  %v1776_v29 = vmul.f32 %v2278_v48, %v3833_v13 }
 0x359   :  { %1702 = vrot.lane.b32.xlu1 %v1691_v34, %s2411_s13  ;;  %vm1301_vm7 = vcmp.gt.f32.partialorder %v1293_v35, 0.3  ;;  %v1334_v37 = vmul.f32 0.3, %v1293_v35  ;;  %v1777_v49 = vmul.f32 %v2280_v54, %v3832_v46  ;;  %v3836_v34 = vld [vmem:[#allocation40_spill] sm:$0xff] }
 0x35a   :  { %v2282_v62 = vpop.eup %2281  ;;  %1700 = vrot.lane.b32.xlu0 %v1690_v16, %s2411_s13  ;;  %v2011_v26 = vsel %vm1301_vm7, 1.0, %v2414_v23  ;;  %v782_v35 = vmul.f32 %v3809_v6, %v3836_v34  ;;  %v3837_v16 = vld [vmem:[#allocation41_spill] sm:$0xff] }
 0x35b   :  { %v2284_v45 = vpop.eup %2283  ;;  %v1338_v57 = vsub.f32 1.0, %v2011_v26  ;;  %v1295_v32 = vmul.f32 %v2282_v62, %v3828_v63  ;;  %v2075_v53 = vpack.c.bf16 %v2011_v26, %v2011_v26  ;;  %v1346_v21 = vmul.f32 0.0, %v2011_v26 }
 0x35c   :  { %v2286_v41 = vpop.eup %2285  ;;  %v1778_v43 = vmul.f32 %v2284_v45, %v3835_v51  ;;  %v788_v30 = vmul.f32 %v3810_v44, %v3837_v16  ;;  %v790_v26 = vmul.f32 %v3810_v44, %v3819_v24  ;;  %v1022_v45 = vmul.f32 %v3820_v52, %v3809_v6 }
 0x35d   :  { %1784 = vrot.lane.b32.xlu1 %v1776_v29, %s2412_s14  ;;  %v1342_v12 = vmul.f32 %v1338_v57, %v1334_v37  ;;  %vm1303_vm8 = vcmp.gt.f32.partialorder %v1295_v32, 0.3  ;;  %1330 = vst.msk [vmem:[#allocation11 + $0x8] sm:$0xf] %vm1328_vm5, %v2075_v53  ;;  %v1336_v25 = vmul.f32 0.3, %v1295_v32  ;;  %v2288_v27 = vpop.eup %2287  ;;  %v1779_v1 = vmul.f32 %v2286_v41, %v3834_v47 }
 0x35e   :  { %1786 = vrot.lane.b32.xlu0 %v1777_v49, %s2412_s14  ;;  %v2013_v0 = vsel %vm1303_vm8, 1.0, %v2414_v23  ;;  %v2290_v28 = vpop.eup %2289  ;;  %v1865_v20 = vmul.f32 %v2288_v27, %v3832_v46  ;;  %v792_v54 = vadd.f32 %v788_v30, %v782_v35  ;;  %v784_v29 = vmul.f32 %v3809_v6, %v3815_v40 }
 0x35f   :  { %v1350_v50 = vadd.f32 %v1346_v21, %v1342_v12  ;;  %v1340_v63 = vsub.f32 1.0, %v2013_v0  ;;  %v2077_v61 = vpack.c.bf16 %v2013_v0, %v2013_v0  ;;  %v1348_v55 = vmul.f32 0.0, %v2013_v0  ;;  %v2292_v60 = vpop.eup %2291 }
 0x360   :  { %v1864_v33 = vmul.f32 %v2290_v28, %v3833_v13  ;;  %v1867_v42 = vmul.f32 %v2292_v60, %v3834_v47  ;;  %v1180_v62 = vadd.f32 %v3335_v17, %v792_v54  ;;  %v1026_v37 = vmul.f32 %v3823_v56, %v3810_v44 }
 0x361   :  { %1788 = vrot.lane.b32.xlu1 %v1778_v43, %s2412_s14  ;;  %v1344_v10 = vmul.f32 %v1340_v63, %v1336_v25  ;;  %1332 = vst.msk [vmem:[#allocation11 + $0x18] sm:$0xf] %vm1328_vm5, %v2077_v61  ;;  %v2294_v18 = vpop.eup %2293  ;;  %v1995_v57 = vmul.f32 -1.442695, %v3480_v3  ;;  %v794_v53 = vadd.f32 %v790_v26, %v784_v29  ;;  %v1997_v17 = vmul.f32 -1.442695, %v3494_v11 }
 0x362   :  { %1790 = vrot.lane.b32.xlu0 %v1779_v1, %s2412_s14  ;;  %v1866_v14 = vmul.f32 %v2294_v18, %v3835_v51  ;;  %v1994_v32 = vmul.f32 -1.442695, %v1180_v62  ;;  %v1030_v49 = vadd.f32 %v1026_v37, %v1022_v45 }
 0x363   :  { %v1352_v39 = vadd.f32 %v1348_v55, %v1344_v10  ;;  %2295 = vpow2.f32 %v1995_v57 }
 0x364   :  { %2297 = vpow2.f32 %v1994_v32  ;;  %v1182_v41 = vadd.f32 %v1030_v49, %v794_v53 }
 0x365   :  { %1874 = vrot.lane.b32.xlu1 %v1865_v20, %s2413_s2  ;;  %2299 = vpow2.f32 %v1997_v17 }
 0x366   :  { %1872 = vrot.lane.b32.xlu0 %v1864_v33, %s2413_s2  ;;  %v1996_v40 = vmul.f32 -1.442695, %v1182_v41 }
 0x368   :  { %2301 = vpow2.f32 %v1996_v40 }
 0x369   :  { %1878 = vrot.lane.b32.xlu1 %v1867_v42, %s2413_s2 }
 0x36a   :  { %1876 = vrot.lane.b32.xlu0 %v1866_v14, %s2413_s2 }
 0x36d   :  { %v1366_v59 = vpop.permute.xlu0 %1365 }
 0x36e   :  { %v1377_v58 = vadd.f32 %v1366_v59, %v1349_v15 }
 0x370   :  { %vm1381_vm9 = vcmp.gt.f32.partialorder %v1377_v58, 0.3  ;;  %v1422_v9 = vmul.f32 0.3, %v1377_v58  ;;  %v2296_v24 = vpop.eup %2295 }
 0x371   :  { %v2018_v38 = vsel %vm1381_vm9, 1.0, %v2414_v23  ;;  %v2298_v12 = vpop.eup %2297  ;;  %v1197_v52 = vadd.f32 1.0, %v2296_v24 }
 0x372   :  { %v2078_v5 = vpack.c.bf16 %v2018_v38, %v2018_v38  ;;  %v1426_v7 = vsub.f32 1.0, %v2018_v38  ;;  %v1434_v22 = vmul.f32 0.0, %v2018_v38  ;;  %v1196_v44 = vadd.f32 1.0, %v2298_v12  ;;  %v2300_v56 = vpop.eup %2299 }
 0x373   :  { %2303 = vrcp.f32 %v1197_v52 }
 0x374   :  { %1405 = vrot.lane.b32.xlu1 %v2078_v5, %s2413_s2  ;;  %v1430_v31 = vmul.f32 %v1426_v7, %v1422_v9  ;;  %2305 = vrcp.f32 %v1196_v44 }
 0x375   :  { %v2302_v28 = vpop.eup %2301 }
 0x376   :  { %v1438_v48 = vadd.f32 %v1434_v22, %v1430_v31  ;;  %v1198_v59 = vadd.f32 1.0, %v2302_v28 }
 0x380   :  { %v2304_v12 = vpop.eup %2303 }
 0x3af   :  { %v1368_v21 = vpop.permute.xlu1 %1367 }
 0x3b0   :  { %v1378_v6 = vadd.f32 %v1368_v21, %v1350_v50  ;;  %v1199_v50 = vadd.f32 1.0, %v2300_v56  ;;  %v2306_v56 = vpop.eup %2305 }
 0x3b2   :  { %vm1382_vm10 = vcmp.gt.f32.partialorder %v1378_v6, 0.3  ;;  %v1423_v25 = vmul.f32 0.3, %v1378_v6  ;;  %2307 = vrcp.f32 %v1199_v50 }
 0x3b3   :  { %v2019_v3 = vsel %vm1382_vm10, 1.0, %v2414_v23  ;;  %v1370_v0 = vpop.permute.xlu1 %1369  ;;  %2309 = vrcp.f32 %v1198_v59 }
 0x3b4   :  { %v2079_v43 = vpack.c.bf16 %v2019_v3, %v2019_v3  ;;  %v1427_v63 = vsub.f32 1.0, %v2019_v3  ;;  %v1379_v11 = vadd.f32 %v1370_v0, %v3536_v8  ;;  %v1372_v27 = vpop.permute.xlu0 %1371  ;;  %v1435_v60 = vmul.f32 0.0, %v2019_v3 }
 0x3b5   :  { %v1380_v1 = vadd.f32 %v1372_v27, %v1352_v39 }
 0x3b6   :  { %vm1383_vm11 = vcmp.gt.f32.partialorder %v1379_v11, 0.3  ;;  %1407 = vrot.lane.b32.xlu0 %v2079_v43, %s2413_s2  ;;  %v1431_v61 = vmul.f32 %v1427_v63, %v1423_v25  ;;  %v1424_v55 = vmul.f32 0.3, %v1379_v11 }
 0x3b7   :  { %v2020_v10 = vsel %vm1383_vm11, 1.0, %v2414_v23  ;;  %vm1384_vm12 = vcmp.gt.f32.partialorder %v1380_v1, 0.3  ;;  %v1455_v20 = vpop.permute.xlu1 %1454  ;;  %v1425_v42 = vmul.f32 0.3, %v1380_v1 }
 0x3b8   :  { %v2080_v33 = vpack.c.bf16 %v2020_v10, %v2020_v10  ;;  %v1428_v36 = vsub.f32 1.0, %v2020_v10  ;;  %v2021_v8 = vsel %vm1384_vm12, 1.0, %v2414_v23  ;;  %v1466_v18 = vadd.f32 %v1455_v20, %v1438_v48  ;;  %v1457_v39 = vpop.permute.xlu0 %1456 }
 0x3b9   :  { %v2081_v2 = vpack.c.bf16 %v2021_v8, %v2021_v8  ;;  %v1429_v14 = vsub.f32 1.0, %v2021_v8  ;;  %v1439_v19 = vadd.f32 %v1435_v60, %v1431_v61  ;;  %v1436_v15 = vmul.f32 0.0, %v2020_v10 }
 0x3ba   :  { %vm1470_vm13 = vcmp.gt.f32.partialorder %v1466_v18, 0.3  ;;  %1409 = vrot.lane.b32.xlu1 %v2080_v33, %s2413_s2  ;;  %v1432_v4 = vmul.f32 %v1428_v36, %v1424_v55  ;;  %v1437_v7 = vmul.f32 0.0, %v2021_v8  ;;  %v1511_v22 = vmul.f32 0.3, %v1466_v18 }
 0x3bb   :  { %v2026_v58 = vsel %vm1470_vm13, 1.0, %v2414_v23  ;;  %v1467_v38 = vadd.f32 %v1457_v39, %v1439_v19  ;;  %v1459_v5 = vpop.permute.xlu1 %1458  ;;  %1411 = vrot.lane.b32.xlu0 %v2081_v2, %s2413_s2  ;;  %v1433_v9 = vmul.f32 %v1429_v14, %v1425_v42 }
 0x3bc   :  { %v2082_v31 = vpack.c.bf16 %v2026_v58, %v2026_v58  ;;  %v1515_v48 = vsub.f32 1.0, %v2026_v58  ;;  %v1440_v34 = vadd.f32 %v1436_v15, %v1432_v4  ;;  %v1461_v35 = vpop.permute.xlu0 %1460  ;;  %v1523_v29 = vmul.f32 0.0, %v2026_v58 }
 0x3bd   :  { %vm1471_vm14 = vcmp.gt.f32.partialorder %v1467_v38, 0.3  ;;  %v1441_v16 = vadd.f32 %v1437_v7, %v1433_v9  ;;  %v1512_v45 = vmul.f32 0.3, %v1467_v38  ;;  %v1625_v38 = vmul.f32 %v2304_v12, %v3832_v46 }
 0x3be   :  { %v2027_v30 = vsel %vm1471_vm14, 1.0, %v2414_v23  ;;  %v1468_v54 = vadd.f32 %v1459_v5, %v1440_v34  ;;  %1494 = vrot.lane.b32.xlu1 %v2082_v31, %s2412_s14  ;;  %v1519_v62 = vmul.f32 %v1515_v48, %v1511_v22  ;;  %v1624_v5 = vmul.f32 %v2306_v56, %v3833_v13 }
 0x3bf   :  { %v2083_v26 = vpack.c.bf16 %v2027_v30, %v2027_v30  ;;  %v1516_v37 = vsub.f32 1.0, %v2027_v30  ;;  %v1469_v57 = vadd.f32 %v1461_v35, %v1441_v16  ;;  %v1546_v32 = vpop.permute.xlu1 %1545  ;;  %v1524_v53 = vmul.f32 0.0, %v2027_v30  ;;  %v2308_v59 = vpop.eup %2307 }
 0x3c0   :  { %vm1472_vm15 = vcmp.gt.f32.partialorder %v1468_v54, 0.3  ;;  %v1527_v49 = vadd.f32 %v1523_v29, %v1519_v62  ;;  %v1544_v17 = vpop.permute.xlu0 %1543  ;;  %v1513_v40 = vmul.f32 0.3, %v1468_v54  ;;  %v2310_v30 = vpop.eup %2309  ;;  %v1627_v12 = vmul.f32 %v2308_v59, %v3834_v47 }
 0x3c1   :  { %v2028_v41 = vsel %vm1472_vm15, 1.0, %v2414_v23  ;;  %vm1473_vm0 = vcmp.gt.f32.partialorder %v1469_v57, 0.3  ;;  %v1520_v24 = vmul.f32 %v1516_v37, %v1512_v45  ;;  %1496 = vrot.lane.b32.xlu0 %v2083_v26, %s2412_s14  ;;  %v1514_v0 = vmul.f32 0.3, %v1469_v57 }
 0x3c2   :  { %v2084_v21 = vpack.c.bf16 %v2028_v41, %v2028_v41  ;;  %v1517_v6 = vsub.f32 1.0, %v2028_v41  ;;  %v2029_v52 = vsel %vm1473_vm0, 1.0, %v2414_v23  ;;  %v1555_v44 = vadd.f32 %v1544_v17, %v1527_v49 }
 0x3c3   :  { %v2085_v3 = vpack.c.bf16 %v2029_v52, %v2029_v52  ;;  %v1518_v43 = vsub.f32 1.0, %v2029_v52  ;;  %v1528_v25 = vadd.f32 %v1524_v53, %v1520_v24  ;;  %v1550_v63 = vpop.permute.xlu1 %1549  ;;  %v1525_v27 = vmul.f32 0.0, %v2028_v41 }
 0x3c4   :  { %vm1559_vm1 = vcmp.gt.f32.partialorder %v1555_v44, 0.3  ;;  %1498 = vrot.lane.b32.xlu1 %v2084_v21, %s2412_s14  ;;  %v1521_v11 = vmul.f32 %v1517_v6, %v1513_v40  ;;  %v1526_v28 = vmul.f32 0.0, %v2029_v52  ;;  %v1600_v55 = vmul.f32 0.3, %v1555_v44  ;;  %v1548_v36 = vpop.permute.xlu0 %1547 }
 0x3c5   :  { %v1556_v1 = vadd.f32 %v1546_v32, %v1528_v25  ;;  %v2034_v61 = vsel %vm1559_vm1, 1.0, %v2414_v23  ;;  %v1522_v50 = vmul.f32 %v1518_v43, %v1514_v0  ;;  %1500 = vrot.lane.b32.xlu0 %v2085_v3, %s2412_s14  ;;  %v1626_v49 = vmul.f32 %v2310_v30, %v3835_v51 }
 0x3c6   :  { %v2086_v10 = vpack.c.bf16 %v2034_v61, %v2034_v61  ;;  %v1604_v20 = vsub.f32 1.0, %v2034_v61  ;;  %v1529_v60 = vadd.f32 %v1525_v27, %v1521_v11  ;;  %v1612_v2 = vmul.f32 0.0, %v2034_v61 }
 0x3c7   :  { %vm1560_vm2 = vcmp.gt.f32.partialorder %v1556_v1, 0.3  ;;  %v1530_v33 = vadd.f32 %v1526_v28, %v1522_v50  ;;  %v3605_v8 = vpop.permute.xlu1 %1698  ;;  %v1601_v19 = vmul.f32 0.3, %v1556_v1  ;;  %vm1417_vm14 = vcmask 519424  }
 0x3c8   :  { %v2035_v18 = vsel %vm1560_vm2, 1.0, %v2414_v23  ;;  %v1608_v39 = vmul.f32 %v1604_v20, %v1600_v55  ;;  %v1557_v42 = vadd.f32 %v1548_v36, %v1529_v60  ;;  %1583 = vrot.lane.b32.xlu1 %v2086_v10, %s2411_s13  ;;  %v1697_v24 = vpop.permute.xlu0 %1696 }
 0x3c9   :  { %v2087_v14 = vpack.c.bf16 %v2035_v18, %v2035_v18  ;;  %v1605_v4 = vsub.f32 1.0, %v2035_v18  ;;  %v1558_v15 = vadd.f32 %v1550_v63, %v1530_v33  ;;  %v1613_v7 = vmul.f32 0.0, %v2035_v18 }
 0x3ca   :  { %v1616_v58 = vadd.f32 %v1612_v2, %v1608_v39  ;;  %vm1561_vm3 = vcmp.gt.f32.partialorder %v1557_v42, 0.3  ;;  %v1602_v35 = vmul.f32 0.3, %v1557_v42 }
 0x3cb   :  { %v1609_v9 = vmul.f32 %v1605_v4, %v1601_v19  ;;  %vm1562_vm4 = vcmp.gt.f32.partialorder %v1558_v15, 0.3  ;;  %v2036_v31 = vsel %vm1561_vm3, 1.0, %v2414_v23  ;;  %1585 = vrot.lane.b32.xlu0 %v2087_v14, %s2411_s13  ;;  %v3613_v22 = vpop.permute.xlu1 %1702  ;;  %v1603_v46 = vmul.f32 0.3, %v1558_v15 }
 0x3cc   :  { %v2037_v48 = vsel %vm1562_vm4, 1.0, %v2414_v23  ;;  %v2088_v34 = vpack.c.bf16 %v2036_v31, %v2036_v31  ;;  %v1606_v16 = vsub.f32 1.0, %v2036_v31  ;;  %v1614_v26 = vmul.f32 0.0, %v2036_v31  ;;  %v1701_v33 = vpop.permute.xlu0 %1700 }
 0x3cd   :  { %v1617_v54 = vadd.f32 %v1613_v7, %v1609_v9  ;;  %v2089_v62 = vpack.c.bf16 %v2037_v48, %v2037_v48  ;;  %v1607_v29 = vsub.f32 1.0, %v2037_v48  ;;  %v1628_v45 = vadd.f32 %v1624_v5, %v1616_v58 }
 0x3ce   :  { %v1610_v13 = vmul.f32 %v1606_v16, %v1602_v35  ;;  %1587 = vrot.lane.b32.xlu1 %v2088_v34, %s2411_s13  ;;  %v1615_v57 = vmul.f32 0.0, %v2037_v48 }
 0x3cf   :  { %v1611_v37 = vmul.f32 %v1607_v29, %v1603_v46  ;;  %v1629_v32 = vadd.f32 %v1625_v38, %v1617_v54  ;;  %1589 = vrot.lane.b32.xlu0 %v2089_v62, %s2411_s13  ;;  %vm1632_vm6 = vcmp.gt.f32.partialorder %v1628_v45, 0.3  ;;  %v3619_v17 = vpop.permute.xlu1 %1784  ;;  %v1664_v6 = vmul.f32 0.3, %v1628_v45 }
 0x3d0   :  { %v1618_v53 = vadd.f32 %v1614_v26, %v1610_v13  ;;  %v2042_v40 = vsel %vm1632_vm6, 1.0, %v2414_v23  ;;  %v1787_v30 = vpop.permute.xlu0 %1786 }
 0x3d1   :  { %v1619_v41 = vadd.f32 %v1615_v57, %v1611_v37  ;;  %vm1633_vm7 = vcmp.gt.f32.partialorder %v1629_v32, 0.3  ;;  %v1668_v52 = vsub.f32 1.0, %v2042_v40  ;;  %v1665_v56 = vmul.f32 0.3, %v1629_v32 }
 0x3d2   :  { %v2043_v21 = vsel %vm1633_vm7, 1.0, %v2414_v23  ;;  %v1630_v44 = vadd.f32 %v1626_v49, %v1618_v53  ;;  %v2090_v43 = vpack.c.bf16 %v2042_v40, %v2042_v40  ;;  %v1676_v51 = vmul.f32 0.0, %v2042_v40 }
 0x3d3   :  { %v1669_v3 = vsub.f32 1.0, %v2043_v21  ;;  %v1631_v0 = vadd.f32 %v1627_v12, %v1619_v41  ;;  %v1672_v25 = vmul.f32 %v1668_v52, %v1664_v6  ;;  %v2091_v63 = vpack.c.bf16 %v2043_v21, %v2043_v21  ;;  %v3627_v10 = vpop.permute.xlu1 %1788 }
 0x3d4   :  { %vm1634_vm8 = vcmp.gt.f32.partialorder %v1630_v44, 0.3  ;;  %v1677_v27 = vmul.f32 0.0, %v2043_v21  ;;  %1660 = vst.msk [vmem:[#allocation11 + $0x4] sm:$0xf] %vm1328_vm5, %v2090_v43  ;;  %vm1506_vm7 = vcmask 781824  }
 0x3d5   :  { %v1673_v11 = vmul.f32 %v1669_v3, %v1665_v56  ;;  %vm1635_vm9 = vcmp.gt.f32.partialorder %v1631_v0, 0.3  ;;  %v2044_v1 = vsel %vm1634_vm8, 1.0, %v2414_v23  ;;  %v1680_v47 = vadd.f32 %v1676_v51, %v1672_v25  ;;  %1661 = vst.msk [vmem:[#allocation11 + $0xc] sm:$0xf] %vm1328_vm5, %v2091_v63  ;;  %v1791_v56 = vpop.permute.xlu0 %1790 }
 0x3d6   :  { %v2045_v61 = vsel %vm1635_vm9, 1.0, %v2414_v23  ;;  %v1666_v50 = vmul.f32 0.3, %v1630_v44  ;;  %v1670_v28 = vsub.f32 1.0, %v2044_v1  ;;  %v1667_v20 = vmul.f32 0.3, %v1631_v0 }
 0x3d7   :  { %v1681_v55 = vadd.f32 %v1677_v27, %v1673_v11  ;;  %v1671_v60 = vsub.f32 1.0, %v2045_v61  ;;  %v2092_v36 = vpack.c.bf16 %v2044_v1, %v2044_v1  ;;  %v1708_v18 = vadd.f32 %v1697_v24, %v1680_v47  ;;  %v3635_v48 = vpop.permute.xlu1 %1874 }
 0x3d8   :  { %v1674_v39 = vmul.f32 %v1670_v28, %v1666_v50  ;;  %v1678_v2 = vmul.f32 0.0, %v2044_v1  ;;  %v2093_v42 = vpack.c.bf16 %v2045_v61, %v2045_v61  ;;  %v1679_v4 = vmul.f32 0.0, %v2045_v61 }
 0x3d9   :  { %v1709_v14 = vadd.f32 %v3605_v8, %v1681_v55  ;;  %v1675_v19 = vmul.f32 %v1671_v60, %v1667_v20  ;;  %1662 = vst.msk [vmem:[#allocation11 + $0x14] sm:$0xf] %vm1328_vm5, %v2092_v36  ;;  %vm1712_vm10 = vcmp.gt.f32.partialorder %v1708_v18, 0.3  ;;  %v1752_v58 = vmul.f32 0.3, %v1708_v18  ;;  %v1873_v18 = vpop.permute.xlu0 %1872 }
 0x3da   :  { %v1682_v15 = vadd.f32 %v1678_v2, %v1674_v39  ;;  %1663 = vst.msk [vmem:[#allocation11 + $0x1c] sm:$0xf] %vm1328_vm5, %v2093_v42  ;;  %v2050_v59 = vsel %vm1712_vm10, 1.0, %v2414_v23  ;;  %vm1595_vm8 = vcmask 1044224  }
 0x3db   :  { %vm1713_vm11 = vcmp.gt.f32.partialorder %v1709_v14, 0.3  ;;  %v1683_v38 = vadd.f32 %v1679_v4, %v1675_v19  ;;  %v2094_v9 = vpack.c.bf16 %v2050_v59, %v2050_v59  ;;  %v1756_v7 = vsub.f32 1.0, %v2050_v59  ;;  %v1879_v21 = vpop.permute.xlu1 %1878 }
 0x3dc   :  { %v2051_v5 = vsel %vm1713_vm11, 1.0, %v2414_v23  ;;  %v1710_v31 = vadd.f32 %v1701_v33, %v1682_v15  ;;  %v1753_v34 = vmul.f32 0.3, %v1709_v14  ;;  %v1764_v46 = vmul.f32 0.0, %v2050_v59 }
 0x3dd   :  { %v2095_v8 = vpack.c.bf16 %v2051_v5, %v2051_v5  ;;  %v1757_v35 = vsub.f32 1.0, %v2051_v5  ;;  %v1711_v16 = vadd.f32 %v3613_v22, %v1683_v38  ;;  %v1760_v62 = vmul.f32 %v1756_v7, %v1752_v58  ;;  %1736 = vrot.lane.b32.xlu1 %v2094_v9, %s2413_s2 }
 0x3de   :  { %vm1714_vm12 = vcmp.gt.f32.partialorder %v1710_v31, 0.3  ;;  %v1754_v54 = vmul.f32 0.3, %v1710_v31  ;;  %v1765_v26 = vmul.f32 0.0, %v2051_v5 }
 0x3df   :  { %vm1715_vm5 = vcmp.gt.f32.partialorder %v1711_v16, 0.3  ;;  %v2052_v29 = vsel %vm1714_vm12, 1.0, %v2414_v23  ;;  %v1761_v13 = vmul.f32 %v1757_v35, %v1753_v34  ;;  %1738 = vrot.lane.b32.xlu0 %v2095_v8, %s2413_s2  ;;  %v1768_v32 = vadd.f32 %v1764_v46, %v1760_v62  ;;  %v1877_v35 = vpop.permute.xlu0 %1876 }
 0x3e0   :  { %v2053_v45 = vsel %vm1715_vm5, 1.0, %v2414_v23  ;;  %v2096_v37 = vpack.c.bf16 %v2052_v29, %v2052_v29  ;;  %v1758_v57 = vsub.f32 1.0, %v2052_v29  ;;  %v1755_v53 = vmul.f32 0.3, %v1711_v16 }
 0x3e1   :  { %v2097_v22 = vpack.c.bf16 %v2053_v45, %v2053_v45  ;;  %v1759_v49 = vsub.f32 1.0, %v2053_v45  ;;  %v1769_v41 = vadd.f32 %v1765_v26, %v1761_v13  ;;  %v1796_v40 = vadd.f32 %v3619_v17, %v1768_v32 }
 0x3e2   :  { %v1762_v24 = vmul.f32 %v1758_v57, %v1754_v54  ;;  %v1766_v12 = vmul.f32 0.0, %v2052_v29  ;;  %1740 = vrot.lane.b32.xlu1 %v2096_v37, %s2413_s2  ;;  %v1767_v44 = vmul.f32 0.0, %v2053_v45 }
 0x3e3   :  { %v1797_v6 = vadd.f32 %v1787_v30, %v1769_v41  ;;  %v1763_v52 = vmul.f32 %v1759_v49, %v1755_v53  ;;  %1742 = vrot.lane.b32.xlu0 %v2097_v22, %s2413_s2  ;;  %vm1800_vm13 = vcmp.gt.f32.partialorder %v1796_v40, 0.3  ;;  %v1840_v43 = vmul.f32 0.3, %v1796_v40 }
 0x3e4   :  { %v1770_v3 = vadd.f32 %v1766_v12, %v1762_v24  ;;  %v2058_v0 = vsel %vm1800_vm13, 1.0, %v2414_v23 }
 0x3e5   :  { %vm1801_vm15 = vcmp.gt.f32.partialorder %v1797_v6, 0.3  ;;  %v1771_v25 = vadd.f32 %v1767_v44, %v1763_v52  ;;  %v2098_v17 = vpack.c.bf16 %v2058_v0, %v2058_v0  ;;  %v1844_v51 = vsub.f32 1.0, %v2058_v0 }
 0x3e6   :  { %v2059_v63 = vsel %vm1801_vm15, 1.0, %v2414_v23  ;;  %v1798_v11 = vadd.f32 %v3627_v10, %v1770_v3  ;;  %v1406_v27 = vpop.permute.xlu1 %1405  ;;  %v1841_v47 = vmul.f32 0.3, %v1797_v6  ;;  %v1852_v20 = vmul.f32 0.0, %v2058_v0 }
 0x3e7   :  { %v2099_v1 = vpack.c.bf16 %v2059_v63, %v2059_v63  ;;  %v1845_v61 = vsub.f32 1.0, %v2059_v63  ;;  %v1799_v50 = vadd.f32 %v1791_v56, %v1771_v25  ;;  %1418 = vst.msk [vmem:[#allocation11] sm:$0xf] %vm1417_vm14, %v1406_v27  ;;  %v1853_v28 = vmul.f32 0.0, %v2059_v63  ;;  %1824 = vrot.lane.b32.xlu1 %v2098_v17, %s2412_s14 }
 0x3e8   :  { %vm1802_vm0 = vcmp.gt.f32.partialorder %v1798_v11, 0.3  ;;  %v1848_v55 = vmul.f32 %v1844_v51, %v1840_v43  ;;  %v1842_v33 = vmul.f32 0.3, %v1798_v11 }
 0x3e9   :  { %v2060_v60 = vsel %vm1802_vm0, 1.0, %v2414_v23  ;;  %vm1803_vm1 = vcmp.gt.f32.partialorder %v1799_v50, 0.3  ;;  %v1849_v36 = vmul.f32 %v1845_v61, %v1841_v47  ;;  %1826 = vrot.lane.b32.xlu0 %v2099_v1, %s2412_s14  ;;  %v1843_v19 = vmul.f32 0.3, %v1799_v50 }
 0x3ea   :  { %v2100_v10 = vpack.c.bf16 %v2060_v60, %v2060_v60  ;;  %v1846_v39 = vsub.f32 1.0, %v2060_v60  ;;  %v2061_v2 = vsel %vm1803_vm1, 1.0, %v2414_v23  ;;  %v1856_v42 = vadd.f32 %v1852_v20, %v1848_v55 }
 0x3eb   :  { %v2101_v14 = vpack.c.bf16 %v2061_v2, %v2061_v2  ;;  %v1847_v4 = vsub.f32 1.0, %v2061_v2  ;;  %v1857_v15 = vadd.f32 %v1853_v28, %v1849_v36  ;;  %v1854_v38 = vmul.f32 0.0, %v2060_v60 }
 0x3ec   :  { %v1884_v59 = vadd.f32 %v1873_v18, %v1856_v42  ;;  %v1850_v58 = vmul.f32 %v1846_v39, %v1842_v33  ;;  %1828 = vrot.lane.b32.xlu1 %v2100_v10, %s2412_s14  ;;  %v1855_v7 = vmul.f32 0.0, %v2061_v2 }
 0x3ed   :  { %v1885_v5 = vadd.f32 %v3635_v48, %v1857_v15  ;;  %v1851_v9 = vmul.f32 %v1847_v4, %v1843_v19  ;;  %1830 = vrot.lane.b32.xlu0 %v2101_v14, %s2412_s14 }
 0x3ee   :  { %vm1888_vm2 = vcmp.gt.f32.partialorder %v1884_v59, 0.3  ;;  %v1858_v31 = vadd.f32 %v1854_v38, %v1850_v58 }
 0x3ef   :  { %vm1889_vm3 = vcmp.gt.f32.partialorder %v1885_v5, 0.3  ;;  %v2066_v8 = vsel %vm1888_vm2, 1.0, %v2414_v23  ;;  %v1859_v34 = vadd.f32 %v1855_v7, %v1851_v9 }
 0x3f0   :  { %v2067_v16 = vsel %vm1889_vm3, 1.0, %v2414_v23  ;;  %v2102_v30 = vpack.c.bf16 %v2066_v8, %v2066_v8  ;;  %v1886_v54 = vadd.f32 %v1877_v35, %v1858_v31 }
 0x3f1   :  { %v2103_v62 = vpack.c.bf16 %v2067_v16, %v2067_v16  ;;  %v1887_v46 = vadd.f32 %v1879_v21, %v1859_v34 }
 0x3f2   :  { %vm1890_vm4 = vcmp.gt.f32.partialorder %v1886_v54, 0.3  ;;  %1912 = vrot.lane.b32.xlu1 %v2102_v30, %s2411_s13 }
 0x3f3   :  { %vm1891_vm6 = vcmp.gt.f32.partialorder %v1887_v46, 0.3  ;;  %v2068_v48 = vsel %vm1890_vm4, 1.0, %v2414_v23  ;;  %1914 = vrot.lane.b32.xlu0 %v2103_v62, %s2411_s13 }
 0x3f4   :  { %v2069_v29 = vsel %vm1891_vm6, 1.0, %v2414_v23  ;;  %v2104_v13 = vpack.c.bf16 %v2068_v48, %v2068_v48 }
 0x3f5   :  { %v2105_v26 = vpack.c.bf16 %v2069_v29, %v2069_v29 }
 0x3f6   :  { %1916 = vrot.lane.b32.xlu1 %v2104_v13, %s2411_s13 }
 0x3f7   :  { %1918 = vrot.lane.b32.xlu0 %v2105_v26, %s2411_s13  ;;  %s2415_s13 = smov [#allocation11]  }
 0x3f8   :  { %s1933_s14 = sshll.u32 %s2415_s13, 4  ;;  %s1934_s14 = int_to_ptr.vmem [resolvable:$true] %s1933_s14 }
 0x3f9   :  { %s2375_s2 = scalar_lea.vmem %s1934_s14, 512  ;;  %p2380_p7 = scmp.lt.s32.totalorder %s1934_s14, %s1934_s14 }
 0x3fa   :  { %p2376_p6 = scmp.ne.s32.totalorder %s1934_s14, %s2375_s2  ;;  %p2381_p8 = scmp.lt.s32.totalorder %s2375_s2, %s2375_s2 }
 0x3fc   :  { %p2382_p9 = por %p2381_p8, %p2380_p7 }
 0x3fe   :  { %p2383_p10 = pnand %p2382_p9, %p2376_p6 }
 0x428   :  { %v1408_v45 = vpop.permute.xlu0 %1407 }
 0x429   :  { %1419 = vst.msk [vmem:[#allocation11 + $0x8] sm:$0xf] %vm1417_vm14, %v1408_v45 }
 0x42c   :  { %v1410_v37 = vpop.permute.xlu1 %1409 }
 0x42d   :  { %1420 = vst.msk [vmem:[#allocation11 + $0x10] sm:$0xf] %vm1417_vm14, %v1410_v37  ;;  %v1412_v57 = vpop.permute.xlu0 %1411 }
 0x42e   :  { %1421 = vst.msk [vmem:[#allocation11 + $0x18] sm:$0xf] %vm1417_vm14, %v1412_v57 }
 0x430   :  { %v1495_v32 = vpop.permute.xlu1 %1494 }
 0x431   :  { %1507 = vst.msk [vmem:[#allocation11] sm:$0xf] %vm1506_vm7, %v1495_v32 }
 0x433   :  { %v1497_v23 = vpop.permute.xlu0 %1496 }
 0x434   :  { %1508 = vst.msk [vmem:[#allocation11 + $0x8] sm:$0xf] %vm1506_vm7, %v1497_v23 }
 0x436   :  { %v1499_v22 = vpop.permute.xlu1 %1498 }
 0x437   :  { %1509 = vst.msk [vmem:[#allocation11 + $0x10] sm:$0xf] %vm1506_vm7, %v1499_v22  ;;  %v1501_v53 = vpop.permute.xlu0 %1500 }
 0x438   :  { %1510 = vst.msk [vmem:[#allocation11 + $0x18] sm:$0xf] %vm1506_vm7, %v1501_v53 }
 0x43a   :  { %v1584_v49 = vpop.permute.xlu1 %1583 }
 0x43b   :  { %1596 = vst.msk [vmem:[#allocation11] sm:$0xf] %vm1595_vm8, %v1584_v49 }
 0x43d   :  { %v1586_v41 = vpop.permute.xlu0 %1585 }
 0x43e   :  { %1597 = vst.msk [vmem:[#allocation11 + $0x8] sm:$0xf] %vm1595_vm8, %v1586_v41 }
 0x440   :  { %v1588_v40 = vpop.permute.xlu1 %1587 }
 0x441   :  { %1598 = vst.msk [vmem:[#allocation11 + $0x10] sm:$0xf] %vm1595_vm8, %v1588_v40  ;;  %v1590_v24 = vpop.permute.xlu0 %1589 }
 0x442   :  { %1599 = vst.msk [vmem:[#allocation11 + $0x18] sm:$0xf] %vm1595_vm8, %v1590_v24 }
 0x44f   :  { %v1737_v12 = vpop.permute.xlu1 %1736 }
 0x450   :  { %1748 = vst.msk [vmem:[#allocation11 + $0x4] sm:$0xf] %vm1417_vm14, %v1737_v12 }
 0x451   :  { %v1739_v21 = vpop.permute.xlu0 %1738 }
 0x452   :  { %1749 = vst.msk [vmem:[#allocation11 + $0xc] sm:$0xf] %vm1417_vm14, %v1739_v21 }
 0x454   :  { %v1741_v6 = vpop.permute.xlu1 %1740 }
 0x455   :  { %1750 = vst.msk [vmem:[#allocation11 + $0x14] sm:$0xf] %vm1417_vm14, %v1741_v6  ;;  %v1743_v52 = vpop.permute.xlu0 %1742 }
 0x456   :  { %1751 = vst.msk [vmem:[#allocation11 + $0x1c] sm:$0xf] %vm1417_vm14, %v1743_v52 }
 0x459   :  { %v1825_v44 = vpop.permute.xlu1 %1824 }
 0x45a   :  { %1836 = vst.msk [vmem:[#allocation11 + $0x4] sm:$0xf] %vm1506_vm7, %v1825_v44 }
 0x45b   :  { %v1827_v56 = vpop.permute.xlu0 %1826 }
 0x45c   :  { %1837 = vst.msk [vmem:[#allocation11 + $0xc] sm:$0xf] %vm1506_vm7, %v1827_v56 }
 0x45e   :  { %v1829_v3 = vpop.permute.xlu1 %1828 }
 0x45f   :  { %1838 = vst.msk [vmem:[#allocation11 + $0x14] sm:$0xf] %vm1506_vm7, %v1829_v3  ;;  %v1831_v0 = vpop.permute.xlu0 %1830 }
 0x460   :  { %1839 = vst.msk [vmem:[#allocation11 + $0x1c] sm:$0xf] %vm1506_vm7, %v1831_v0 }
 0x464   :  { %v1913_v43 = vpop.permute.xlu1 %1912 }
 0x465   :  { %1924 = vst.msk [vmem:[#allocation11 + $0x4] sm:$0xf] %vm1595_vm8, %v1913_v43  ;;  %v1915_v25 = vpop.permute.xlu0 %1914 }
 0x466   :  { %1925 = vst.msk [vmem:[#allocation11 + $0xc] sm:$0xf] %vm1595_vm8, %v1915_v25 }
 0x468   :  { %v1917_v17 = vpop.permute.xlu1 %1916 }
 0x469   :  { %1926 = vst.msk [vmem:[#allocation11 + $0x14] sm:$0xf] %vm1595_vm8, %v1917_v17  ;;  %v1919_v51 = vpop.permute.xlu0 %1918 }
 0x46a   :  { %1927 = vst.msk [vmem:[#allocation11 + $0x1c] sm:$0xf] %vm1595_vm8, %v1919_v51 }
 0x46b   :  { %2386 = shalt.err (!%p2383_p10)
}
 0x46c   :  { %s2416_s20 = smov 128   ;;  %s2417_s21 = smov 8  }
 0x46d   :  { %1939 = dma.vmem_to_hbm [thread:$0]  %s1934_s14, 512, %s3695_s5, [#allocation4], %s2416_s20, %s2416_s20, %s2417_s21  }
 0x46e   :  { %2403 = dma.done.wait [#allocation4], 512  }
 0x46f   :  { %2404 = vsyncadd [#allocation4], 4294966784 }
 0x470   :  { %1943 = vsyncpa [#allocation3], 1 }
 0x471   :  { %1944 = vsyncpa [#allocation7], 1 }
 0x472   :  { %1945 = vsyncpa [#allocation4], 1 }
 0x473   :  { %1946 = vsyncpa [#allocation5], 1 }
 0x474   :  { %1947 = vsyncpa [#allocation10], 1 }

</bundles_post_ra>
